<compile_context>
chip_gen: v7x
topology: tpu7x:2x2x1
jax: 0.10.0
libtpu: 0.0.40
codegen_flags: <defaults>
</compile_context>

<pallas_src>
import functools
import math

import jax
import jax.numpy as jnp
from jax.experimental import pallas as pl
from jax.experimental.pallas import tpu as pltpu


# ----------------------------------------------------------------------------
# Pallas kernel 1: fused matmul + bias + activation
# (used for both im2col convolutions and the hoisted RNN input projection)
# ----------------------------------------------------------------------------
def _matmul_bias_act_kernel(x_ref, w_ref, b_ref, o_ref, *, act):
    y = jnp.dot(x_ref[...], w_ref[...], preferred_element_type=jnp.float32)
    y = y + b_ref[...]
    if act == "relu":
        y = jnp.maximum(y, 0.0)
    o_ref[...] = y.astype(o_ref.dtype)


def matmul_bias_act(x, w, b, act="none", tm=512):
    """y = act(x @ w + b); x:(M,K), w:(K,N), b:(N,) -> (M,N), tiled over M."""
    M, K = x.shape
    K2, N = w.shape
    assert K == K2
    tm = M if M <= tm else tm  # full-M block when small (always layout-legal)
    return pl.pallas_call(
        functools.partial(_matmul_bias_act_kernel, act=act),
        out_shape=jax.ShapeDtypeStruct((M, N), jnp.float32),
        grid=(pl.cdiv(M, tm),),
        in_specs=[
            pl.BlockSpec((tm, K), lambda i: (i, 0)),
            pl.BlockSpec((K, N), lambda i: (0, 0)),
            pl.BlockSpec((1, N), lambda i: (0, 0)),
        ],
        out_specs=pl.BlockSpec((tm, N), lambda i: (i, 0)),
        compiler_params=pltpu.CompilerParams(
            # M tiles are independent -> lets v7x's two TensorCores split them.
            dimension_semantics=("parallel",),
        ),
    )(x, w, b.reshape(1, N))


# ----------------------------------------------------------------------------
# Pallas kernel 2: fused multi-layer RNN (tanh) + relu + fc2 + sigmoid
# ----------------------------------------------------------------------------
def _fused_rnn_fc_kernel(xp_ref, whh_ref, wihu_ref, bu_ref, fcw_ref, fcb_ref,
                         out_ref):
    seq_len, B, H = xp_ref.shape
    num_layers = whh_ref.shape[0]

    # Hoist loop-invariant weight loads and bias broadcasts out of the time loop.
    w_hh0 = whh_ref[0]
    upper = [
        (wihu_ref[l - 1], whh_ref[l], jnp.broadcast_to(bu_ref[l - 1], (B, H)))
        for l in range(1, num_layers)
    ]

    # Hidden states stay in vregs; the intermediate hidden sequence is never
    # materialized in VMEM/HBM.  Layer-0's x_t @ W_ih + b was hoisted into one
    # big matmul (xp_ref), so only h @ W_hh (+ upper-layer projections) remain
    # inside the sequential recurrence.  seq_len is small and static -> unroll.
    h = [jnp.zeros((B, H), jnp.float32) for _ in range(num_layers)]
    for t in range(seq_len):
        h[0] = jnp.tanh(
            xp_ref[t]
            + jnp.dot(h[0], w_hh0, preferred_element_type=jnp.float32))
        h_in = h[0]
        for l, (w_ih, w_hh, b) in enumerate(upper, start=1):
            h[l] = jnp.tanh(
                jnp.dot(h_in, w_ih, preferred_element_type=jnp.float32)
                + jnp.dot(h[l], w_hh, preferred_element_type=jnp.float32)
                + b)
            h_in = h[l]

    # Fused epilogue: relu(hn[-1]) -> fc2 -> sigmoid.  fc2's N is padded to a
    # multiple of 128 so this single store is lane-dense / unmasked.
    h_last = jnp.maximum(h[num_layers - 1], 0.0)
    y = jnp.dot(h_last, fcw_ref[...], preferred_element_type=jnp.float32)
    y = y + fcb_ref[...]
    out_ref[...] = jax.nn.sigmoid(y).astype(out_ref.dtype)


def fused_rnn_fc(xproj_seq, whh_all, wih_up, b_up, fc_w, fc_b):
    """xproj_seq: (T, B, H) layer-0 input projection (bias folded in);
    whh_all: (L, H, H); wih_up: (max(L-1,1), H, H); b_up: (max(L-1,1), 1, H);
    fc_w: (H, Npad); fc_b: (1, Npad)  ->  sigmoid(fc2(relu(hn[-1]))): (B, Npad)."""
    T, B, H = xproj_seq.shape
    Npad = fc_w.shape[1]
    vmem = lambda: pl.BlockSpec(memory_space=pltpu.MemorySpace.VMEM)
    return pl.pallas_call(
        _fused_rnn_fc_kernel,
        out_shape=jax.ShapeDtypeStruct((B, Npad), jnp.float32),
        in_specs=[vmem() for _ in range(6)],
        out_specs=vmem(),
    )(xproj_seq, whh_all, wih_up, b_up, fc_w, fc_b)


# ----------------------------------------------------------------------------
# Glue: NHWC im2col conv, parameter init, forward
# ----------------------------------------------------------------------------
def im2col_3x3_nhwc(x):
    """x: (B, H, W, C) NHWC -> (B*H*W, 9*C) patches for 3x3 / stride 1 / pad 1."""
    B, H, W, C = x.shape
    xp = jnp.pad(x, ((0, 0), (1, 1), (1, 1), (0, 0)))
    cols = [xp[:, dy:dy + H, dx:dx + W, :] for dy in range(3) for dx in range(3)]
    return jnp.concatenate(cols, axis=-1).reshape(B * H * W, 9 * C)


def conv3x3_relu_nhwc(x, weight, bias):
    """x: (B, H, W, Cin); weight: (Cout, Cin, 3, 3) (PyTorch layout) -> (B, H, W, Cout)."""
    B, H, W, Cin = x.shape
    Cout = weight.shape[0]
    cols = im2col_3x3_nhwc(x)                                   # (B*H*W, 9*Cin)
    w2d = weight.transpose(2, 3, 1, 0).reshape(9 * Cin, Cout)   # rows = (ky, kx, cin)
    y = matmul_bias_act(cols, w2d, bias, act="relu")            # (B*H*W, Cout)
    return y.reshape(B, H, W, Cout)


def init_params(key, input_channels, hidden_size, num_layers, rnn_input_size,
                out_features):
    keys = jax.random.split(key, 4 + 3 * num_layers + 2)

    def uni(k, shape, fan_in):
        bound = 1.0 / math.sqrt(fan_in)
        return jax.random.uniform(k, shape, jnp.float32, -bound, bound)

    p = {}
    p["conv1_w"] = uni(keys[0], (16, input_channels, 3, 3), input_channels * 9)
    p["conv1_b"] = uni(keys[1], (16,), input_channels * 9)
    p["conv2_w"] = uni(keys[2], (32, 16, 3, 3), 16 * 9)
    p["conv2_b"] = uni(keys[3], (32,), 16 * 9)

    ki = 4
    d = rnn_input_size
    for layer in range(num_layers):
        # Stored transposed vs PyTorch: (D, H) / (H, H).  NOTE: the bias is the
        # folded sum b_ih + b_hh; pass that sum if loading pretrained weights.
        p[f"rnn_w_ih_l{layer}"] = uni(keys[ki], (d, hidden_size), hidden_size); ki += 1
        p[f"rnn_w_hh_l{layer}"] = uni(keys[ki], (hidden_size, hidden_size), hidden_size); ki += 1
        p[f"rnn_b_l{layer}"] = uni(keys[ki], (hidden_size,), hidden_size); ki += 1
        d = hidden_size

    p["fc2_w"] = uni(keys[ki], (hidden_size, out_features), hidden_size); ki += 1
    p["fc2_b"] = uni(keys[ki], (out_features,), hidden_size)
    return p


def forward(params, x, num_layers):
    # NCHW input (PyTorch convention) -> NHWC once; stay NHWC between convs.
    # TODO(synk): the two convs could be fused into a single Pallas kernel with
    # in-kernel im2col on the VMEM-resident conv1 output.
    x = x.transpose(0, 2, 3, 1)
    x = conv3x3_relu_nhwc(x, params["conv1_w"], params["conv1_b"])
    x = conv3x3_relu_nhwc(x, params["conv2_w"], params["conv2_b"])

    # PyTorch: x.view(B, C, H*W) + batch_first RNN -> sequence axis = channels.
    B, H, W, C = x.shape
    T, D = C, H * W
    x_seq = x.reshape(B, D, C).transpose(2, 0, 1)               # (T, B, D)

    # Hoisted layer-0 input projection: one (T*B, D) x (D, H) MXU matmul with
    # the folded bias b_ih0 + b_hh0, instead of one matmul per timestep.
    Hd = params["rnn_w_hh_l0"].shape[0]
    xproj = matmul_bias_act(
        x_seq.reshape(T * B, D), params["rnn_w_ih_l0"], params["rnn_b_l0"])
    xproj = xproj.reshape(T, B, Hd)

    # Stacked recurrent / upper-layer weights for the fused RNN kernel.
    whh_all = jnp.stack([params[f"rnn_w_hh_l{l}"] for l in range(num_layers)])
    if num_layers > 1:
        wih_up = jnp.stack([params[f"rnn_w_ih_l{l}"] for l in range(1, num_layers)])
        b_up = jnp.stack([params[f"rnn_b_l{l}"].reshape(1, Hd)
                          for l in range(1, num_layers)])
    else:
        wih_up = jnp.zeros((1, Hd, Hd), jnp.float32)   # dummies, never read
        b_up = jnp.zeros((1, 1, Hd), jnp.float32)

    # fc2 padded to a lane-dense multiple of 128 columns; sliced back after.
    Nout = params["fc2_w"].shape[1]
    Npad = ((Nout + 127) // 128) * 128
    fc_w = jnp.pad(params["fc2_w"], ((0, 0), (0, Npad - Nout)))
    fc_b = jnp.pad(params["fc2_b"], (0, Npad - Nout)).reshape(1, Npad)

    out = fused_rnn_fc(xproj, whh_all, wih_up, b_up, fc_w, fc_b)
    return out[:, :Nout]


if __name__ == "__main__":
    # Small shapes consistent with the module:
    # input (B, Cin, H, W); RNN input_size = H*W, seq_len = 32 (conv2 channels).
    B, Cin, Hh, Ww = 2, 4, 8, 8
    hidden_size, num_layers = 32, 2
    out_features = 500  # fc2 output dim is hardcoded to 500 in the module

    key = jax.random.PRNGKey(0)
    kx, kp = jax.random.split(key)
    x = jax.random.normal(kx, (B, Cin, Hh, Ww), dtype=jnp.float32)
    params = init_params(kp, Cin, hidden_size, num_layers, Hh * Ww, out_features)

    fwd = jax.jit(functools.partial(forward, num_layers=num_layers))
    out = fwd(params, x)
    out = jax.block_until_ready(out)
    assert out.shape == (B, out_features)
    assert bool(jnp.all(jnp.isfinite(out)))
    print("KERNEL_OK")
</pallas_src>

<mosaic_0001>
module attributes {stable_mosaic.version = 11 : i64} {
  func.func @_matmul_bias_act_kernel(%arg0: i32, %arg1: memref<128x36xf32, #tpu.memory_space<vmem>>, %arg2: memref<36x16xf32, #tpu.memory_space<vmem>>, %arg3: memref<1x16xf32, #tpu.memory_space<vmem>>, %arg4: memref<128x16xf32, #tpu.memory_space<vmem>>) attributes {dimension_semantics = [#tpu.dimension_semantics<parallel>], iteration_bounds = array<i64: 1>, scalar_prefetch = 0 : i64, scratch_operands = 0 : i64, tpu.core_type = #tpu.core_type<tc>, window_params = [{transform_indices = @transform_0, window_bounds = array<i64: 128, 36>}, {pipeline_mode = #tpu.pipeline_mode<synchronous>, transform_indices = @transform_1, window_bounds = array<i64: 36, 16>}, {pipeline_mode = #tpu.pipeline_mode<synchronous>, transform_indices = @transform_2, window_bounds = array<i64: 1, 16>}, {transform_indices = @transform_3, window_bounds = array<i64: 128, 16>}]} {
    %c0 = arith.constant 0 : index
    %c0_0 = arith.constant 0 : index
    %0 = vector.load %arg1[%c0, %c0_0] : memref<128x36xf32, #tpu.memory_space<vmem>>, vector<128x36xf32>
    %c0_1 = arith.constant 0 : index
    %c0_2 = arith.constant 0 : index
    %1 = vector.load %arg2[%c0_1, %c0_2] : memref<36x16xf32, #tpu.memory_space<vmem>>, vector<36x16xf32>
    %cst = arith.constant dense<0.000000e+00> : vector<128x16xf32>
    %2 = tpu.matmul %0, %1, %cst {dimension_numbers = #tpu.dot_dimension_numbers<[1], [0], [0], [1], [0, 0, 1, 1], [], []>} : vector<128x36xf32>, vector<36x16xf32>, vector<128x16xf32> -> vector<128x16xf32>
    %c0_3 = arith.constant 0 : index
    %c0_4 = arith.constant 0 : index
    %3 = vector.load %arg3[%c0_3, %c0_4] : memref<1x16xf32, #tpu.memory_space<vmem>>, vector<1x16xf32>
    %4 = vector.broadcast %3 : vector<1x16xf32> to vector<128x16xf32>
    %5 = arith.addf %2, %4 : vector<128x16xf32>
    %cst_5 = arith.constant 0.000000e+00 : f32
    %6 = vector.broadcast %cst_5 : f32 to vector<128x16xf32>
    %7 = arith.maximumf %5, %6 : vector<128x16xf32>
    %c0_6 = arith.constant 0 : index
    %c0_7 = arith.constant 0 : index
    %8 = vector.load %arg4[%c0_6, %c0_7] : memref<128x16xf32, #tpu.memory_space<vmem>>, vector<128x16xf32>
    tpu.vector_store %arg4[%c0_6, %c0_7], %7 {strides = array<i32>} : memref<128x16xf32, #tpu.memory_space<vmem>>, vector<128x16xf32>,
    return
  }
  func.func @transform_0(%arg0: i32) -> (i32, i32) {
    %c0_i32 = arith.constant 0 : i32
    %c0_i32_0 = arith.constant 0 : i32
    return %arg0, %c0_i32 : i32, i32
  }
  func.func @transform_1(%arg0: i32) -> (i32, i32) {
    %c0_i32 = arith.constant 0 : i32
    %c0_i32_0 = arith.constant 0 : i32
    %c0_i32_1 = arith.constant 0 : i32
    return %c0_i32, %c0_i32_0 : i32, i32
  }
  func.func @transform_2(%arg0: i32) -> (i32, i32) {
    %c0_i32 = arith.constant 0 : i32
    %c0_i32_0 = arith.constant 0 : i32
    %c0_i32_1 = arith.constant 0 : i32
    return %c0_i32, %c0_i32_0 : i32, i32
  }
  func.func @transform_3(%arg0: i32) -> (i32, i32) {
    %c0_i32 = arith.constant 0 : i32
    %c0_i32_0 = arith.constant 0 : i32
    return %arg0, %c0_i32 : i32, i32
  }
}

module attributes {stable_mosaic.version = 11 : i64} {
  func.func @_matmul_bias_act_kernel(%arg0: i32, %arg1: memref<128x144xf32, #tpu.memory_space<vmem>>, %arg2: memref<144x32xf32, #tpu.memory_space<vmem>>, %arg3: memref<1x32xf32, #tpu.memory_space<vmem>>, %arg4: memref<128x32xf32, #tpu.memory_space<vmem>>) attributes {dimension_semantics = [#tpu.dimension_semantics<parallel>], iteration_bounds = array<i64: 1>, scalar_prefetch = 0 : i64, scratch_operands = 0 : i64, tpu.core_type = #tpu.core_type<tc>, window_params = [{transform_indices = @transform_0, window_bounds = array<i64: 128, 144>}, {pipeline_mode = #tpu.pipeline_mode<synchronous>, transform_indices = @transform_1, window_bounds = array<i64: 144, 32>}, {pipeline_mode = #tpu.pipeline_mode<synchronous>, transform_indices = @transform_2, window_bounds = array<i64: 1, 32>}, {transform_indices = @transform_3, window_bounds = array<i64: 128, 32>}]} {
    %c0 = arith.constant 0 : index
    %c0_0 = arith.constant 0 : index
    %0 = vector.load %arg1[%c0, %c0_0] : memref<128x144xf32, #tpu.memory_space<vmem>>, vector<128x144xf32>
    %c0_1 = arith.constant 0 : index
    %c0_2 = arith.constant 0 : index
    %1 = vector.load %arg2[%c0_1, %c0_2] : memref<144x32xf32, #tpu.memory_space<vmem>>, vector<144x32xf32>
    %cst = arith.constant dense<0.000000e+00> : vector<128x32xf32>
    %2 = tpu.matmul %0, %1, %cst {dimension_numbers = #tpu.dot_dimension_numbers<[1], [0], [0], [1], [0, 0, 1, 1], [], []>} : vector<128x144xf32>, vector<144x32xf32>, vector<128x32xf32> -> vector<128x32xf32>
    %c0_3 = arith.constant 0 : index
    %c0_4 = arith.constant 0 : index
    %3 = vector.load %arg3[%c0_3, %c0_4] : memref<1x32xf32, #tpu.memory_space<vmem>>, vector<1x32xf32>
    %4 = vector.broadcast %3 : vector<1x32xf32> to vector<128x32xf32>
    %5 = arith.addf %2, %4 : vector<128x32xf32>
    %cst_5 = arith.constant 0.000000e+00 : f32
    %6 = vector.broadcast %cst_5 : f32 to vector<128x32xf32>
    %7 = arith.maximumf %5, %6 : vector<128x32xf32>
    %c0_6 = arith.constant 0 : index
    %c0_7 = arith.constant 0 : index
    %8 = vector.load %arg4[%c0_6, %c0_7] : memref<128x32xf32, #tpu.memory_space<vmem>>, vector<128x32xf32>
    tpu.vector_store %arg4[%c0_6, %c0_7], %7 {strides = array<i32>} : memref<128x32xf32, #tpu.memory_space<vmem>>, vector<128x32xf32>,
    return
  }
  func.func @transform_0(%arg0: i32) -> (i32, i32) {
    %c0_i32 = arith.constant 0 : i32
    %c0_i32_0 = arith.constant 0 : i32
    return %arg0, %c0_i32 : i32, i32
  }
  func.func @transform_1(%arg0: i32) -> (i32, i32) {
    %c0_i32 = arith.constant 0 : i32
    %c0_i32_0 = arith.constant 0 : i32
    %c0_i32_1 = arith.constant 0 : i32
    return %c0_i32, %c0_i32_0 : i32, i32
  }
  func.func @transform_2(%arg0: i32) -> (i32, i32) {
    %c0_i32 = arith.constant 0 : i32
    %c0_i32_0 = arith.constant 0 : i32
    %c0_i32_1 = arith.constant 0 : i32
    return %c0_i32, %c0_i32_0 : i32, i32
  }
  func.func @transform_3(%arg0: i32) -> (i32, i32) {
    %c0_i32 = arith.constant 0 : i32
    %c0_i32_0 = arith.constant 0 : i32
    return %arg0, %c0_i32 : i32, i32
  }
}

module attributes {stable_mosaic.version = 11 : i64} {
  func.func @_matmul_bias_act_kernel(%arg0: i32, %arg1: memref<64x64xf32, #tpu.memory_space<vmem>>, %arg2: memref<64x32xf32, #tpu.memory_space<vmem>>, %arg3: memref<1x32xf32, #tpu.memory_space<vmem>>, %arg4: memref<64x32xf32, #tpu.memory_space<vmem>>) attributes {dimension_semantics = [#tpu.dimension_semantics<parallel>], iteration_bounds = array<i64: 1>, scalar_prefetch = 0 : i64, scratch_operands = 0 : i64, tpu.core_type = #tpu.core_type<tc>, window_params = [{transform_indices = @transform_0, window_bounds = array<i64: 64, 64>}, {pipeline_mode = #tpu.pipeline_mode<synchronous>, transform_indices = @transform_1, window_bounds = array<i64: 64, 32>}, {pipeline_mode = #tpu.pipeline_mode<synchronous>, transform_indices = @transform_2, window_bounds = array<i64: 1, 32>}, {transform_indices = @transform_3, window_bounds = array<i64: 64, 32>}]} {
    %c0 = arith.constant 0 : index
    %c0_0 = arith.constant 0 : index
    %0 = vector.load %arg1[%c0, %c0_0] : memref<64x64xf32, #tpu.memory_space<vmem>>, vector<64x64xf32>
    %c0_1 = arith.constant 0 : index
    %c0_2 = arith.constant 0 : index
    %1 = vector.load %arg2[%c0_1, %c0_2] : memref<64x32xf32, #tpu.memory_space<vmem>>, vector<64x32xf32>
    %cst = arith.constant dense<0.000000e+00> : vector<64x32xf32>
    %2 = tpu.matmul %0, %1, %cst {dimension_numbers = #tpu.dot_dimension_numbers<[1], [0], [0], [1], [0, 0, 1, 1], [], []>} : vector<64x64xf32>, vector<64x32xf32>, vector<64x32xf32> -> vector<64x32xf32>
    %c0_3 = arith.constant 0 : index
    %c0_4 = arith.constant 0 : index
    %3 = vector.load %arg3[%c0_3, %c0_4] : memref<1x32xf32, #tpu.memory_space<vmem>>, vector<1x32xf32>
    %4 = vector.broadcast %3 : vector<1x32xf32> to vector<64x32xf32>
    %5 = arith.addf %2, %4 : vector<64x32xf32>
    %c0_5 = arith.constant 0 : index
    %c0_6 = arith.constant 0 : index
    %6 = vector.load %arg4[%c0_5, %c0_6] : memref<64x32xf32, #tpu.memory_space<vmem>>, vector<64x32xf32>
    tpu.vector_store %arg4[%c0_5, %c0_6], %5 {strides = array<i32>} : memref<64x32xf32, #tpu.memory_space<vmem>>, vector<64x32xf32>,
    return
  }
  func.func @transform_0(%arg0: i32) -> (i32, i32) {
    %c0_i32 = arith.constant 0 : i32
    %c0_i32_0 = arith.constant 0 : i32
    return %arg0, %c0_i32 : i32, i32
  }
  func.func @transform_1(%arg0: i32) -> (i32, i32) {
    %c0_i32 = arith.constant 0 : i32
    %c0_i32_0 = arith.constant 0 : i32
    %c0_i32_1 = arith.constant 0 : i32
    return %c0_i32, %c0_i32_0 : i32, i32
  }
  func.func @transform_2(%arg0: i32) -> (i32, i32) {
    %c0_i32 = arith.constant 0 : i32
    %c0_i32_0 = arith.constant 0 : i32
    %c0_i32_1 = arith.constant 0 : i32
    return %c0_i32, %c0_i32_0 : i32, i32
  }
  func.func @transform_3(%arg0: i32) -> (i32, i32) {
    %c0_i32 = arith.constant 0 : i32
    %c0_i32_0 = arith.constant 0 : i32
    return %arg0, %c0_i32 : i32, i32
  }
}

module attributes {stable_mosaic.version = 11 : i64} {
  func.func @_fused_rnn_fc_kernel(%arg0: memref<32x2x32xf32, #tpu.memory_space<vmem>>, %arg1: memref<2x32x32xf32, #tpu.memory_space<vmem>>, %arg2: memref<1x32x32xf32, #tpu.memory_space<vmem>>, %arg3: memref<1x1x32xf32, #tpu.memory_space<vmem>>, %arg4: memref<32x512xf32, #tpu.memory_space<vmem>>, %arg5: memref<1x512xf32, #tpu.memory_space<vmem>>, %arg6: memref<2x512xf32, #tpu.memory_space<vmem>>) attributes {dimension_semantics = [], scalar_prefetch = 0 : i64, scratch_operands = 0 : i64, tpu.core_type = #tpu.core_type<tc>} {
    %c0 = arith.constant 0 : index
    %c0_0 = arith.constant 0 : index
    %c0_1 = arith.constant 0 : index
    %0 = vector.load %arg1[%c0, %c0_0, %c0_1] : memref<2x32x32xf32, #tpu.memory_space<vmem>>, vector<1x32x32xf32>
    %1 = vector.shape_cast %0 : vector<1x32x32xf32> to vector<32x32xf32>
    %c0_2 = arith.constant 0 : index
    %c0_3 = arith.constant 0 : index
    %c0_4 = arith.constant 0 : index
    %2 = vector.load %arg2[%c0_2, %c0_3, %c0_4] : memref<1x32x32xf32, #tpu.memory_space<vmem>>, vector<1x32x32xf32>
    %3 = vector.shape_cast %2 : vector<1x32x32xf32> to vector<32x32xf32>
    %c1 = arith.constant 1 : index
    %c0_5 = arith.constant 0 : index
    %c0_6 = arith.constant 0 : index
    %4 = vector.load %arg1[%c1, %c0_5, %c0_6] : memref<2x32x32xf32, #tpu.memory_space<vmem>>, vector<1x32x32xf32>
    %5 = vector.shape_cast %4 : vector<1x32x32xf32> to vector<32x32xf32>
    %c0_7 = arith.constant 0 : index
    %c0_8 = arith.constant 0 : index
    %c0_9 = arith.constant 0 : index
    %6 = vector.load %arg3[%c0_7, %c0_8, %c0_9] : memref<1x1x32xf32, #tpu.memory_space<vmem>>, vector<1x1x32xf32>
    %7 = vector.shape_cast %6 : vector<1x1x32xf32> to vector<1x32xf32>
    %8 = vector.shape_cast %7 : vector<1x32xf32> to vector<1x32xf32>
    %9 = vector.broadcast %8 : vector<1x32xf32> to vector<2x32xf32>
    %cst = arith.constant 0.000000e+00 : f32
    %10 = vector.broadcast %cst : f32 to vector<2x32xf32>
    %cst_10 = arith.constant 0.000000e+00 : f32
    %11 = vector.broadcast %cst_10 : f32 to vector<2x32xf32>
    %c0_11 = arith.constant 0 : index
    %c0_12 = arith.constant 0 : index
    %c0_13 = arith.constant 0 : index
    %12 = vector.load %arg0[%c0_11, %c0_12, %c0_13] : memref<32x2x32xf32, #tpu.memory_space<vmem>>, vector<1x2x32xf32>
    %13 = vector.shape_cast %12 : vector<1x2x32xf32> to vector<2x32xf32>
    %cst_14 = arith.constant dense<0.000000e+00> : vector<2x32xf32>
    %14 = tpu.matmul %10, %1, %cst_14 {dimension_numbers = #tpu.dot_dimension_numbers<[1], [0], [0], [1], [0, 0, 1, 1], [], []>} : vector<2x32xf32>, vector<32x32xf32>, vector<2x32xf32> -> vector<2x32xf32>
    %15 = arith.addf %13, %14 : vector<2x32xf32>
    %16 = math.tanh %15 : vector<2x32xf32>
    %cst_15 = arith.constant dense<0.000000e+00> : vector<2x32xf32>
    %17 = tpu.matmul %16, %3, %cst_15 {dimension_numbers = #tpu.dot_dimension_numbers<[1], [0], [0], [1], [0, 0, 1, 1], [], []>} : vector<2x32xf32>, vector<32x32xf32>, vector<2x32xf32> -> vector<2x32xf32>
    %cst_16 = arith.constant dense<0.000000e+00> : vector<2x32xf32>
    %18 = tpu.matmul %11, %5, %cst_16 {dimension_numbers = #tpu.dot_dimension_numbers<[1], [0], [0], [1], [0, 0, 1, 1], [], []>} : vector<2x32xf32>, vector<32x32xf32>, vector<2x32xf32> -> vector<2x32xf32>
    %19 = arith.addf %17, %18 : vector<2x32xf32>
    %20 = arith.addf %19, %9 : vector<2x32xf32>
    %21 = math.tanh %20 : vector<2x32xf32>
    %c1_17 = arith.constant 1 : index
    %c0_18 = arith.constant 0 : index
    %c0_19 = arith.constant 0 : index
    %22 = vector.load %arg0[%c1_17, %c0_18, %c0_19] : memref<32x2x32xf32, #tpu.memory_space<vmem>>, vector<1x2x32xf32>
    %23 = vector.shape_cast %22 : vector<1x2x32xf32> to vector<2x32xf32>
    %cst_20 = arith.constant dense<0.000000e+00> : vector<2x32xf32>
    %24 = tpu.matmul %16, %1, %cst_20 {dimension_numbers = #tpu.dot_dimension_numbers<[1], [0], [0], [1], [0, 0, 1, 1], [], []>} : vector<2x32xf32>, vector<32x32xf32>, vector<2x32xf32> -> vector<2x32xf32>
    %25 = arith.addf %23, %24 : vector<2x32xf32>
    %26 = math.tanh %25 : vector<2x32xf32>
    %cst_21 = arith.constant dense<0.000000e+00> : vector<2x32xf32>
    %27 = tpu.matmul %26, %3, %cst_21 {dimension_numbers = #tpu.dot_dimension_numbers<[1], [0], [0], [1], [0, 0, 1, 1], [], []>} : vector<2x32xf32>, vector<32x32xf32>, vector<2x32xf32> -> vector<2x32xf32>
    %cst_22 = arith.constant dense<0.000000e+00> : vector<2x32xf32>
    %28 = tpu.matmul %21, %5, %cst_22 {dimension_numbers = #tpu.dot_dimension_numbers<[1], [0], [0], [1], [0, 0, 1, 1], [], []>} : vector<2x32xf32>, vector<32x32xf32>, vector<2x32xf32> -> vector<2x32xf32>
    %29 = arith.addf %27, %28 : vector<2x32xf32>
    %30 = arith.addf %29, %9 : vector<2x32xf32>
    %31 = math.tanh %30 : vector<2x32xf32>
    %c2 = arith.constant 2 : index
    %c0_23 = arith.constant 0 : index
    %c0_24 = arith.constant 0 : index
    %32 = vector.load %arg0[%c2, %c0_23, %c0_24] : memref<32x2x32xf32, #tpu.memory_space<vmem>>, vector<1x2x32xf32>
    %33 = vector.shape_cast %32 : vector<1x2x32xf32> to vector<2x32xf32>
    %cst_25 = arith.constant dense<0.000000e+00> : vector<2x32xf32>
    %34 = tpu.matmul %26, %1, %cst_25 {dimension_numbers = #tpu.dot_dimension_numbers<[1], [0], [0], [1], [0, 0, 1, 1], [], []>} : vector<2x32xf32>, vector<32x32xf32>, vector<2x32xf32> -> vector<2x32xf32>
    %35 = arith.addf %33, %34 : vector<2x32xf32>
    %36 = math.tanh %35 : vector<2x32xf32>
    %cst_26 = arith.constant dense<0.000000e+00> : vector<2x32xf32>
    %37 = tpu.matmul %36, %3, %cst_26 {dimension_numbers = #tpu.dot_dimension_numbers<[1], [0], [0], [1], [0, 0, 1, 1], [], []>} : vector<2x32xf32>, vector<32x32xf32>, vector<2x32xf32> -> vector<2x32xf32>
    %cst_27 = arith.constant dense<0.000000e+00> : vector<2x32xf32>
    %38 = tpu.matmul %31, %5, %cst_27 {dimension_numbers = #tpu.dot_dimension_numbers<[1], [0], [0], [1], [0, 0, 1, 1], [], []>} : vector<2x32xf32>, vector<32x32xf32>, vector<2x32xf32> -> vector<2x32xf32>
    %39 = arith.addf %37, %38 : vector<2x32xf32>
    %40 = arith.addf %39, %9 : vector<2x32xf32>
    %41 = math.tanh %40 : vector<2x32xf32>
    %c3 = arith.constant 3 : index
    %c0_28 = arith.constant 0 : index
    %c0_29 = arith.constant 0 : index
    %42 = vector.load %arg0[%c3, %c0_28, %c0_29] : memref<32x2x32xf32, #tpu.memory_space<vmem>>, vector<1x2x32xf32>
    %43 = vector.shape_cast %42 : vector<1x2x32xf32> to vector<2x32xf32>
    %cst_30 = arith.constant dense<0.000000e+00> : vector<2x32xf32>
    %44 = tpu.matmul %36, %1, %cst_30 {dimension_numbers = #tpu.dot_dimension_numbers<[1], [0], [0], [1], [0, 0, 1, 1], [], []>} : vector<2x32xf32>, vector<32x32xf32>, vector<2x32xf32> -> vector<2x32xf32>
    %45 = arith.addf %43, %44 : vector<2x32xf32>
    %46 = math.tanh %45 : vector<2x32xf32>
    %cst_31 = arith.constant dense<0.000000e+00> : vector<2x32xf32>
    %47 = tpu.matmul %46, %3, %cst_31 {dimension_numbers = #tpu.dot_dimension_numbers<[1], [0], [0], [1], [0, 0, 1, 1], [], []>} : vector<2x32xf32>, vector<32x32xf32>, vector<2x32xf32> -> vector<2x32xf32>
    %cst_32 = arith.constant dense<0.000000e+00> : vector<2x32xf32>
    %48 = tpu.matmul %41, %5, %cst_32 {dimension_numbers = #tpu.dot_dimension_numbers<[1], [0], [0], [1], [0, 0, 1, 1], [], []>} : vector<2x32xf32>, vector<32x32xf32>, vector<2x32xf32> -> vector<2x32xf32>
    %49 = arith.addf %47, %48 : vector<2x32xf32>
    %50 = arith.addf %49, %9 : vector<2x32xf32>
    %51 = math.tanh %50 : vector<2x32xf32>
    %c4 = arith.constant 4 : index
    %c0_33 = arith.constant 0 : index
    %c0_34 = arith.constant 0 : index
    %52 = vector.load %arg0[%c4, %c0_33, %c0_34] : memref<32x2x32xf32, #tpu.memory_space<vmem>>, vector<1x2x32xf32>
    %53 = vector.shape_cast %52 : vector<1x2x32xf32> to vector<2x32xf32>
    %cst_35 = arith.constant dense<0.000000e+00> : vector<2x32xf32>
    %54 = tpu.matmul %46, %1, %cst_35 {dimension_numbers = #tpu.dot_dimension_numbers<[1], [0], [0], [1], [0, 0, 1, 1], [], []>} : vector<2x32xf32>, vector<32x32xf32>, vector<2x32xf32> -> vector<2x32xf32>
    %55 = arith.addf %53, %54 : vector<2x32xf32>
    %56 = math.tanh %55 : vector<2x32xf32>
    %cst_36 = arith.constant dense<0.000000e+00> : vector<2x32xf32>
    %57 = tpu.matmul %56, %3, %cst_36 {dimension_numbers = #tpu.dot_dimension_numbers<[1], [0], [0], [1], [0, 0, 1, 1], [], []>} : vector<2x32xf32>, vector<32x32xf32>, vector<2x32xf32> -> vector<2x32xf32>
    %cst_37 = arith.constant dense<0.000000e+00> : vector<2x32xf32>
    %58 = tpu.matmul %51, %5, %cst_37 {dimension_numbers = #tpu.dot_dimension_numbers<[1], [0], [0], [1], [0, 0, 1, 1], [], []>} : vector<2x32xf32>, vector<32x32xf32>, vector<2x32xf32> -> vector<2x32xf32>
    %59 = arith.addf %57, %58 : vector<2x32xf32>
    %60 = arith.addf %59, %9 : vector<2x32xf32>
    %61 = math.tanh %60 : vector<2x32xf32>
    %c5 = arith.constant 5 : index
    %c0_38 = arith.constant 0 : index
    %c0_39 = arith.constant 0 : index
    %62 = vector.load %arg0[%c5, %c0_38, %c0_39] : memref<32x2x32xf32, #tpu.memory_space<vmem>>, vector<1x2x32xf32>
    %63 = vector.shape_cast %62 : vector<1x2x32xf32> to vector<2x32xf32>
    %cst_40 = arith.constant dense<0.000000e+00> : vector<2x32xf32>
    %64 = tpu.matmul %56, %1, %cst_40 {dimension_numbers = #tpu.dot_dimension_numbers<[1], [0], [0], [1], [0, 0, 1, 1], [], []>} : vector<2x32xf32>, vector<32x32xf32>, vector<2x32xf32> -> vector<2x32xf32>
    %65 = arith.addf %63, %64 : vector<2x32xf32>
    %66 = math.tanh %65 : vector<2x32xf32>
    %cst_41 = arith.constant dense<0.000000e+00> : vector<2x32xf32>
    %67 = tpu.matmul %66, %3, %cst_41 {dimension_numbers = #tpu.dot_dimension_numbers<[1], [0], [0], [1], [0, 0, 1, 1], [], []>} : vector<2x32xf32>, vector<32x32xf32>, vector<2x32xf32> -> vector<2x32xf32>
    %cst_42 = arith.constant dense<0.000000e+00> : vector<2x32xf32>
    %68 = tpu.matmul %61, %5, %cst_42 {dimension_numbers = #tpu.dot_dimension_numbers<[1], [0], [0], [1], [0, 0, 1, 1], [], []>} : vector<2x32xf32>, vector<32x32xf32>, vector<2x32xf32> -> vector<2x32xf32>
    %69 = arith.addf %67, %68 : vector<2x32xf32>
    %70 = arith.addf %69, %9 : vector<2x32xf32>
    %71 = math.tanh %70 : vector<2x32xf32>
    %c6 = arith.constant 6 : index
    %c0_43 = arith.constant 0 : index
    %c0_44 = arith.constant 0 : index
    %72 = vector.load %arg0[%c6, %c0_43, %c0_44] : memref<32x2x32xf32, #tpu.memory_space<vmem>>, vector<1x2x32xf32>
    %73 = vector.shape_cast %72 : vector<1x2x32xf32> to vector<2x32xf32>
    %cst_45 = arith.constant dense<0.000000e+00> : vector<2x32xf32>
    %74 = tpu.matmul %66, %1, %cst_45 {dimension_numbers = #tpu.dot_dimension_numbers<[1], [0], [0], [1], [0, 0, 1, 1], [], []>} : vector<2x32xf32>, vector<32x32xf32>, vector<2x32xf32> -> vector<2x32xf32>
    %75 = arith.addf %73, %74 : vector<2x32xf32>
    %76 = math.tanh %75 : vector<2x32xf32>
    %cst_46 = arith.constant dense<0.000000e+00> : vector<2x32xf32>
    %77 = tpu.matmul %76, %3, %cst_46 {dimension_numbers = #tpu.dot_dimension_numbers<[1], [0], [0], [1], [0, 0, 1, 1], [], []>} : vector<2x32xf32>, vector<32x32xf32>, vector<2x32xf32> -> vector<2x32xf32>
    %cst_47 = arith.constant dense<0.000000e+00> : vector<2x32xf32>
    %78 = tpu.matmul %71, %5, %cst_47 {dimension_numbers = #tpu.dot_dimension_numbers<[1], [0], [0], [1], [0, 0, 1, 1], [], []>} : vector<2x32xf32>, vector<32x32xf32>, vector<2x32xf32> -> vector<2x32xf32>
    %79 = arith.addf %77, %78 : vector<2x32xf32>
    %80 = arith.addf %79, %9 : vector<2x32xf32>
    %81 = math.tanh %80 : vector<2x32xf32>
    %c7 = arith.constant 7 : index
    %c0_48 = arith.constant 0 : index
    %c0_49 = arith.constant 0 : index
    %82 = vector.load %arg0[%c7, %c0_48, %c0_49] : memref<32x2x32xf32, #tpu.memory_space<vmem>>, vector<1x2x32xf32>
    %83 = vector.shape_cast %82 : vector<1x2x32xf32> to vector<2x32xf32>
    %cst_50 = arith.constant dense<0.000000e+00> : vector<2x32xf32>
    %84 = tpu.matmul %76, %1, %cst_50 {dimension_numbers = #tpu.dot_dimension_numbers<[1], [0], [0], [1], [0, 0, 1, 1], [], []>} : vector<2x32xf32>, vector<32x32xf32>, vector<2x32xf32> -> vector<2x32xf32>
    %85 = arith.addf %83, %84 : vector<2x32xf32>
    %86 = math.tanh %85 : vector<2x32xf32>
    %cst_51 = arith.constant dense<0.000000e+00> : vector<2x32xf32>
    %87 = tpu.matmul %86, %3, %cst_51 {dimension_numbers = #tpu.dot_dimension_numbers<[1], [0], [0], [1], [0, 0, 1, 1], [], []>} : vector<2x32xf32>, vector<32x32xf32>, vector<2x32xf32> -> vector<2x32xf32>
    %cst_52 = arith.constant dense<0.000000e+00> : vector<2x32xf32>
    %88 = tpu.matmul %81, %5, %cst_52 {dimension_numbers = #tpu.dot_dimension_numbers<[1], [0], [0], [1], [0, 0, 1, 1], [], []>} : vector<2x32xf32>, vector<32x32xf32>, vector<2x32xf32> -> vector<2x32xf32>
    %89 = arith.addf %87, %88 : vector<2x32xf32>
    %90 = arith.addf %89, %9 : vector<2x32xf32>
    %91 = math.tanh %90 : vector<2x32xf32>
    %c8 = arith.constant 8 : index
    %c0_53 = arith.constant 0 : index
    %c0_54 = arith.constant 0 : index
    %92 = vector.load %arg0[%c8, %c0_53, %c0_54] : memref<32x2x32xf32, #tpu.memory_space<vmem>>, vector<1x2x32xf32>
    %93 = vector.shape_cast %92 : vector<1x2x32xf32> to vector<2x32xf32>
    %cst_55 = arith.constant dense<0.000000e+00> : vector<2x32xf32>
    %94 = tpu.matmul %86, %1, %cst_55 {dimension_numbers = #tpu.dot_dimension_numbers<[1], [0], [0], [1], [0, 0, 1, 1], [], []>} : vector<2x32xf32>, vector<32x32xf32>, vector<2x32xf32> -> vector<2x32xf32>
    %95 = arith.addf %93, %94 : vector<2x32xf32>
    %96 = math.tanh %95 : vector<2x32xf32>
    %cst_56 = arith.constant dense<0.000000e+00> : vector<2x32xf32>
    %97 = tpu.matmul %96, %3, %cst_56 {dimension_numbers = #tpu.dot_dimension_numbers<[1], [0], [0], [1], [0, 0, 1, 1], [], []>} : vector<2x32xf32>, vector<32x32xf32>, vector<2x32xf32> -> vector<2x32xf32>
    %cst_57 = arith.constant dense<0.000000e+00> : vector<2x32xf32>
    %98 = tpu.matmul %91, %5, %cst_57 {dimension_numbers = #tpu.dot_dimension_numbers<[1], [0], [0], [1], [0, 0, 1, 1], [], []>} : vector<2x32xf32>, vector<32x32xf32>, vector<2x32xf32> -> vector<2x32xf32>
    %99 = arith.addf %97, %98 : vector<2x32xf32>
    %100 = arith.addf %99, %9 : vector<2x32xf32>
    %101 = math.tanh %100 : vector<2x32xf32>
    %c9 = arith.constant 9 : index
    %c0_58 = arith.constant 0 : index
    %c0_59 = arith.constant 0 : index
    %102 = vector.load %arg0[%c9, %c0_58, %c0_59] : memref<32x2x32xf32, #tpu.memory_space<vmem>>, vector<1x2x32xf32>
    %103 = vector.shape_cast %102 : vector<1x2x32xf32> to vector<2x32xf32>
    %cst_60 = arith.constant dense<0.000000e+00> : vector<2x32xf32>
    %104 = tpu.matmul %96, %1, %cst_60 {dimension_numbers = #tpu.dot_dimension_numbers<[1], [0], [0], [1], [0, 0, 1, 1], [], []>} : vector<2x32xf32>, vector<32x32xf32>, vector<2x32xf32> -> vector<2x32xf32>
    %105 = arith.addf %103, %104 : vector<2x32xf32>
    %106 = math.tanh %105 : vector<2x32xf32>
    %cst_61 = arith.constant dense<0.000000e+00> : vector<2x32xf32>
    %107 = tpu.matmul %106, %3, %cst_61 {dimension_numbers = #tpu.dot_dimension_numbers<[1], [0], [0], [1], [0, 0, 1, 1], [], []>} : vector<2x32xf32>, vector<32x32xf32>, vector<2x32xf32> -> vector<2x32xf32>
    %cst_62 = arith.constant dense<0.000000e+00> : vector<2x32xf32>
    %108 = tpu.matmul %101, %5, %cst_62 {dimension_numbers = #tpu.dot_dimension_numbers<[1], [0], [0], [1], [0, 0, 1, 1], [], []>} : vector<2x32xf32>, vector<32x32xf32>, vector<2x32xf32> -> vector<2x32xf32>
    %109 = arith.addf %107, %108 : vector<2x32xf32>
    %110 = arith.addf %109, %9 : vector<2x32xf32>
    %111 = math.tanh %110 : vector<2x32xf32>
    %c10 = arith.constant 10 : index
    %c0_63 = arith.constant 0 : index
    %c0_64 = arith.constant 0 : index
    %112 = vector.load %arg0[%c10, %c0_63, %c0_64] : memref<32x2x32xf32, #tpu.memory_space<vmem>>, vector<1x2x32xf32>
    %113 = vector.shape_cast %112 : vector<1x2x32xf32> to vector<2x32xf32>
    %cst_65 = arith.constant dense<0.000000e+00> : vector<2x32xf32>
    %114 = tpu.matmul %106, %1, %cst_65 {dimension_numbers = #tpu.dot_dimension_numbers<[1], [0], [0], [1], [0, 0, 1, 1], [], []>} : vector<2x32xf32>, vector<32x32xf32>, vector<2x32xf32> -> vector<2x32xf32>
    %115 = arith.addf %113, %114 : vector<2x32xf32>
    %116 = math.tanh %115 : vector<2x32xf32>
    %cst_66 = arith.constant dense<0.000000e+00> : vector<2x32xf32>
    %117 = tpu.matmul %116, %3, %cst_66 {dimension_numbers = #tpu.dot_dimension_numbers<[1], [0], [0], [1], [0, 0, 1, 1], [], []>} : vector<2x32xf32>, vector<32x32xf32>, vector<2x32xf32> -> vector<2x32xf32>
    %cst_67 = arith.constant dense<0.000000e+00> : vector<2x32xf32>
    %118 = tpu.matmul %111, %5, %cst_67 {dimension_numbers = #tpu.dot_dimension_numbers<[1], [0], [0], [1], [0, 0, 1, 1], [], []>} : vector<2x32xf32>, vector<32x32xf32>, vector<2x32xf32> -> vector<2x32xf32>
    %119 = arith.addf %117, %118 : vector<2x32xf32>
    %120 = arith.addf %119, %9 : vector<2x32xf32>
    %121 = math.tanh %120 : vector<2x32xf32>
    %c11 = arith.constant 11 : index
    %c0_68 = arith.constant 0 : index
    %c0_69 = arith.constant 0 : index
    %122 = vector.load %arg0[%c11, %c0_68, %c0_69] : memref<32x2x32xf32, #tpu.memory_space<vmem>>, vector<1x2x32xf32>
    %123 = vector.shape_cast %122 : vector<1x2x32xf32> to vector<2x32xf32>
    %cst_70 = arith.constant dense<0.000000e+00> : vector<2x32xf32>
    %124 = tpu.matmul %116, %1, %cst_70 {dimension_numbers = #tpu.dot_dimension_numbers<[1], [0], [0], [1], [0, 0, 1, 1], [], []>} : vector<2x32xf32>, vector<32x32xf32>, vector<2x32xf32> -> vector<2x32xf32>
    %125 = arith.addf %123, %124 : vector<2x32xf32>
    %126 = math.tanh %125 : vector<2x32xf32>
    %cst_71 = arith.constant dense<0.000000e+00> : vector<2x32xf32>
    %127 = tpu.matmul %126, %3, %cst_71 {dimension_numbers = #tpu.dot_dimension_numbers<[1], [0], [0], [1], [0, 0, 1, 1], [], []>} : vector<2x32xf32>, vector<32x32xf32>, vector<2x32xf32> -> vector<2x32xf32>
    %cst_72 = arith.constant dense<0.000000e+00> : vector<2x32xf32>
    %128 = tpu.matmul %121, %5, %cst_72 {dimension_numbers = #tpu.dot_dimension_numbers<[1], [0], [0], [1], [0, 0, 1, 1], [], []>} : vector<2x32xf32>, vector<32x32xf32>, vector<2x32xf32> -> vector<2x32xf32>
    %129 = arith.addf %127, %128 : vector<2x32xf32>
    %130 = arith.addf %129, %9 : vector<2x32xf32>
    %131 = math.tanh %130 : vector<2x32xf32>
    %c12 = arith.constant 12 : index
    %c0_73 = arith.constant 0 : index
    %c0_74 = arith.constant 0 : index
    %132 = vector.load %arg0[%c12, %c0_73, %c0_74] : memref<32x2x32xf32, #tpu.memory_space<vmem>>, vector<1x2x32xf32>
    %133 = vector.shape_cast %132 : vector<1x2x32xf32> to vector<2x32xf32>
    %cst_75 = arith.constant dense<0.000000e+00> : vector<2x32xf32>
    %134 = tpu.matmul %126, %1, %cst_75 {dimension_numbers = #tpu.dot_dimension_numbers<[1], [0], [0], [1], [0, 0, 1, 1], [], []>} : vector<2x32xf32>, vector<32x32xf32>, vector<2x32xf32> -> vector<2x32xf32>
    %135 = arith.addf %133, %134 : vector<2x32xf32>
    %136 = math.tanh %135 : vector<2x32xf32>
    %cst_76 = arith.constant dense<0.000000e+00> : vector<2x32xf32>
    %137 = tpu.matmul %136, %3, %cst_76 {dimension_numbers = #tpu.dot_dimension_numbers<[1], [0], [0], [1], [0, 0, 1, 1], [], []>} : vector<2x32xf32>, vector<32x32xf32>, vector<2x32xf32> -> vector<2x32xf32>
    %cst_77 = arith.constant dense<0.000000e+00> : vector<2x32xf32>
    %138 = tpu.matmul %131, %5, %cst_77 {dimension_numbers = #tpu.dot_dimension_numbers<[1], [0], [0], [1], [0, 0, 1, 1], [], []>} : vector<2x32xf32>, vector<32x32xf32>, vector<2x32xf32> -> vector<2x32xf32>
    %139 = arith.addf %137, %138 : vector<2x32xf32>
    %140 = arith.addf %139, %9 : vector<2x32xf32>
    %141 = math.tanh %140 : vector<2x32xf32>
    %c13 = arith.constant 13 : index
    %c0_78 = arith.constant 0 : index
    %c0_79 = arith.constant 0 : index
    %142 = vector.load %arg0[%c13, %c0_78, %c0_79] : memref<32x2x32xf32, #tpu.memory_space<vmem>>, vector<1x2x32xf32>
    %143 = vector.shape_cast %142 : vector<1x2x32xf32> to vector<2x32xf32>
    %cst_80 = arith.constant dense<0.000000e+00> : vector<2x32xf32>
    %144 = tpu.matmul %136, %1, %cst_80 {dimension_numbers = #tpu.dot_dimension_numbers<[1], [0], [0], [1], [0, 0, 1, 1], [], []>} : vector<2x32xf32>, vector<32x32xf32>, vector<2x32xf32> -> vector<2x32xf32>
    %145 = arith.addf %143, %144 : vector<2x32xf32>
    %146 = math.tanh %145 : vector<2x32xf32>
    %cst_81 = arith.constant dense<0.000000e+00> : vector<2x32xf32>
    %147 = tpu.matmul %146, %3, %cst_81 {dimension_numbers = #tpu.dot_dimension_numbers<[1], [0], [0], [1], [0, 0, 1, 1], [], []>} : vector<2x32xf32>, vector<32x32xf32>, vector<2x32xf32> -> vector<2x32xf32>
    %cst_82 = arith.constant dense<0.000000e+00> : vector<2x32xf32>
    %148 = tpu.matmul %141, %5, %cst_82 {dimension_numbers = #tpu.dot_dimension_numbers<[1], [0], [0], [1], [0, 0, 1, 1], [], []>} : vector<2x32xf32>, vector<32x32xf32>, vector<2x32xf32> -> vector<2x32xf32>
    %149 = arith.addf %147, %148 : vector<2x32xf32>
    %150 = arith.addf %149, %9 : vector<2x32xf32>
    %151 = math.tanh %150 : vector<2x32xf32>
    %c14 = arith.constant 14 : index
    %c0_83 = arith.constant 0 : index
    %c0_84 = arith.constant 0 : index
    %152 = vector.load %arg0[%c14, %c0_83, %c0_84] : memref<32x2x32xf32, #tpu.memory_space<vmem>>, vector<1x2x32xf32>
    %153 = vector.shape_cast %152 : vector<1x2x32xf32> to vector<2x32xf32>
    %cst_85 = arith.constant dense<0.000000e+00> : vector<2x32xf32>
    %154 = tpu.matmul %146, %1, %cst_85 {dimension_numbers = #tpu.dot_dimension_numbers<[1], [0], [0], [1], [0, 0, 1, 1], [], []>} : vector<2x32xf32>, vector<32x32xf32>, vector<2x32xf32> -> vector<2x32xf32>
    %155 = arith.addf %153, %154 : vector<2x32xf32>
    %156 = math.tanh %155 : vector<2x32xf32>
    %cst_86 = arith.constant dense<0.000000e+00> : vector<2x32xf32>
    %157 = tpu.matmul %156, %3, %cst_86 {dimension_numbers = #tpu.dot_dimension_numbers<[1], [0], [0], [1], [0, 0, 1, 1], [], []>} : vector<2x32xf32>, vector<32x32xf32>, vector<2x32xf32> -> vector<2x32xf32>
    %cst_87 = arith.constant dense<0.000000e+00> : vector<2x32xf32>
    %158 = tpu.matmul %151, %5, %cst_87 {dimension_numbers = #tpu.dot_dimension_numbers<[1], [0], [0], [1], [0, 0, 1, 1], [], []>} : vector<2x32xf32>, vector<32x32xf32>, vector<2x32xf32> -> vector<2x32xf32>
    %159 = arith.addf %157, %158 : vector<2x32xf32>
    %160 = arith.addf %159, %9 : vector<2x32xf32>
    %161 = math.tanh %160 : vector<2x32xf32>
    %c15 = arith.constant 15 : index
    %c0_88 = arith.constant 0 : index
    %c0_89 = arith.constant 0 : index
    %162 = vector.load %arg0[%c15, %c0_88, %c0_89] : memref<32x2x32xf32, #tpu.memory_space<vmem>>, vector<1x2x32xf32>
    %163 = vector.shape_cast %162 : vector<1x2x32xf32> to vector<2x32xf32>
    %cst_90 = arith.constant dense<0.000000e+00> : vector<2x32xf32>
    %164 = tpu.matmul %156, %1, %cst_90 {dimension_numbers = #tpu.dot_dimension_numbers<[1], [0], [0], [1], [0, 0, 1, 1], [], []>} : vector<2x32xf32>, vector<32x32xf32>, vector<2x32xf32> -> vector<2x32xf32>
    %165 = arith.addf %163, %164 : vector<2x32xf32>
    %166 = math.tanh %165 : vector<2x32xf32>
    %cst_91 = arith.constant dense<0.000000e+00> : vector<2x32xf32>
    %167 = tpu.matmul %166, %3, %cst_91 {dimension_numbers = #tpu.dot_dimension_numbers<[1], [0], [0], [1], [0, 0, 1, 1], [], []>} : vector<2x32xf32>, vector<32x32xf32>, vector<2x32xf32> -> vector<2x32xf32>
    %cst_92 = arith.constant dense<0.000000e+00> : vector<2x32xf32>
    %168 = tpu.matmul %161, %5, %cst_92 {dimension_numbers = #tpu.dot_dimension_numbers<[1], [0], [0], [1], [0, 0, 1, 1], [], []>} : vector<2x32xf32>, vector<32x32xf32>, vector<2x32xf32> -> vector<2x32xf32>
    %169 = arith.addf %167, %168 : vector<2x32xf32>
    %170 = arith.addf %169, %9 : vector<2x32xf32>
    %171 = math.tanh %170 : vector<2x32xf32>
    %c16 = arith.constant 16 : index
    %c0_93 = arith.constant 0 : index
    %c0_94 = arith.constant 0 : index
    %172 = vector.load %arg0[%c16, %c0_93, %c0_94] : memref<32x2x32xf32, #tpu.memory_space<vmem>>, vector<1x2x32xf32>
    %173 = vector.shape_cast %172 : vector<1x2x32xf32> to vector<2x32xf32>
    %cst_95 = arith.constant dense<0.000000e+00> : vector<2x32xf32>
    %174 = tpu.matmul %166, %1, %cst_95 {dimension_numbers = #tpu.dot_dimension_numbers<[1], [0], [0], [1], [0, 0, 1, 1], [], []>} : vector<2x32xf32>, vector<32x32xf32>, vector<2x32xf32> -> vector<2x32xf32>
    %175 = arith.addf %173, %174 : vector<2x32xf32>
    %176 = math.tanh %175 : vector<2x32xf32>
    %cst_96 = arith.constant dense<0.000000e+00> : vector<2x32xf32>
    %177 = tpu.matmul %176, %3, %cst_96 {dimension_numbers = #tpu.dot_dimension_numbers<[1], [0], [0], [1], [0, 0, 1, 1], [], []>} : vector<2x32xf32>, vector<32x32xf32>, vector<2x32xf32> -> vector<2x32xf32>
    %cst_97 = arith.constant dense<0.000000e+00> : vector<2x32xf32>
    %178 = tpu.matmul %171, %5, %cst_97 {dimension_numbers = #tpu.dot_dimension_numbers<[1], [0], [0], [1], [0, 0, 1, 1], [], []>} : vector<2x32xf32>, vector<32x32xf32>, vector<2x32xf32> -> vector<2x32xf32>
    %179 = arith.addf %177, %178 : vector<2x32xf32>
    %180 = arith.addf %179, %9 : vector<2x32xf32>
    %181 = math.tanh %180 : vector<2x32xf32>
    %c17 = arith.constant 17 : index
    %c0_98 = arith.constant 0 : index
    %c0_99 = arith.constant 0 : index
    %182 = vector.load %arg0[%c17, %c0_98, %c0_99] : memref<32x2x32xf32, #tpu.memory_space<vmem>>, vector<1x2x32xf32>
    %183 = vector.shape_cast %182 : vector<1x2x32xf32> to vector<2x32xf32>
    %cst_100 = arith.constant dense<0.000000e+00> : vector<2x32xf32>
    %184 = tpu.matmul %176, %1, %cst_100 {dimension_numbers = #tpu.dot_dimension_numbers<[1], [0], [0], [1], [0, 0, 1, 1], [], []>} : vector<2x32xf32>, vector<32x32xf32>, vector<2x32xf32> -> vector<2x32xf32>
    %185 = arith.addf %183, %184 : vector<2x32xf32>
    %186 = math.tanh %185 : vector<2x32xf32>
    %cst_101 = arith.constant dense<0.000000e+00> : vector<2x32xf32>
    %187 = tpu.matmul %186, %3, %cst_101 {dimension_numbers = #tpu.dot_dimension_numbers<[1], [0], [0], [1], [0, 0, 1, 1], [], []>} : vector<2x32xf32>, vector<32x32xf32>, vector<2x32xf32> -> vector<2x32xf32>
    %cst_102 = arith.constant dense<0.000000e+00> : vector<2x32xf32>
    %188 = tpu.matmul %181, %5, %cst_102 {dimension_numbers = #tpu.dot_dimension_numbers<[1], [0], [0], [1], [0, 0, 1, 1], [], []>} : vector<2x32xf32>, vector<32x32xf32>, vector<2x32xf32> -> vector<2x32xf32>
    %189 = arith.addf %187, %188 : vector<2x32xf32>
    %190 = arith.addf %189, %9 : vector<2x32xf32>
    %191 = math.tanh %190 : vector<2x32xf32>
    %c18 = arith.constant 18 : index
    %c0_103 = arith.constant 0 : index
    %c0_104 = arith.constant 0 : index
    %192 = vector.load %arg0[%c18, %c0_103, %c0_104] : memref<32x2x32xf32, #tpu.memory_space<vmem>>, vector<1x2x32xf32>
    %193 = vector.shape_cast %192 : vector<1x2x32xf32> to vector<2x32xf32>
    %cst_105 = arith.constant dense<0.000000e+00> : vector<2x32xf32>
    %194 = tpu.matmul %186, %1, %cst_105 {dimension_numbers = #tpu.dot_dimension_numbers<[1], [0], [0], [1], [0, 0, 1, 1], [], []>} : vector<2x32xf32>, vector<32x32xf32>, vector<2x32xf32> -> vector<2x32xf32>
    %195 = arith.addf %193, %194 : vector<2x32xf32>
    %196 = math.tanh %195 : vector<2x32xf32>
    %cst_106 = arith.constant dense<0.000000e+00> : vector<2x32xf32>
    %197 = tpu.matmul %196, %3, %cst_106 {dimension_numbers = #tpu.dot_dimension_numbers<[1], [0], [0], [1], [0, 0, 1, 1], [], []>} : vector<2x32xf32>, vector<32x32xf32>, vector<2x32xf32> -> vector<2x32xf32>
    %cst_107 = arith.constant dense<0.000000e+00> : vector<2x32xf32>
    %198 = tpu.matmul %191, %5, %cst_107 {dimension_numbers = #tpu.dot_dimension_numbers<[1], [0], [0], [1], [0, 0, 1, 1], [], []>} : vector<2x32xf32>, vector<32x32xf32>, vector<2x32xf32> -> vector<2x32xf32>
    %199 = arith.addf %197, %198 : vector<2x32xf32>
    %200 = arith.addf %199, %9 : vector<2x32xf32>
    %201 = math.tanh %200 : vector<2x32xf32>
    %c19 = arith.constant 19 : index
    %c0_108 = arith.constant 0 : index
    %c0_109 = arith.constant 0 : index
    %202 = vector.load %arg0[%c19, %c0_108, %c0_109] : memref<32x2x32xf32, #tpu.memory_space<vmem>>, vector<1x2x32xf32>
    %203 = vector.shape_cast %202 : vector<1x2x32xf32> to vector<2x32xf32>
    %cst_110 = arith.constant dense<0.000000e+00> : vector<2x32xf32>
    %204 = tpu.matmul %196, %1, %cst_110 {dimension_numbers = #tpu.dot_dimension_numbers<[1], [0], [0], [1], [0, 0, 1, 1], [], []>} : vector<2x32xf32>, vector<32x32xf32>, vector<2x32xf32> -> vector<2x32xf32>
    %205 = arith.addf %203, %204 : vector<2x32xf32>
    %206 = math.tanh %205 : vector<2x32xf32>
    %cst_111 = arith.constant dense<0.000000e+00> : vector<2x32xf32>
    %207 = tpu.matmul %206, %3, %cst_111 {dimension_numbers = #tpu.dot_dimension_numbers<[1], [0], [0], [1], [0, 0, 1, 1], [], []>} : vector<2x32xf32>, vector<32x32xf32>, vector<2x32xf32> -> vector<2x32xf32>
    %cst_112 = arith.constant dense<0.000000e+00> : vector<2x32xf32>
    %208 = tpu.matmul %201, %5, %cst_112 {dimension_numbers = #tpu.dot_dimension_numbers<[1], [0], [0], [1], [0, 0, 1, 1], [], []>} : vector<2x32xf32>, vector<32x32xf32>, vector<2x32xf32> -> vector<2x32xf32>
    %209 = arith.addf %207, %208 : vector<2x32xf32>
    %210 = arith.addf %209, %9 : vector<2x32xf32>
    %211 = math.tanh %210 : vector<2x32xf32>
    %c20 = arith.constant 20 : index
    %c0_113 = arith.constant 0 : index
    %c0_114 = arith.constant 0 : index
    %212 = vector.load %arg0[%c20, %c0_113, %c0_114] : memref<32x2x32xf32, #tpu.memory_space<vmem>>, vector<1x2x32xf32>
    %213 = vector.shape_cast %212 : vector<1x2x32xf32> to vector<2x32xf32>
    %cst_115 = arith.constant dense<0.000000e+00> : vector<2x32xf32>
    %214 = tpu.matmul %206, %1, %cst_115 {dimension_numbers = #tpu.dot_dimension_numbers<[1], [0], [0], [1], [0, 0, 1, 1], [], []>} : vector<2x32xf32>, vector<32x32xf32>, vector<2x32xf32> -> vector<2x32xf32>
    %215 = arith.addf %213, %214 : vector<2x32xf32>
    %216 = math.tanh %215 : vector<2x32xf32>
    %cst_116 = arith.constant dense<0.000000e+00> : vector<2x32xf32>
    %217 = tpu.matmul %216, %3, %cst_116 {dimension_numbers = #tpu.dot_dimension_numbers<[1], [0], [0], [1], [0, 0, 1, 1], [], []>} : vector<2x32xf32>, vector<32x32xf32>, vector<2x32xf32> -> vector<2x32xf32>
    %cst_117 = arith.constant dense<0.000000e+00> : vector<2x32xf32>
    %218 = tpu.matmul %211, %5, %cst_117 {dimension_numbers = #tpu.dot_dimension_numbers<[1], [0], [0], [1], [0, 0, 1, 1], [], []>} : vector<2x32xf32>, vector<32x32xf32>, vector<2x32xf32> -> vector<2x32xf32>
    %219 = arith.addf %217, %218 : vector<2x32xf32>
    %220 = arith.addf %219, %9 : vector<2x32xf32>
    %221 = math.tanh %220 : vector<2x32xf32>
    %c21 = arith.constant 21 : index
    %c0_118 = arith.constant 0 : index
    %c0_119 = arith.constant 0 : index
    %222 = vector.load %arg0[%c21, %c0_118, %c0_119] : memref<32x2x32xf32, #tpu.memory_space<vmem>>, vector<1x2x32xf32>
    %223 = vector.shape_cast %222 : vector<1x2x32xf32> to vector<2x32xf32>
    %cst_120 = arith.constant dense<0.000000e+00> : vector<2x32xf32>
    %224 = tpu.matmul %216, %1, %cst_120 {dimension_numbers = #tpu.dot_dimension_numbers<[1], [0], [0], [1], [0, 0, 1, 1], [], []>} : vector<2x32xf32>, vector<32x32xf32>, vector<2x32xf32> -> vector<2x32xf32>
    %225 = arith.addf %223, %224 : vector<2x32xf32>
    %226 = math.tanh %225 : vector<2x32xf32>
    %cst_121 = arith.constant dense<0.000000e+00> : vector<2x32xf32>
    %227 = tpu.matmul %226, %3, %cst_121 {dimension_numbers = #tpu.dot_dimension_numbers<[1], [0], [0], [1], [0, 0, 1, 1], [], []>} : vector<2x32xf32>, vector<32x32xf32>, vector<2x32xf32> -> vector<2x32xf32>
    %cst_122 = arith.constant dense<0.000000e+00> : vector<2x32xf32>
    %228 = tpu.matmul %221, %5, %cst_122 {dimension_numbers = #tpu.dot_dimension_numbers<[1], [0], [0], [1], [0, 0, 1, 1], [], []>} : vector<2x32xf32>, vector<32x32xf32>, vector<2x32xf32> -> vector<2x32xf32>
    %229 = arith.addf %227, %228 : vector<2x32xf32>
    %230 = arith.addf %229, %9 : vector<2x32xf32>
    %231 = math.tanh %230 : vector<2x32xf32>
    %c22 = arith.constant 22 : index
    %c0_123 = arith.constant 0 : index
    %c0_124 = arith.constant 0 : index
    %232 = vector.load %arg0[%c22, %c0_123, %c0_124] : memref<32x2x32xf32, #tpu.memory_space<vmem>>, vector<1x2x32xf32>
    %233 = vector.shape_cast %232 : vector<1x2x32xf32> to vector<2x32xf32>
    %cst_125 = arith.constant dense<0.000000e+00> : vector<2x32xf32>
    %234 = tpu.matmul %226, %1, %cst_125 {dimension_numbers = #tpu.dot_dimension_numbers<[1], [0], [0], [1], [0, 0, 1, 1], [], []>} : vector<2x32xf32>, vector<32x32xf32>, vector<2x32xf32> -> vector<2x32xf32>
    %235 = arith.addf %233, %234 : vector<2x32xf32>
    %236 = math.tanh %235 : vector<2x32xf32>
    %cst_126 = arith.constant dense<0.000000e+00> : vector<2x32xf32>
    %237 = tpu.matmul %236, %3, %cst_126 {dimension_numbers = #tpu.dot_dimension_numbers<[1], [0], [0], [1], [0, 0, 1, 1], [], []>} : vector<2x32xf32>, vector<32x32xf32>, vector<2x32xf32> -> vector<2x32xf32>
    %cst_127 = arith.constant dense<0.000000e+00> : vector<2x32xf32>
    %238 = tpu.matmul %231, %5, %cst_127 {dimension_numbers = #tpu.dot_dimension_numbers<[1], [0], [0], [1], [0, 0, 1, 1], [], []>} : vector<2x32xf32>, vector<32x32xf32>, vector<2x32xf32> -> vector<2x32xf32>
    %239 = arith.addf %237, %238 : vector<2x32xf32>
    %240 = arith.addf %239, %9 : vector<2x32xf32>
    %241 = math.tanh %240 : vector<2x32xf32>
    %c23 = arith.constant 23 : index
    %c0_128 = arith.constant 0 : index
    %c0_129 = arith.constant 0 : index
    %242 = vector.load %arg0[%c23, %c0_128, %c0_129] : memref<32x2x32xf32, #tpu.memory_space<vmem>>, vector<1x2x32xf32>
    %243 = vector.shape_cast %242 : vector<1x2x32xf32> to vector<2x32xf32>
    %cst_130 = arith.constant dense<0.000000e+00> : vector<2x32xf32>
    %244 = tpu.matmul %236, %1, %cst_130 {dimension_numbers = #tpu.dot_dimension_numbers<[1], [0], [0], [1], [0, 0, 1, 1], [], []>} : vector<2x32xf32>, vector<32x32xf32>, vector<2x32xf32> -> vector<2x32xf32>
    %245 = arith.addf %243, %244 : vector<2x32xf32>
    %246 = math.tanh %245 : vector<2x32xf32>
    %cst_131 = arith.constant dense<0.000000e+00> : vector<2x32xf32>
    %247 = tpu.matmul %246, %3, %cst_131 {dimension_numbers = #tpu.dot_dimension_numbers<[1], [0], [0], [1], [0, 0, 1, 1], [], []>} : vector<2x32xf32>, vector<32x32xf32>, vector<2x32xf32> -> vector<2x32xf32>
    %cst_132 = arith.constant dense<0.000000e+00> : vector<2x32xf32>
    %248 = tpu.matmul %241, %5, %cst_132 {dimension_numbers = #tpu.dot_dimension_numbers<[1], [0], [0], [1], [0, 0, 1, 1], [], []>} : vector<2x32xf32>, vector<32x32xf32>, vector<2x32xf32> -> vector<2x32xf32>
    %249 = arith.addf %247, %248 : vector<2x32xf32>
    %250 = arith.addf %249, %9 : vector<2x32xf32>
    %251 = math.tanh %250 : vector<2x32xf32>
    %c24 = arith.constant 24 : index
    %c0_133 = arith.constant 0 : index
    %c0_134 = arith.constant 0 : index
    %252 = vector.load %arg0[%c24, %c0_133, %c0_134] : memref<32x2x32xf32, #tpu.memory_space<vmem>>, vector<1x2x32xf32>
    %253 = vector.shape_cast %252 : vector<1x2x32xf32> to vector<2x32xf32>
    %cst_135 = arith.constant dense<0.000000e+00> : vector<2x32xf32>
    %254 = tpu.matmul %246, %1, %cst_135 {dimension_numbers = #tpu.dot_dimension_numbers<[1], [0], [0], [1], [0, 0, 1, 1], [], []>} : vector<2x32xf32>, vector<32x32xf32>, vector<2x32xf32> -> vector<2x32xf32>
    %255 = arith.addf %253, %254 : vector<2x32xf32>
    %256 = math.tanh %255 : vector<2x32xf32>
    %cst_136 = arith.constant dense<0.000000e+00> : vector<2x32xf32>
    %257 = tpu.matmul %256, %3, %cst_136 {dimension_numbers = #tpu.dot_dimension_numbers<[1], [0], [0], [1], [0, 0, 1, 1], [], []>} : vector<2x32xf32>, vector<32x32xf32>, vector<2x32xf32> -> vector<2x32xf32>
    %cst_137 = arith.constant dense<0.000000e+00> : vector<2x32xf32>
    %258 = tpu.matmul %251, %5, %cst_137 {dimension_numbers = #tpu.dot_dimension_numbers<[1], [0], [0], [1], [0, 0, 1, 1], [], []>} : vector<2x32xf32>, vector<32x32xf32>, vector<2x32xf32> -> vector<2x32xf32>
    %259 = arith.addf %257, %258 : vector<2x32xf32>
    %260 = arith.addf %259, %9 : vector<2x32xf32>
    %261 = math.tanh %260 : vector<2x32xf32>
    %c25 = arith.constant 25 : index
    %c0_138 = arith.constant 0 : index
    %c0_139 = arith.constant 0 : index
    %262 = vector.load %arg0[%c25, %c0_138, %c0_139] : memref<32x2x32xf32, #tpu.memory_space<vmem>>, vector<1x2x32xf32>
    %263 = vector.shape_cast %262 : vector<1x2x32xf32> to vector<2x32xf32>
    %cst_140 = arith.constant dense<0.000000e+00> : vector<2x32xf32>
    %264 = tpu.matmul %256, %1, %cst_140 {dimension_numbers = #tpu.dot_dimension_numbers<[1], [0], [0], [1], [0, 0, 1, 1], [], []>} : vector<2x32xf32>, vector<32x32xf32>, vector<2x32xf32> -> vector<2x32xf32>
    %265 = arith.addf %263, %264 : vector<2x32xf32>
    %266 = math.tanh %265 : vector<2x32xf32>
    %cst_141 = arith.constant dense<0.000000e+00> : vector<2x32xf32>
    %267 = tpu.matmul %266, %3, %cst_141 {dimension_numbers = #tpu.dot_dimension_numbers<[1], [0], [0], [1], [0, 0, 1, 1], [], []>} : vector<2x32xf32>, vector<32x32xf32>, vector<2x32xf32> -> vector<2x32xf32>
    %cst_142 = arith.constant dense<0.000000e+00> : vector<2x32xf32>
    %268 = tpu.matmul %261, %5, %cst_142 {dimension_numbers = #tpu.dot_dimension_numbers<[1], [0], [0], [1], [0, 0, 1, 1], [], []>} : vector<2x32xf32>, vector<32x32xf32>, vector<2x32xf32> -> vector<2x32xf32>
    %269 = arith.addf %267, %268 : vector<2x32xf32>
    %270 = arith.addf %269, %9 : vector<2x32xf32>
    %271 = math.tanh %270 : vector<2x32xf32>
    %c26 = arith.constant 26 : index
    %c0_143 = arith.constant 0 : index
    %c0_144 = arith.constant 0 : index
    %272 = vector.load %arg0[%c26, %c0_143, %c0_144] : memref<32x2x32xf32, #tpu.memory_space<vmem>>, vector<1x2x32xf32>
    %273 = vector.shape_cast %272 : vector<1x2x32xf32> to vector<2x32xf32>
    %cst_145 = arith.constant dense<0.000000e+00> : vector<2x32xf32>
    %274 = tpu.matmul %266, %1, %cst_145 {dimension_numbers = #tpu.dot_dimension_numbers<[1], [0], [0], [1], [0, 0, 1, 1], [], []>} : vector<2x32xf32>, vector<32x32xf32>, vector<2x32xf32> -> vector<2x32xf32>
    %275 = arith.addf %273, %274 : vector<2x32xf32>
    %276 = math.tanh %275 : vector<2x32xf32>
    %cst_146 = arith.constant dense<0.000000e+00> : vector<2x32xf32>
    %277 = tpu.matmul %276, %3, %cst_146 {dimension_numbers = #tpu.dot_dimension_numbers<[1], [0], [0], [1], [0, 0, 1, 1], [], []>} : vector<2x32xf32>, vector<32x32xf32>, vector<2x32xf32> -> vector<2x32xf32>
    %cst_147 = arith.constant dense<0.000000e+00> : vector<2x32xf32>
    %278 = tpu.matmul %271, %5, %cst_147 {dimension_numbers = #tpu.dot_dimension_numbers<[1], [0], [0], [1], [0, 0, 1, 1], [], []>} : vector<2x32xf32>, vector<32x32xf32>, vector<2x32xf32> -> vector<2x32xf32>
    %279 = arith.addf %277, %278 : vector<2x32xf32>
    %280 = arith.addf %279, %9 : vector<2x32xf32>
    %281 = math.tanh %280 : vector<2x32xf32>
    %c27 = arith.constant 27 : index
    %c0_148 = arith.constant 0 : index
    %c0_149 = arith.constant 0 : index
    %282 = vector.load %arg0[%c27, %c0_148, %c0_149] : memref<32x2x32xf32, #tpu.memory_space<vmem>>, vector<1x2x32xf32>
    %283 = vector.shape_cast %282 : vector<1x2x32xf32> to vector<2x32xf32>
    %cst_150 = arith.constant dense<0.000000e+00> : vector<2x32xf32>
    %284 = tpu.matmul %276, %1, %cst_150 {dimension_numbers = #tpu.dot_dimension_numbers<[1], [0], [0], [1], [0, 0, 1, 1], [], []>} : vector<2x32xf32>, vector<32x32xf32>, vector<2x32xf32> -> vector<2x32xf32>
    %285 = arith.addf %283, %284 : vector<2x32xf32>
    %286 = math.tanh %285 : vector<2x32xf32>
    %cst_151 = arith.constant dense<0.000000e+00> : vector<2x32xf32>
    %287 = tpu.matmul %286, %3, %cst_151 {dimension_numbers = #tpu.dot_dimension_numbers<[1], [0], [0], [1], [0, 0, 1, 1], [], []>} : vector<2x32xf32>, vector<32x32xf32>, vector<2x32xf32> -> vector<2x32xf32>
    %cst_152 = arith.constant dense<0.000000e+00> : vector<2x32xf32>
    %288 = tpu.matmul %281, %5, %cst_152 {dimension_numbers = #tpu.dot_dimension_numbers<[1], [0], [0], [1], [0, 0, 1, 1], [], []>} : vector<2x32xf32>, vector<32x32xf32>, vector<2x32xf32> -> vector<2x32xf32>
    %289 = arith.addf %287, %288 : vector<2x32xf32>
    %290 = arith.addf %289, %9 : vector<2x32xf32>
    %291 = math.tanh %290 : vector<2x32xf32>
    %c28 = arith.constant 28 : index
    %c0_153 = arith.constant 0 : index
    %c0_154 = arith.constant 0 : index
    %292 = vector.load %arg0[%c28, %c0_153, %c0_154] : memref<32x2x32xf32, #tpu.memory_space<vmem>>, vector<1x2x32xf32>
    %293 = vector.shape_cast %292 : vector<1x2x32xf32> to vector<2x32xf32>
    %cst_155 = arith.constant dense<0.000000e+00> : vector<2x32xf32>
    %294 = tpu.matmul %286, %1, %cst_155 {dimension_numbers = #tpu.dot_dimension_numbers<[1], [0], [0], [1], [0, 0, 1, 1], [], []>} : vector<2x32xf32>, vector<32x32xf32>, vector<2x32xf32> -> vector<2x32xf32>
    %295 = arith.addf %293, %294 : vector<2x32xf32>
    %296 = math.tanh %295 : vector<2x32xf32>
    %cst_156 = arith.constant dense<0.000000e+00> : vector<2x32xf32>
    %297 = tpu.matmul %296, %3, %cst_156 {dimension_numbers = #tpu.dot_dimension_numbers<[1], [0], [0], [1], [0, 0, 1, 1], [], []>} : vector<2x32xf32>, vector<32x32xf32>, vector<2x32xf32> -> vector<2x32xf32>
    %cst_157 = arith.constant dense<0.000000e+00> : vector<2x32xf32>
    %298 = tpu.matmul %291, %5, %cst_157 {dimension_numbers = #tpu.dot_dimension_numbers<[1], [0], [0], [1], [0, 0, 1, 1], [], []>} : vector<2x32xf32>, vector<32x32xf32>, vector<2x32xf32> -> vector<2x32xf32>
    %299 = arith.addf %297, %298 : vector<2x32xf32>
    %300 = arith.addf %299, %9 : vector<2x32xf32>
    %301 = math.tanh %300 : vector<2x32xf32>
    %c29 = arith.constant 29 : index
    %c0_158 = arith.constant 0 : index
    %c0_159 = arith.constant 0 : index
    %302 = vector.load %arg0[%c29, %c0_158, %c0_159] : memref<32x2x32xf32, #tpu.memory_space<vmem>>, vector<1x2x32xf32>
    %303 = vector.shape_cast %302 : vector<1x2x32xf32> to vector<2x32xf32>
    %cst_160 = arith.constant dense<0.000000e+00> : vector<2x32xf32>
    %304 = tpu.matmul %296, %1, %cst_160 {dimension_numbers = #tpu.dot_dimension_numbers<[1], [0], [0], [1], [0, 0, 1, 1], [], []>} : vector<2x32xf32>, vector<32x32xf32>, vector<2x32xf32> -> vector<2x32xf32>
    %305 = arith.addf %303, %304 : vector<2x32xf32>
    %306 = math.tanh %305 : vector<2x32xf32>
    %cst_161 = arith.constant dense<0.000000e+00> : vector<2x32xf32>
    %307 = tpu.matmul %306, %3, %cst_161 {dimension_numbers = #tpu.dot_dimension_numbers<[1], [0], [0], [1], [0, 0, 1, 1], [], []>} : vector<2x32xf32>, vector<32x32xf32>, vector<2x32xf32> -> vector<2x32xf32>
    %cst_162 = arith.constant dense<0.000000e+00> : vector<2x32xf32>
    %308 = tpu.matmul %301, %5, %cst_162 {dimension_numbers = #tpu.dot_dimension_numbers<[1], [0], [0], [1], [0, 0, 1, 1], [], []>} : vector<2x32xf32>, vector<32x32xf32>, vector<2x32xf32> -> vector<2x32xf32>
    %309 = arith.addf %307, %308 : vector<2x32xf32>
    %310 = arith.addf %309, %9 : vector<2x32xf32>
    %311 = math.tanh %310 : vector<2x32xf32>
    %c30 = arith.constant 30 : index
    %c0_163 = arith.constant 0 : index
    %c0_164 = arith.constant 0 : index
    %312 = vector.load %arg0[%c30, %c0_163, %c0_164] : memref<32x2x32xf32, #tpu.memory_space<vmem>>, vector<1x2x32xf32>
    %313 = vector.shape_cast %312 : vector<1x2x32xf32> to vector<2x32xf32>
    %cst_165 = arith.constant dense<0.000000e+00> : vector<2x32xf32>
    %314 = tpu.matmul %306, %1, %cst_165 {dimension_numbers = #tpu.dot_dimension_numbers<[1], [0], [0], [1], [0, 0, 1, 1], [], []>} : vector<2x32xf32>, vector<32x32xf32>, vector<2x32xf32> -> vector<2x32xf32>
    %315 = arith.addf %313, %314 : vector<2x32xf32>
    %316 = math.tanh %315 : vector<2x32xf32>
    %cst_166 = arith.constant dense<0.000000e+00> : vector<2x32xf32>
    %317 = tpu.matmul %316, %3, %cst_166 {dimension_numbers = #tpu.dot_dimension_numbers<[1], [0], [0], [1], [0, 0, 1, 1], [], []>} : vector<2x32xf32>, vector<32x32xf32>, vector<2x32xf32> -> vector<2x32xf32>
    %cst_167 = arith.constant dense<0.000000e+00> : vector<2x32xf32>
    %318 = tpu.matmul %311, %5, %cst_167 {dimension_numbers = #tpu.dot_dimension_numbers<[1], [0], [0], [1], [0, 0, 1, 1], [], []>} : vector<2x32xf32>, vector<32x32xf32>, vector<2x32xf32> -> vector<2x32xf32>
    %319 = arith.addf %317, %318 : vector<2x32xf32>
    %320 = arith.addf %319, %9 : vector<2x32xf32>
    %321 = math.tanh %320 : vector<2x32xf32>
    %c31 = arith.constant 31 : index
    %c0_168 = arith.constant 0 : index
    %c0_169 = arith.constant 0 : index
    %322 = vector.load %arg0[%c31, %c0_168, %c0_169] : memref<32x2x32xf32, #tpu.memory_space<vmem>>, vector<1x2x32xf32>
    %323 = vector.shape_cast %322 : vector<1x2x32xf32> to vector<2x32xf32>
    %cst_170 = arith.constant dense<0.000000e+00> : vector<2x32xf32>
    %324 = tpu.matmul %316, %1, %cst_170 {dimension_numbers = #tpu.dot_dimension_numbers<[1], [0], [0], [1], [0, 0, 1, 1], [], []>} : vector<2x32xf32>, vector<32x32xf32>, vector<2x32xf32> -> vector<2x32xf32>
    %325 = arith.addf %323, %324 : vector<2x32xf32>
    %326 = math.tanh %325 : vector<2x32xf32>
    %cst_171 = arith.constant dense<0.000000e+00> : vector<2x32xf32>
    %327 = tpu.matmul %326, %3, %cst_171 {dimension_numbers = #tpu.dot_dimension_numbers<[1], [0], [0], [1], [0, 0, 1, 1], [], []>} : vector<2x32xf32>, vector<32x32xf32>, vector<2x32xf32> -> vector<2x32xf32>
    %cst_172 = arith.constant dense<0.000000e+00> : vector<2x32xf32>
    %328 = tpu.matmul %321, %5, %cst_172 {dimension_numbers = #tpu.dot_dimension_numbers<[1], [0], [0], [1], [0, 0, 1, 1], [], []>} : vector<2x32xf32>, vector<32x32xf32>, vector<2x32xf32> -> vector<2x32xf32>
    %329 = arith.addf %327, %328 : vector<2x32xf32>
    %330 = arith.addf %329, %9 : vector<2x32xf32>
    %331 = math.tanh %330 : vector<2x32xf32>
    %cst_173 = arith.constant 0.000000e+00 : f32
    %332 = vector.broadcast %cst_173 : f32 to vector<2x32xf32>
    %333 = arith.maximumf %331, %332 : vector<2x32xf32>
    %c0_174 = arith.constant 0 : index
    %c0_175 = arith.constant 0 : index
    %334 = vector.load %arg4[%c0_174, %c0_175] : memref<32x512xf32, #tpu.memory_space<vmem>>, vector<32x512xf32>
    %cst_176 = arith.constant dense<0.000000e+00> : vector<2x512xf32>
    %335 = tpu.matmul %333, %334, %cst_176 {dimension_numbers = #tpu.dot_dimension_numbers<[1], [0], [0], [1], [0, 0, 1, 1], [], []>} : vector<2x32xf32>, vector<32x512xf32>, vector<2x512xf32> -> vector<2x512xf32>
    %c0_177 = arith.constant 0 : index
    %c0_178 = arith.constant 0 : index
    %336 = vector.load %arg5[%c0_177, %c0_178] : memref<1x512xf32, #tpu.memory_space<vmem>>, vector<1x512xf32>
    %337 = vector.broadcast %336 : vector<1x512xf32> to vector<2x512xf32>
    %338 = arith.addf %335, %337 : vector<2x512xf32>
    %339 = arith.negf %338 : vector<2x512xf32>
    %340 = math.exp %339 : vector<2x512xf32>
    %cst_179 = arith.constant 1.000000e+00 : f32
    %341 = vector.broadcast %cst_179 : f32 to vector<2x512xf32>
    %342 = arith.addf %341, %340 : vector<2x512xf32>
    %343 = arith.divf %341, %342 : vector<2x512xf32>
    %c0_180 = arith.constant 0 : index
    %c0_181 = arith.constant 0 : index
    %344 = vector.load %arg6[%c0_180, %c0_181] : memref<2x512xf32, #tpu.memory_space<vmem>>, vector<2x512xf32>
    tpu.vector_store %arg6[%c0_180, %c0_181], %343 {strides = array<i32>} : memref<2x512xf32, #tpu.memory_space<vmem>>, vector<2x512xf32>,
    return
  }
}

</mosaic_0001>

<bundles_post_ra>
// kernel: forward.6
= control target key start
LH: loop header
LB: loop body
LE: loop exit
PB: predicated region body
PF: predicated region fallthrough
CT: control target
= control target key end

     0   :  { %vm37_vm0 = vcmask 523264   ;;  %vm167_vm1 = vcmask 261120   ;;  %s368_s1 = inlined_call_operand.vmem [shape: f32[64,32], index: 1, kind: input, shape index: {}]   ;;  %s369_s0 = inlined_call_operand.vmem [shape: f32[64,64], index: 0, kind: input, shape index: {}]   ;;  %s370_s2 = inlined_call_operand.vmem [shape: f32[1,32], index: 2, kind: input, shape index: {}]   ;;  %s371_s3 = inlined_call_operand.vmem [shape: f32[64,32], index: 3, kind: output, shape index: {}]  }
   0x1   :  { %v22_v0 = vld [vmem:[%s368_s1] sm:$0xff]  ;;  %v23_v1 = vld [vmem:[%s368_s1 + $0x8] sm:$0xff]  ;;  %v24_v2 = vld [vmem:[%s368_s1 + $0x10] sm:$0xff] }
   0x2   :  { %v233_v3 = vpack.c.bf16 %v23_v1, %v22_v0  ;;  %v25_v4 = vld [vmem:[%s368_s1 + $0x18] sm:$0xff]  ;;  %v26_v6 = vld [vmem:[%s368_s1 + $0x20] sm:$0xff]  ;;  %v27_v7 = vld [vmem:[%s368_s1 + $0x28] sm:$0xff] }
   0x3   :  { %v237_v5 = vpack.c.bf16 %v25_v4, %v24_v2  ;;  %v14_v8 = vld [vmem:[%s369_s0] sm:$0xff]  ;;  %v241_v10 = vpack.c.bf16 %v27_v7, %v26_v6  ;;  %v28_v11 = vld [vmem:[%s368_s1 + $0x30] sm:$0xff]  ;;  %v29_v12 = vld [vmem:[%s368_s1 + $0x38] sm:$0xff] }
   0x4   :  { %234 = vmatprep.subr.bf16.mxu0 %v233_v3  ;;  %249 = vmatprep.subr.bf16.mxu1 %v233_v3  ;;  %v18_v9 = vld [vmem:[%s369_s0 + $0x20] sm:$0xff]  ;;  %v245_v13 = vpack.c.bf16 %v29_v12, %v28_v11  ;;  %v15_v14 = vld [vmem:[%s369_s0 + $0x8] sm:$0xff]  ;;  %v16_v16 = vld [vmem:[%s369_s0 + $0x10] sm:$0xff] }
   0x5   :  { %236 = vmatpush3.bf16.msra.mxu0 %v233_v3  ;;  %253 = vmatpush3.bf16.msra.mxu1 %v233_v3  ;;  %v19_v15 = vld [vmem:[%s369_s0 + $0x28] sm:$0xff]  ;;  %v20_v17 = vld [vmem:[%s369_s0 + $0x30] sm:$0xff]  ;;  %v17_v18 = vld [vmem:[%s369_s0 + $0x18] sm:$0xff] }
   0x6   :  { %238 = vmatprep.subr.bf16.mxu0 %v237_v5  ;;  %250 = vmatprep.subr.bf16.mxu1 %v237_v5  ;;  %v21_v19 = vld [vmem:[%s369_s0 + $0x38] sm:$0xff]  ;;  %v180_v20 = vld [vmem:[%s370_s2] ss:$0 sm:$0xff] }
   0x7   :  { %221 = vmatprep.mubr.msk.f32.mxu0 %vm37_vm0, %v14_v8  ;;  %227 = vmatprep.mubr.msk.f32.mxu1 %vm37_vm0, %v18_v9 }
   0x9   :  { %240 = vmatpush3.bf16.msra.mxu0 %v237_v5  ;;  %254 = vmatpush3.bf16.msra.mxu1 %v237_v5 }
   0xa   :  { %242 = vmatprep.subr.bf16.mxu0 %v241_v10  ;;  %251 = vmatprep.subr.bf16.mxu1 %v241_v10 }
   0xd   :  { %244 = vmatpush3.bf16.msra.mxu0 %v241_v10  ;;  %255 = vmatpush3.bf16.msra.mxu1 %v241_v10 }
   0xe   :  { %246 = vmatprep.subr.bf16.mxu0 %v245_v13  ;;  %252 = vmatprep.subr.bf16.mxu1 %v245_v13 }
  0x11   :  { %248 = vmatpush3.bf16.msra.mxu0 %v245_v13  ;;  %256 = vmatpush3.bf16.msra.mxu1 %v245_v13 }
  0x14   :  { %222 = vmatmul.mubr.msk.f32.vlgmr.msra.gmra.mrb[0].mxu0 %vm37_vm0, %v15_v14  ;;  %228 = vmatmul.mubr.msk.f32.vlgmr.msra.gmra.mrb[0].mxu1 %vm37_vm0, %v19_v15 }
  0x15   :  { %224 = vmatprep.mubr.msk.f32.mxu0 %vm37_vm0, %v16_v16  ;;  %230 = vmatprep.mubr.msk.f32.mxu1 %vm37_vm0, %v20_v17 }
  0x18   :  { %225 = vmatmul.mubr.msk.f32.gmra.mrb[2].mxu0 %vm37_vm0, %v17_v18  ;;  %231 = vmatmul.mubr.msk.f32.gmra.mrb[2].mxu1 %vm37_vm0, %v21_v19 }
  0xe7   :  { %v223_v21 = vpop.f32.mrb[0].mxu0  ;;  %v229_v22 = vpop.f32.mrb[0].mxu1 }
  0xe8   :  { %v134_v23 = vadd.f32 %v223_v21, %v180_v20  ;;  %v154_v24 = vadd.f32 %v229_v22, %v180_v20  ;;  %v128_v25 = vpop.f32.mrb[1].mxu0  ;;  %v148_v26 = vpop.f32.mrb[1].mxu1 }
  0xe9   :  { %v129_v27 = vadd.f32 %v180_v20, %v128_v25  ;;  %v149_v28 = vadd.f32 %v180_v20, %v148_v26 }
  0xea   :  { %169 = vst.msk [vmem:[%s371_s3 + $0x8] sm:$0xff] %vm167_vm1, %v134_v23  ;;  %173 = vst.msk [vmem:[%s371_s3 + $0x28] sm:$0xff] %vm167_vm1, %v154_v24 }
  0xeb   :  { %168 = vst.msk [vmem:[%s371_s3] sm:$0xff] %vm167_vm1, %v129_v27  ;;  %172 = vst.msk [vmem:[%s371_s3 + $0x20] sm:$0xff] %vm167_vm1, %v149_v28  ;;  %v226_v29 = vpop.f32.mrb[2].mxu0  ;;  %v232_v30 = vpop.f32.mrb[2].mxu1 }
  0xec   :  { %v144_v31 = vadd.f32 %v226_v29, %v180_v20  ;;  %v164_v32 = vadd.f32 %v232_v30, %v180_v20  ;;  %v138_v33 = vpop.f32.mrb[3].mxu0  ;;  %v158_v34 = vpop.f32.mrb[3].mxu1 }
  0xed   :  { %v139_v35 = vadd.f32 %v180_v20, %v138_v33  ;;  %v159_v36 = vadd.f32 %v180_v20, %v158_v34 }
  0xee   :  { %171 = vst.msk [vmem:[%s371_s3 + $0x18] sm:$0xff] %vm167_vm1, %v144_v31  ;;  %175 = vst.msk [vmem:[%s371_s3 + $0x38] sm:$0xff] %vm167_vm1, %v164_v32 }
  0xef   :  { %170 = vst.msk [vmem:[%s371_s3 + $0x10] sm:$0xff] %vm167_vm1, %v139_v35  ;;  %174 = vst.msk [vmem:[%s371_s3 + $0x30] sm:$0xff] %vm167_vm1, %v159_v36 }

// kernel: forward.4
= control target key start
LH: loop header
LB: loop body
LE: loop exit
PB: predicated region body
PF: predicated region fallthrough
CT: control target
= control target key end

     0   :  { %vm42_vm0 = vcmask 293888   ;;  %vm91_vm1 = vcmask 1043456   ;;  %vm256_vm2 = vcmask 130048   ;;  %s530_s1 = inlined_call_operand.vmem [shape: f32[36,16], index: 1, kind: input, shape index: {}]   ;;  %s531_s0 = inlined_call_operand.vmem [shape: f32[128,36], index: 0, kind: input, shape index: {}]   ;;  %s532_s2 = inlined_call_operand.vmem [shape: f32[1,16], index: 2, kind: input, shape index: {}]   ;;  %s533_s3 = inlined_call_operand.vmem [shape: f32[128,16], index: 3, kind: output, shape index: {}]  }
   0x1   :  { %v30_v0 = vld [vmem:[%s530_s1] sm:$0xff]  ;;  %v31_v1 = vld [vmem:[%s530_s1 + $0x8] sm:$0xff]  ;;  %v32_v2 = vld [vmem:[%s530_s1 + $0x10] sm:$0xff] }
   0x2   :  { %v350_v3 = vpack.c.bf16 %v31_v1, %v30_v0  ;;  %v33_v4 = vld [vmem:[%s530_s1 + $0x18] sm:$0xff]  ;;  %v14_v5 = vld [vmem:[%s531_s0] sm:$0xff]  ;;  %v15_v9 = vld [vmem:[%s531_s0 + $0x8] sm:$0xff] }
   0x3   :  { %v354_v6 = vpack.c.bf16 %v33_v4, %v32_v2  ;;  %326 = vmatprep.mubr.msk.f32.mxu0 %vm42_vm0, %v14_v5  ;;  %v22_v7 = vld [vmem:[%s531_s0 + $0x40] sm:$0xff]  ;;  %v23_v10 = vld [vmem:[%s531_s0 + $0x48] sm:$0xff]  ;;  %v16_v11 = vld [vmem:[%s531_s0 + $0x10] sm:$0xff] }
   0x4   :  { %351 = vmatprep.subr.bf16.mxu0 %v350_v3  ;;  %358 = vmatprep.subr.bf16.mxu1 %v350_v3  ;;  %v34_v8 = vld [vmem:[%s530_s1 + $0x20] sm:$0xf]  ;;  %v24_v12 = vld [vmem:[%s531_s0 + $0x50] sm:$0xff]  ;;  %v17_v13 = vld [vmem:[%s531_s0 + $0x18] sm:$0xff] }
   0x5   :  { %353 = vmatpush3.bf16.msra.mxu0 %v350_v3  ;;  %361 = vmatpush3.bf16.msra.mxu1 %v350_v3  ;;  %v25_v14 = vld [vmem:[%s531_s0 + $0x58] sm:$0xff]  ;;  %v18_v15 = vld [vmem:[%s531_s0 + $0x20] sm:$0xff]  ;;  %v19_v17 = vld [vmem:[%s531_s0 + $0x28] sm:$0xff] }
   0x6   :  { %355 = vmatprep.subr.bf16.mxu0 %v354_v6  ;;  %359 = vmatprep.subr.bf16.mxu1 %v354_v6  ;;  %v26_v16 = vld [vmem:[%s531_s0 + $0x60] sm:$0xff]  ;;  %v27_v18 = vld [vmem:[%s531_s0 + $0x68] sm:$0xff]  ;;  %v20_v19 = vld [vmem:[%s531_s0 + $0x30] sm:$0xff] }
   0x7   :  { %338 = vmatprep.mubr.msk.f32.mxu1 %vm42_vm0, %v22_v7  ;;  %v28_v20 = vld [vmem:[%s531_s0 + $0x70] sm:$0xff]  ;;  %v21_v21 = vld [vmem:[%s531_s0 + $0x38] sm:$0xff]  ;;  %v277_v23 = vld [vmem:[%s532_s2] ss:$0 sm:$0xff] }
   0x8   :  { %v29_v22 = vld [vmem:[%s531_s0 + $0x78] sm:$0xff] }
   0x9   :  { %357 = vmatpush3.bf16.msra.mxu0 %v354_v6  ;;  %362 = vmatpush3.bf16.msra.mxu1 %v354_v6 }
   0xa   :  { %324 = vmatprep.subr.msk.mxu0 %vm91_vm1, %v34_v8  ;;  %360 = vmatprep.subr.msk.mxu1 %vm91_vm1, %v34_v8 }
   0xd   :  { %325 = vmatpush3.msk.msra.mxu0 %vm91_vm1, %v34_v8  ;;  %363 = vmatpush3.msk.msra.mxu1 %vm91_vm1, %v34_v8 }
   0xe   :  { %327 = vmatmul.mubr.msk.f32.vlgmr.msra.gmra.mrb[0].mxu0 %vm42_vm0, %v15_v9  ;;  %339 = vmatmul.mubr.msk.f32.vlgmr.msra.gmra.mrb[0].mxu1 %vm42_vm0, %v23_v10 }
   0xf   :  { %329 = vmatprep.mubr.msk.f32.mxu0 %vm42_vm0, %v16_v11  ;;  %341 = vmatprep.mubr.msk.f32.mxu1 %vm42_vm0, %v24_v12 }
  0x12   :  { %330 = vmatmul.mubr.msk.f32.gmra.mrb[2].mxu0 %vm42_vm0, %v17_v13  ;;  %342 = vmatmul.mubr.msk.f32.gmra.mrb[2].mxu1 %vm42_vm0, %v25_v14 }
  0x13   :  { %332 = vmatprep.mubr.msk.f32.mxu0 %vm42_vm0, %v18_v15  ;;  %344 = vmatprep.mubr.msk.f32.mxu1 %vm42_vm0, %v26_v16 }
  0x16   :  { %333 = vmatmul.mubr.msk.f32.gmra.mrb[4].mxu0 %vm42_vm0, %v19_v17  ;;  %345 = vmatmul.mubr.msk.f32.gmra.mrb[4].mxu1 %vm42_vm0, %v27_v18 }
  0x17   :  { %335 = vmatprep.mubr.msk.f32.mxu0 %vm42_vm0, %v20_v19  ;;  %347 = vmatprep.mubr.msk.f32.mxu1 %vm42_vm0, %v28_v20 }
  0x1a   :  { %336 = vmatmul.mubr.msk.f32.gmra.mrb[6].mxu0 %vm42_vm0, %v21_v21  ;;  %348 = vmatmul.mubr.msk.f32.gmra.mrb[6].mxu1 %vm42_vm0, %v29_v22 }
  0xe1   :  { %v328_v24 = vpop.f32.mrb[0].mxu0  ;;  %v340_v25 = vpop.f32.mrb[0].mxu1 }
  0xe2   :  { %v167_v26 = vadd.f32 %v328_v24, %v277_v23  ;;  %v207_v27 = vadd.f32 %v340_v25, %v277_v23  ;;  %v161_v28 = vpop.f32.mrb[1].mxu0  ;;  %v201_v29 = vpop.f32.mrb[1].mxu1 }
  0xe3   :  { %v162_v30 = vadd.f32 %v277_v23, %v161_v28  ;;  %v202_v31 = vadd.f32 %v277_v23, %v201_v29 }
  0xe4   :  { %v241_v32 = vmax.f32 %v167_v26, 0.0  ;;  %v249_v33 = vmax.f32 %v207_v27, 0.0 }
  0xe5   :  { %v240_v34 = vmax.f32 %v162_v30, 0.0  ;;  %v248_v35 = vmax.f32 %v202_v31, 0.0  ;;  %v331_v36 = vpop.f32.mrb[2].mxu0  ;;  %v343_v37 = vpop.f32.mrb[2].mxu1 }
  0xe6   :  { %258 = vst.msk [vmem:[%s533_s3 + $0x8] sm:$0xff] %vm256_vm2, %v241_v32  ;;  %266 = vst.msk [vmem:[%s533_s3 + $0x48] sm:$0xff] %vm256_vm2, %v249_v33  ;;  %v177_v38 = vadd.f32 %v331_v36, %v277_v23  ;;  %v217_v39 = vadd.f32 %v343_v37, %v277_v23  ;;  %v171_v40 = vpop.f32.mrb[3].mxu0  ;;  %v211_v41 = vpop.f32.mrb[3].mxu1 }
  0xe7   :  { %257 = vst.msk [vmem:[%s533_s3] sm:$0xff] %vm256_vm2, %v240_v34  ;;  %265 = vst.msk [vmem:[%s533_s3 + $0x40] sm:$0xff] %vm256_vm2, %v248_v35  ;;  %v172_v42 = vadd.f32 %v277_v23, %v171_v40  ;;  %v212_v43 = vadd.f32 %v277_v23, %v211_v41 }
  0xe8   :  { %v243_v44 = vmax.f32 %v177_v38, 0.0  ;;  %v251_v45 = vmax.f32 %v217_v39, 0.0 }
  0xe9   :  { %v242_v46 = vmax.f32 %v172_v42, 0.0  ;;  %v250_v47 = vmax.f32 %v212_v43, 0.0  ;;  %v334_v48 = vpop.f32.mrb[4].mxu0  ;;  %v346_v49 = vpop.f32.mrb[4].mxu1 }
  0xea   :  { %260 = vst.msk [vmem:[%s533_s3 + $0x18] sm:$0xff] %vm256_vm2, %v243_v44  ;;  %268 = vst.msk [vmem:[%s533_s3 + $0x58] sm:$0xff] %vm256_vm2, %v251_v45  ;;  %v187_v50 = vadd.f32 %v334_v48, %v277_v23  ;;  %v227_v51 = vadd.f32 %v346_v49, %v277_v23  ;;  %v181_v52 = vpop.f32.mrb[5].mxu0  ;;  %v221_v53 = vpop.f32.mrb[5].mxu1 }
  0xeb   :  { %259 = vst.msk [vmem:[%s533_s3 + $0x10] sm:$0xff] %vm256_vm2, %v242_v46  ;;  %267 = vst.msk [vmem:[%s533_s3 + $0x50] sm:$0xff] %vm256_vm2, %v250_v47  ;;  %v182_v54 = vadd.f32 %v277_v23, %v181_v52  ;;  %v222_v55 = vadd.f32 %v277_v23, %v221_v53 }
  0xec   :  { %v245_v56 = vmax.f32 %v187_v50, 0.0  ;;  %v253_v57 = vmax.f32 %v227_v51, 0.0 }
  0xed   :  { %v244_v58 = vmax.f32 %v182_v54, 0.0  ;;  %v252_v59 = vmax.f32 %v222_v55, 0.0  ;;  %v337_v60 = vpop.f32.mrb[6].mxu0  ;;  %v349_v61 = vpop.f32.mrb[6].mxu1 }
  0xee   :  { %262 = vst.msk [vmem:[%s533_s3 + $0x28] sm:$0xff] %vm256_vm2, %v245_v56  ;;  %270 = vst.msk [vmem:[%s533_s3 + $0x68] sm:$0xff] %vm256_vm2, %v253_v57  ;;  %v197_v62 = vadd.f32 %v337_v60, %v277_v23  ;;  %v237_v63 = vadd.f32 %v349_v61, %v277_v23  ;;  %v191_v0 = vpop.f32.mrb[7].mxu0  ;;  %v231_v1 = vpop.f32.mrb[7].mxu1 }
  0xef   :  { %261 = vst.msk [vmem:[%s533_s3 + $0x20] sm:$0xff] %vm256_vm2, %v244_v58  ;;  %269 = vst.msk [vmem:[%s533_s3 + $0x60] sm:$0xff] %vm256_vm2, %v252_v59  ;;  %v192_v2 = vadd.f32 %v277_v23, %v191_v0  ;;  %v232_v3 = vadd.f32 %v277_v23, %v231_v1 }
  0xf0   :  { %v247_v4 = vmax.f32 %v197_v62, 0.0  ;;  %v255_v5 = vmax.f32 %v237_v63, 0.0 }
  0xf1   :  { %v246_v6 = vmax.f32 %v192_v2, 0.0  ;;  %v254_v7 = vmax.f32 %v232_v3, 0.0 }
  0xf2   :  { %264 = vst.msk [vmem:[%s533_s3 + $0x38] sm:$0xff] %vm256_vm2, %v247_v4  ;;  %272 = vst.msk [vmem:[%s533_s3 + $0x78] sm:$0xff] %vm256_vm2, %v255_v5 }
  0xf3   :  { %263 = vst.msk [vmem:[%s533_s3 + $0x30] sm:$0xff] %vm256_vm2, %v246_v6  ;;  %271 = vst.msk [vmem:[%s533_s3 + $0x70] sm:$0xff] %vm256_vm2, %v254_v7 }

// kernel: forward.5
= control target key start
LH: loop header
LB: loop body
LE: loop exit
PB: predicated region body
PF: predicated region fallthrough
CT: control target
= control target key end

     0   :  { %v365_v0 = vmov 0.0|0.0   ;;  %vm71_vm0 = vcmask 130048   ;;  %vm281_vm1 = vcmask 261120   ;;  %s655_s1 = inlined_call_operand.vmem [shape: f32[144,32], index: 1, kind: input, shape index: {}]   ;;  %s656_s0 = inlined_call_operand.vmem [shape: f32[128,144], index: 0, kind: input, shape index: {}]   ;;  %s657_s2 = inlined_call_operand.vmem [shape: f32[1,32], index: 2, kind: input, shape index: {}]   ;;  %s658_s3 = inlined_call_operand.vmem [shape: f32[128,32], index: 3, kind: output, shape index: {}]  }
   0x1   :  { %319 = vmatprep.subr.bf16.mxu0 %v365_v0  ;;  %346 = vmatprep.subr.bf16.mxu1 %v365_v0  ;;  %v46_v1 = vld [vmem:[%s655_s1] sm:$0xff]  ;;  %v47_v2 = vld [vmem:[%s655_s1 + $0x8] sm:$0xff]  ;;  %v48_v3 = vld [vmem:[%s655_s1 + $0x10] sm:$0xff] }
   0x2   :  { %v320_v4 = vpack.c.bf16 %v47_v2, %v46_v1  ;;  %v49_v5 = vld [vmem:[%s655_s1 + $0x18] sm:$0xff]  ;;  %v50_v7 = vld [vmem:[%s655_s1 + $0x20] sm:$0xff]  ;;  %v51_v8 = vld [vmem:[%s655_s1 + $0x28] sm:$0xff] }
   0x3   :  { %v323_v6 = vpack.c.bf16 %v49_v5, %v48_v3  ;;  %v15_v9 = vld [vmem:[%s656_s0 + $0x8] sm:$0xff]  ;;  %v326_v11 = vpack.c.bf16 %v51_v8, %v50_v7  ;;  %v52_v12 = vld [vmem:[%s655_s1 + $0x30] sm:$0xff]  ;;  %v53_v13 = vld [vmem:[%s655_s1 + $0x38] sm:$0xff] }
   0x4   :  { %321 = vmatpush1.bf16.msra.mxu0 %v320_v4  ;;  %355 = vmatpush1.bf16.msra.mxu1 %v320_v4  ;;  %v31_v10 = vld [vmem:[%s656_s0 + $0x88] sm:$0xff]  ;;  %v329_v14 = vpack.c.bf16 %v53_v13, %v52_v12  ;;  %v54_v15 = vld [vmem:[%s655_s1 + $0x40] sm:$0xff]  ;;  %v56_v18 = vld [vmem:[%s655_s1 + $0x50] sm:$0xff] }
   0x5   :  { %322 = vmatprep.subr.bf16.mxu0 %v365_v0  ;;  %347 = vmatprep.subr.bf16.mxu1 %v365_v0  ;;  %v55_v16 = vld [vmem:[%s655_s1 + $0x48] sm:$0xff]  ;;  %v57_v19 = vld [vmem:[%s655_s1 + $0x58] sm:$0xff]  ;;  %v58_v21 = vld [vmem:[%s655_s1 + $0x60] sm:$0xff] }
   0x6   :  { %303 = vmatprep.mubr.msk.f32.mxu0 %vm71_vm0, %v15_v9  ;;  %311 = vmatprep.mubr.msk.f32.mxu1 %vm71_vm0, %v31_v10  ;;  %v332_v17 = vpack.c.bf16 %v55_v16, %v54_v15  ;;  %v335_v20 = vpack.c.bf16 %v57_v19, %v56_v18  ;;  %v59_v22 = vld [vmem:[%s655_s1 + $0x68] sm:$0xff]  ;;  %v60_v24 = vld [vmem:[%s655_s1 + $0x70] sm:$0xff]  ;;  %v61_v25 = vld [vmem:[%s655_s1 + $0x78] sm:$0xff] }
   0x7   :  { %v338_v23 = vpack.c.bf16 %v59_v22, %v58_v21  ;;  %v341_v26 = vpack.c.bf16 %v61_v25, %v60_v24  ;;  %v62_v27 = vld [vmem:[%s655_s1 + $0x80] sm:$0xff]  ;;  %v63_v28 = vld [vmem:[%s655_s1 + $0x88] sm:$0xff]  ;;  %v17_v32 = vld [vmem:[%s656_s0 + $0x18] sm:$0xff] }
   0x8   :  { %324 = vmatpush1.bf16.msra.mxu0 %v323_v6  ;;  %356 = vmatpush1.bf16.msra.mxu1 %v323_v6  ;;  %v344_v29 = vpack.c.bf16 %v63_v28, %v62_v27  ;;  %v14_v30 = vld [vmem:[%s656_s0] sm:$0xff]  ;;  %v33_v33 = vld [vmem:[%s656_s0 + $0x98] sm:$0xff]  ;;  %v16_v34 = vld [vmem:[%s656_s0 + $0x10] sm:$0xff] }
   0x9   :  { %325 = vmatprep.subr.bf16.mxu0 %v365_v0  ;;  %348 = vmatprep.subr.bf16.mxu1 %v365_v0  ;;  %v30_v31 = vld [vmem:[%s656_s0 + $0x80] sm:$0xff]  ;;  %v32_v35 = vld [vmem:[%s656_s0 + $0x90] sm:$0xff]  ;;  %v19_v36 = vld [vmem:[%s656_s0 + $0x28] sm:$0xff] }
   0xa   :  { %v35_v37 = vld [vmem:[%s656_s0 + $0xa8] sm:$0xff]  ;;  %v18_v38 = vld [vmem:[%s656_s0 + $0x20] sm:$0xff]  ;;  %v21_v40 = vld [vmem:[%s656_s0 + $0x38] sm:$0xff] }
   0xb   :  { %v34_v39 = vld [vmem:[%s656_s0 + $0xa0] sm:$0xff]  ;;  %v37_v41 = vld [vmem:[%s656_s0 + $0xb8] sm:$0xff]  ;;  %v20_v42 = vld [vmem:[%s656_s0 + $0x30] sm:$0xff] }
   0xc   :  { %327 = vmatpush1.bf16.msra.mxu0 %v326_v11  ;;  %357 = vmatpush1.bf16.msra.mxu1 %v326_v11  ;;  %v36_v43 = vld [vmem:[%s656_s0 + $0xb0] sm:$0xff]  ;;  %v23_v44 = vld [vmem:[%s656_s0 + $0x48] sm:$0xff]  ;;  %v22_v46 = vld [vmem:[%s656_s0 + $0x40] sm:$0xff] }
   0xd   :  { %328 = vmatprep.subr.bf16.mxu0 %v365_v0  ;;  %349 = vmatprep.subr.bf16.mxu1 %v365_v0  ;;  %v39_v45 = vld [vmem:[%s656_s0 + $0xc8] sm:$0xff]  ;;  %v38_v47 = vld [vmem:[%s656_s0 + $0xc0] sm:$0xff]  ;;  %v25_v48 = vld [vmem:[%s656_s0 + $0x58] sm:$0xff] }
   0xe   :  { %v41_v49 = vld [vmem:[%s656_s0 + $0xd8] sm:$0xff]  ;;  %v24_v50 = vld [vmem:[%s656_s0 + $0x50] sm:$0xff]  ;;  %v27_v52 = vld [vmem:[%s656_s0 + $0x68] sm:$0xff] }
   0xf   :  { %v40_v51 = vld [vmem:[%s656_s0 + $0xd0] sm:$0xff]  ;;  %v43_v53 = vld [vmem:[%s656_s0 + $0xe8] sm:$0xff]  ;;  %v26_v54 = vld [vmem:[%s656_s0 + $0x60] sm:$0xff] }
  0x10   :  { %330 = vmatpush1.bf16.msra.mxu0 %v329_v14  ;;  %358 = vmatpush1.bf16.msra.mxu1 %v329_v14  ;;  %v42_v55 = vld [vmem:[%s656_s0 + $0xe0] sm:$0xff]  ;;  %v29_v56 = vld [vmem:[%s656_s0 + $0x78] sm:$0xff]  ;;  %v28_v58 = vld [vmem:[%s656_s0 + $0x70] sm:$0xff] }
  0x11   :  { %331 = vmatprep.subr.bf16.mxu0 %v365_v0  ;;  %350 = vmatprep.subr.bf16.mxu1 %v365_v0  ;;  %v45_v57 = vld [vmem:[%s656_s0 + $0xf8] sm:$0xff]  ;;  %v44_v59 = vld [vmem:[%s656_s0 + $0xf0] sm:$0xff]  ;;  %v573_v60 = vld [vmem:[%s657_s2] ss:$0 sm:$0xff] }
  0x14   :  { %333 = vmatpush1.bf16.msra.mxu0 %v332_v17  ;;  %359 = vmatpush1.bf16.msra.mxu1 %v332_v17 }
  0x15   :  { %334 = vmatprep.subr.bf16.mxu0 %v365_v0  ;;  %351 = vmatprep.subr.bf16.mxu1 %v365_v0 }
  0x18   :  { %336 = vmatpush1.bf16.msra.mxu0 %v335_v20  ;;  %360 = vmatpush1.bf16.msra.mxu1 %v335_v20 }
  0x19   :  { %337 = vmatprep.subr.bf16.mxu0 %v365_v0  ;;  %352 = vmatprep.subr.bf16.mxu1 %v365_v0 }
  0x1c   :  { %339 = vmatpush1.bf16.msra.mxu0 %v338_v23  ;;  %361 = vmatpush1.bf16.msra.mxu1 %v338_v23 }
  0x1d   :  { %340 = vmatprep.subr.bf16.mxu0 %v365_v0  ;;  %353 = vmatprep.subr.bf16.mxu1 %v365_v0 }
  0x20   :  { %342 = vmatpush1.bf16.msra.mxu0 %v341_v26  ;;  %362 = vmatpush1.bf16.msra.mxu1 %v341_v26 }
  0x21   :  { %343 = vmatprep.subr.bf16.mxu0 %v365_v0  ;;  %354 = vmatprep.subr.bf16.mxu1 %v365_v0 }
  0x24   :  { %345 = vmatpush1.bf16.msra.mxu0 %v344_v29  ;;  %363 = vmatpush1.bf16.msra.mxu1 %v344_v29 }
  0x27   :  { %185 = vmatmul.mubr.f32.vlgmr.msra.gmra.mrb[0].mxu0 %v14_v30  ;;  %225 = vmatmul.mubr.f32.vlgmr.msra.gmra.mrb[0].mxu1 %v30_v31 }
  0x28   :  { %304 = vmatprep.mubr.msk.f32.mxu0 %vm71_vm0, %v17_v32  ;;  %312 = vmatprep.mubr.msk.f32.mxu1 %vm71_vm0, %v33_v33 }
  0x2b   :  { %190 = vmatmul.mubr.f32.gmra.mrb[2].mxu0 %v16_v34  ;;  %230 = vmatmul.mubr.f32.gmra.mrb[2].mxu1 %v32_v35 }
  0x2c   :  { %305 = vmatprep.mubr.msk.f32.mxu0 %vm71_vm0, %v19_v36  ;;  %313 = vmatprep.mubr.msk.f32.mxu1 %vm71_vm0, %v35_v37 }
  0x2f   :  { %195 = vmatmul.mubr.f32.gmra.mrb[4].mxu0 %v18_v38  ;;  %235 = vmatmul.mubr.f32.gmra.mrb[4].mxu1 %v34_v39 }
  0x30   :  { %306 = vmatprep.mubr.msk.f32.mxu0 %vm71_vm0, %v21_v40  ;;  %314 = vmatprep.mubr.msk.f32.mxu1 %vm71_vm0, %v37_v41 }
  0x33   :  { %200 = vmatmul.mubr.f32.gmra.mrb[6].mxu0 %v20_v42  ;;  %240 = vmatmul.mubr.f32.gmra.mrb[6].mxu1 %v36_v43 }
  0x34   :  { %307 = vmatprep.mubr.msk.f32.mxu0 %vm71_vm0, %v23_v44  ;;  %315 = vmatprep.mubr.msk.f32.mxu1 %vm71_vm0, %v39_v45 }
  0x37   :  { %205 = vmatmul.mubr.f32.gmra.mrb[8].mxu0 %v22_v46  ;;  %245 = vmatmul.mubr.f32.gmra.mrb[8].mxu1 %v38_v47 }
  0x38   :  { %308 = vmatprep.mubr.msk.f32.mxu0 %vm71_vm0, %v25_v48  ;;  %316 = vmatprep.mubr.msk.f32.mxu1 %vm71_vm0, %v41_v49 }
  0x3b   :  { %210 = vmatmul.mubr.f32.gmra.mrb[10].mxu0 %v24_v50  ;;  %250 = vmatmul.mubr.f32.gmra.mrb[10].mxu1 %v40_v51 }
  0x3c   :  { %309 = vmatprep.mubr.msk.f32.mxu0 %vm71_vm0, %v27_v52  ;;  %317 = vmatprep.mubr.msk.f32.mxu1 %vm71_vm0, %v43_v53 }
  0x3f   :  { %215 = vmatmul.mubr.f32.gmra.mrb[12].mxu0 %v26_v54  ;;  %255 = vmatmul.mubr.f32.gmra.mrb[12].mxu1 %v42_v55 }
  0x40   :  { %310 = vmatprep.mubr.msk.f32.mxu0 %vm71_vm0, %v29_v56  ;;  %318 = vmatprep.mubr.msk.f32.mxu1 %vm71_vm0, %v45_v57 }
  0x43   :  { %220 = vmatmul.mubr.f32.gmra.mrb[14].mxu0 %v28_v58  ;;  %260 = vmatmul.mubr.f32.gmra.mrb[14].mxu1 %v44_v59 }
  0xfa   :  { %v186_v61 = vpop.f32.mrb[0].mxu0  ;;  %v226_v62 = vpop.f32.mrb[0].mxu1 }
  0xfb   :  { %v187_v63 = vadd.f32 %v573_v60, %v186_v61  ;;  %v227_v0 = vadd.f32 %v573_v60, %v226_v62  ;;  %v188_v1 = vpop.f32.mrb[1].mxu0  ;;  %v228_v2 = vpop.f32.mrb[1].mxu1 }
  0xfd   :  { %v265_v3 = vmax.f32 %v187_v63, 0.0  ;;  %v273_v4 = vmax.f32 %v227_v0, 0.0 }
  0xfe   :  { %v191_v5 = vpop.f32.mrb[2].mxu0  ;;  %v231_v6 = vpop.f32.mrb[2].mxu1 }
  0xff   :  { %282 = vst.msk [vmem:[%s658_s3] sm:$0xff] %vm281_vm1, %v265_v3  ;;  %290 = vst.msk [vmem:[%s658_s3 + $0x40] sm:$0xff] %vm281_vm1, %v273_v4  ;;  %v192_v7 = vadd.f32 %v573_v60, %v191_v5  ;;  %v232_v8 = vadd.f32 %v573_v60, %v231_v6  ;;  %v193_v9 = vpop.f32.mrb[3].mxu0  ;;  %v233_v10 = vpop.f32.mrb[3].mxu1 }
 0x101   :  { %v266_v11 = vmax.f32 %v192_v7, 0.0  ;;  %v274_v12 = vmax.f32 %v232_v8, 0.0 }
 0x102   :  { %v196_v13 = vpop.f32.mrb[4].mxu0  ;;  %v236_v14 = vpop.f32.mrb[4].mxu1 }
 0x103   :  { %283 = vst.msk [vmem:[%s658_s3 + $0x8] sm:$0xff] %vm281_vm1, %v266_v11  ;;  %291 = vst.msk [vmem:[%s658_s3 + $0x48] sm:$0xff] %vm281_vm1, %v274_v12  ;;  %v197_v15 = vadd.f32 %v573_v60, %v196_v13  ;;  %v237_v16 = vadd.f32 %v573_v60, %v236_v14  ;;  %v198_v17 = vpop.f32.mrb[5].mxu0  ;;  %v238_v18 = vpop.f32.mrb[5].mxu1 }
 0x105   :  { %v267_v19 = vmax.f32 %v197_v15, 0.0  ;;  %v275_v20 = vmax.f32 %v237_v16, 0.0 }
 0x106   :  { %v201_v21 = vpop.f32.mrb[6].mxu0  ;;  %v241_v22 = vpop.f32.mrb[6].mxu1 }
 0x107   :  { %284 = vst.msk [vmem:[%s658_s3 + $0x10] sm:$0xff] %vm281_vm1, %v267_v19  ;;  %292 = vst.msk [vmem:[%s658_s3 + $0x50] sm:$0xff] %vm281_vm1, %v275_v20  ;;  %v202_v23 = vadd.f32 %v573_v60, %v201_v21  ;;  %v242_v24 = vadd.f32 %v573_v60, %v241_v22  ;;  %v203_v25 = vpop.f32.mrb[7].mxu0  ;;  %v243_v26 = vpop.f32.mrb[7].mxu1 }
 0x109   :  { %v268_v27 = vmax.f32 %v202_v23, 0.0  ;;  %v276_v28 = vmax.f32 %v242_v24, 0.0 }
 0x10a   :  { %v206_v29 = vpop.f32.mrb[8].mxu0  ;;  %v246_v30 = vpop.f32.mrb[8].mxu1 }
 0x10b   :  { %285 = vst.msk [vmem:[%s658_s3 + $0x18] sm:$0xff] %vm281_vm1, %v268_v27  ;;  %293 = vst.msk [vmem:[%s658_s3 + $0x58] sm:$0xff] %vm281_vm1, %v276_v28  ;;  %v207_v31 = vadd.f32 %v573_v60, %v206_v29  ;;  %v247_v32 = vadd.f32 %v573_v60, %v246_v30  ;;  %v208_v33 = vpop.f32.mrb[9].mxu0  ;;  %v248_v34 = vpop.f32.mrb[9].mxu1 }
 0x10d   :  { %v269_v35 = vmax.f32 %v207_v31, 0.0  ;;  %v277_v36 = vmax.f32 %v247_v32, 0.0 }
 0x10e   :  { %v211_v37 = vpop.f32.mrb[10].mxu0  ;;  %v251_v38 = vpop.f32.mrb[10].mxu1 }
 0x10f   :  { %286 = vst.msk [vmem:[%s658_s3 + $0x20] sm:$0xff] %vm281_vm1, %v269_v35  ;;  %294 = vst.msk [vmem:[%s658_s3 + $0x60] sm:$0xff] %vm281_vm1, %v277_v36  ;;  %v212_v39 = vadd.f32 %v573_v60, %v211_v37  ;;  %v252_v40 = vadd.f32 %v573_v60, %v251_v38  ;;  %v213_v41 = vpop.f32.mrb[11].mxu0  ;;  %v253_v42 = vpop.f32.mrb[11].mxu1 }
 0x111   :  { %v270_v43 = vmax.f32 %v212_v39, 0.0  ;;  %v278_v44 = vmax.f32 %v252_v40, 0.0 }
 0x112   :  { %v216_v45 = vpop.f32.mrb[12].mxu0  ;;  %v256_v46 = vpop.f32.mrb[12].mxu1 }
 0x113   :  { %287 = vst.msk [vmem:[%s658_s3 + $0x28] sm:$0xff] %vm281_vm1, %v270_v43  ;;  %295 = vst.msk [vmem:[%s658_s3 + $0x68] sm:$0xff] %vm281_vm1, %v278_v44  ;;  %v217_v47 = vadd.f32 %v573_v60, %v216_v45  ;;  %v257_v48 = vadd.f32 %v573_v60, %v256_v46  ;;  %v218_v49 = vpop.f32.mrb[13].mxu0  ;;  %v258_v50 = vpop.f32.mrb[13].mxu1 }
 0x115   :  { %v271_v51 = vmax.f32 %v217_v47, 0.0  ;;  %v279_v52 = vmax.f32 %v257_v48, 0.0 }
 0x116   :  { %v221_v53 = vpop.f32.mrb[14].mxu0  ;;  %v261_v54 = vpop.f32.mrb[14].mxu1 }
 0x117   :  { %288 = vst.msk [vmem:[%s658_s3 + $0x30] sm:$0xff] %vm281_vm1, %v271_v51  ;;  %296 = vst.msk [vmem:[%s658_s3 + $0x70] sm:$0xff] %vm281_vm1, %v279_v52  ;;  %v222_v55 = vadd.f32 %v573_v60, %v221_v53  ;;  %v262_v56 = vadd.f32 %v573_v60, %v261_v54  ;;  %v223_v57 = vpop.f32.mrb[15].mxu0  ;;  %v263_v58 = vpop.f32.mrb[15].mxu1 }
 0x119   :  { %v272_v59 = vmax.f32 %v222_v55, 0.0  ;;  %v280_v61 = vmax.f32 %v262_v56, 0.0 }
 0x11b   :  { %289 = vst.msk [vmem:[%s658_s3 + $0x38] sm:$0xff] %vm281_vm1, %v272_v59  ;;  %297 = vst.msk [vmem:[%s658_s3 + $0x78] sm:$0xff] %vm281_vm1, %v280_v61 }

// kernel: forward.7
= control target key start
LH: loop header
LB: loop body
LE: loop exit
PB: predicated region body
PF: predicated region fallthrough
CT: control target
= control target key end

     0   :  { %v9831_v3 = vmov 0.0|0.0   ;;  %vm9832_vm0 = vmmov 0   ;;  %v9833_v6 = vmov 0.0   ;;  %s10796_s0 = inlined_call_operand.vmem [shape: f32[32,2,32], index: 0, kind: input, shape index: {}]   ;;  %s10797_s1 = inlined_call_operand.vmem [shape: f32[2,32,32], index: 1, kind: input, shape index: {}]   ;;  %s10798_s2 = inlined_call_operand.vmem [shape: f32[1,32,32], index: 2, kind: input, shape index: {}]   ;;  %s10799_s3 = inlined_call_operand.vmem [shape: f32[1,1,32], index: 3, kind: input, shape index: {}]   ;;  %s10800_s4 = inlined_call_operand.vmem [shape: f32[32,512], index: 4, kind: input, shape index: {}]   ;;  %s10801_s5 = inlined_call_operand.vmem [shape: f32[1,512], index: 5, kind: input, shape index: {}]   ;;  %s10802_s6 = inlined_call_operand.hbm [shape: f32[2,512], index: 6, kind: output, shape index: {}]  }
   0x1   :  { %v24_v0 = vld [vmem:[%s10797_s1] sm:$0xff]  ;;  %v25_v1 = vld [vmem:[%s10797_s1 + $0x8] sm:$0xff]  ;;  %v26_v2 = vld [vmem:[%s10797_s1 + $0x10] sm:$0xff]  ;;  %9065 = vmatprep.subr.bf16.mxu0 %v9831_v3  ;;  %8017 = vmatprep.mubr.msk.f32.mxu0 %vm9832_vm0, %v9833_v6 }
   0x2   :  { %v9881_v4 = vpack.c.bf16 %v25_v1, %v24_v0  ;;  %v27_v5 = vld [vmem:[%s10797_s1 + $0x18] sm:$0xff]  ;;  %v7393_v7 = vld [vmem:[%s10797_s1 + $0x20] sm:$0xff]  ;;  %v7394_v8 = vld [vmem:[%s10797_s1 + $0x28] sm:$0xff]  ;;  %9071 = vmatprep.subr.bf16.mxu1 %v9831_v3  ;;  %8028 = vmatprep.mubr.msk.f32.mxu1 %vm9832_vm0, %v9833_v6 }
   0x3   :  { %v9895_v9 = vpack.c.bf16 %v7394_v8, %v7393_v7 }
   0x4   :  { %11 = vsyncpa [#allocation3], 0  ;;  %9067 = vmatpush3.bf16.msra.mxu0 %v9881_v4  ;;  %v9900_v10 = vpack.c.bf16 %v27_v5, %v26_v2  ;;  %v7395_v11 = vld [vmem:[%s10797_s1 + $0x30] sm:$0xff]  ;;  %v7396_v12 = vld [vmem:[%s10797_s1 + $0x38] sm:$0xff]  ;;  %vm45_vm1 = vcmask 261120  }
   0x5   :  { %9068 = vmatprep.subr.bf16.mxu0 %v9831_v3  ;;  %9073 = vmatpush3.bf16.msra.mxu1 %v9895_v9  ;;  %v9916_v13 = vpack.c.bf16 %v7396_v12, %v7395_v11  ;;  %v28_v14 = vld [vmem:[%s10798_s2] sm:$0xff]  ;;  %v29_v15 = vld [vmem:[%s10798_s2 + $0x8] sm:$0xff]  ;;  %v30_v16 = vld [vmem:[%s10798_s2 + $0x10] sm:$0xff] }
   0x6   :  { %9074 = vmatprep.subr.bf16.mxu1 %v9831_v3  ;;  %v9929_v17 = vpack.c.bf16 %v29_v15, %v28_v14  ;;  %v31_v18 = vld [vmem:[%s10798_s2 + $0x18] sm:$0xff]  ;;  %v44_v20 = vld [vmem:[%s10796_s0] sm:$0x3]  ;;  %v7399_v27 = vld [vmem:[%s10796_s0 + $0x2] sm:$0x3] }
   0x7   :  { %v9936_v19 = vpack.c.bf16 %v31_v18, %v30_v16  ;;  %v9970_v28 = vld [vmem:[%s10799_s3] ss:$0 sm:$0xff]  ;;  %v7403_v44 = vld [vmem:[%s10796_s0 + $0x4] sm:$0x3]  ;;  %v7407_v53 = vld [vmem:[%s10796_s0 + $0x6] sm:$0x3] }
   0x8   :  { %9070 = vmatpush3.bf16.msra.mxu0 %v9900_v10  ;;  %v7411_v7 = vld [vmem:[%s10796_s0 + $0x8] sm:$0x3] }
   0x9   :  { %9077 = vmatprep.subr.bf16.mxu0 %v9831_v3  ;;  %9076 = vmatpush3.bf16.msra.mxu1 %v9916_v13 }
   0xa   :  { %9083 = vmatprep.subr.bf16.mxu1 %v9831_v3 }
   0xb   :  { %8018 = vmatmul.mubr.f32.vlgmr.msra.gmra.mrb[0].mxu0 %v9833_v6 }
   0xc   :  { %8039 = vmatprep.mubr.msk.f32.mxu0 %vm9832_vm0, %v9833_v6  ;;  %8029 = vmatmul.mubr.f32.vlgmr.msra.gmra.mrb[0].mxu1 %v9833_v6 }
   0xd   :  { %9079 = vmatpush3.bf16.msra.mxu0 %v9929_v17  ;;  %9085 = vmatpush3.bf16.msra.mxu1 %v9881_v4 }
   0xe   :  { %9080 = vmatprep.subr.bf16.mxu0 %v9831_v3  ;;  %9086 = vmatprep.subr.bf16.mxu1 %v9831_v3 }
   0xf   :  { %8050 = vmatprep.mubr.msk.f32.mxu1 %vm9832_vm0, %v9833_v6 }
  0x11   :  { %9082 = vmatpush3.bf16.msra.mxu0 %v9936_v19  ;;  %9088 = vmatpush3.bf16.msra.mxu1 %v9900_v10 }
  0x12   :  { %9089 = vmatprep.subr.bf16.mxu0 %v9831_v3  ;;  %9095 = vmatprep.subr.bf16.mxu1 %v9831_v3 }
  0xde   :  { %v115_v21 = vpop.f32.mrb[0].mxu0 }
  0xdf   :  { %v119_v22 = vadd.f32 %v115_v21, %v44_v20  ;;  %v8019_v23 = vpop.f32.mrb[1].mxu0  ;;  %v187_v25 = vpop.f32.mrb[0].mxu1 }
  0xe0   :  { %v8030_v26 = vpop.f32.mrb[1].mxu1  ;;  %v7415_v23 = vld [vmem:[%s10796_s0 + $0xa] sm:$0x3] }
  0xe1   :  { %9662 = vtanh.f32 %v119_v22 }
  0xeb   :  { %v9663_v24 = vpop.eup %9662 }
  0xec   :  { %8040 = vmatmul.mubr.msk.f32.vlgmr.msra.gmra.mrb[2].mxu0 %vm45_vm1, %v9663_v24  ;;  %8051 = vmatmul.mubr.msk.f32.vlgmr.msra.gmra.mrb[2].mxu1 %vm45_vm1, %v9663_v24 }
  0xed   :  { %9097 = vmatpush3.bf16.msra.mxu1 %v9929_v17  ;;  %9091 = vmatpush3.bf16.msra.mxu0 %v9895_v9 }
  0xee   :  { %9098 = vmatprep.subr.bf16.mxu1 %v9831_v3  ;;  %9092 = vmatprep.subr.bf16.mxu0 %v9831_v3 }
  0xef   :  { %8072 = vmatprep.mubr.msk.f32.mxu1 %vm9832_vm0, %v9833_v6  ;;  %8061 = vmatprep.mubr.msk.f32.mxu0 %vm9832_vm0, %v9833_v6 }
  0xf1   :  { %9100 = vmatpush3.bf16.msra.mxu1 %v9936_v19  ;;  %9094 = vmatpush3.bf16.msra.mxu0 %v9916_v13 }
  0xf2   :  { %9101 = vmatprep.subr.bf16.mxu0 %v9831_v3  ;;  %9107 = vmatprep.subr.bf16.mxu1 %v9831_v3 }
 0x1bf   :  { %v260_v29 = vpop.f32.mrb[2].mxu0  ;;  %v334_v30 = vpop.f32.mrb[2].mxu1 }
 0x1c0   :  { %v261_v31 = vadd.f32 %v260_v29, %v187_v25  ;;  %v338_v32 = vadd.f32 %v7399_v27, %v334_v30  ;;  %v8041_v33 = vpop.f32.mrb[3].mxu0  ;;  %v8052_v34 = vpop.f32.mrb[3].mxu1 }
 0x1c2   :  { %v264_v35 = vadd.f32 %v9970_v28, %v261_v31  ;;  %9664 = vtanh.f32 %v338_v32 }
 0x1c4   :  { %9666 = vtanh.f32 %v264_v35 }
 0x1cc   :  { %v9665_v36 = vpop.eup %9664 }
 0x1cd   :  { %8073 = vmatmul.mubr.msk.f32.vlgmr.msra.gmra.mrb[4].mxu1 %vm45_vm1, %v9665_v36 }
 0x1ce   :  { %v9667_v37 = vpop.eup %9666  ;;  %9109 = vmatpush3.bf16.msra.mxu1 %v9895_v9  ;;  %8094 = vmatprep.mubr.msk.f32.mxu1 %vm9832_vm0, %v9833_v6 }
 0x1cf   :  { %8062 = vmatmul.mubr.msk.f32.vlgmr.msra.gmra.mrb[4].mxu0 %vm45_vm1, %v9667_v37  ;;  %9110 = vmatprep.subr.bf16.mxu1 %v9831_v3  ;;  %v7419_v37 = vld [vmem:[%s10796_s0 + $0xc] sm:$0x3] }
 0x1d0   :  { %9103 = vmatpush3.bf16.msra.mxu0 %v9881_v4  ;;  %8083 = vmatprep.mubr.msk.f32.mxu0 %vm9832_vm0, %v9833_v6 }
 0x1d1   :  { %9104 = vmatprep.subr.bf16.mxu0 %v9831_v3 }
 0x1d2   :  { %9112 = vmatpush3.bf16.msra.mxu1 %v9916_v13 }
 0x1d3   :  { %9119 = vmatprep.subr.bf16.mxu1 %v9831_v3 }
 0x1d4   :  { %9106 = vmatpush3.bf16.msra.mxu0 %v9900_v10 }
 0x1d5   :  { %9113 = vmatprep.subr.bf16.mxu0 %v9831_v3 }
 0x1d7   :  { %8084 = vmatmul.mubr.msk.f32.vlgmr.msra.gmra.mrb[6].mxu0 %vm45_vm1, %v9665_v36 }
 0x1d8   :  { %9115 = vmatpush3.bf16.msra.mxu0 %v9929_v17  ;;  %8105 = vmatprep.mubr.msk.f32.mxu0 %vm9832_vm0, %v9833_v6 }
 0x1d9   :  { %9116 = vmatprep.subr.bf16.mxu0 %v9831_v3 }
 0x1dc   :  { %9118 = vmatpush3.bf16.msra.mxu0 %v9936_v19 }
 0x1dd   :  { %9125 = vmatprep.subr.bf16.mxu0 %v9831_v3 }
 0x2a0   :  { %v482_v38 = vpop.f32.mrb[4].mxu1 }
 0x2a1   :  { %v8074_v39 = vpop.f32.mrb[5].mxu1 }
 0x2a2   :  { %v409_v40 = vpop.f32.mrb[4].mxu0 }
 0x2a3   :  { %v483_v41 = vadd.f32 %v482_v38, %v409_v40  ;;  %v8063_v42 = vpop.f32.mrb[5].mxu0 }
 0x2a5   :  { %v486_v43 = vadd.f32 %v9970_v28, %v483_v41 }
 0x2a7   :  { %9668 = vtanh.f32 %v486_v43 }
 0x2aa   :  { %v556_v45 = vpop.f32.mrb[6].mxu0 }
 0x2ab   :  { %v560_v46 = vadd.f32 %v7403_v44, %v556_v45  ;;  %v8085_v47 = vpop.f32.mrb[7].mxu0 }
 0x2ad   :  { %9670 = vtanh.f32 %v560_v46 }
 0x2b1   :  { %v9669_v48 = vpop.eup %9668 }
 0x2b2   :  { %8095 = vmatmul.mubr.msk.f32.vlgmr.msra.gmra.mrb[6].mxu1 %vm45_vm1, %v9669_v48  ;;  %v7423_v48 = vld [vmem:[%s10796_s0 + $0xe] sm:$0x3] }
 0x2b3   :  { %9121 = vmatpush3.bf16.msra.mxu1 %v9881_v4  ;;  %8116 = vmatprep.mubr.msk.f32.mxu1 %vm9832_vm0, %v9833_v6 }
 0x2b4   :  { %9122 = vmatprep.subr.bf16.mxu1 %v9831_v3 }
 0x2b7   :  { %v9671_v49 = vpop.eup %9670  ;;  %9124 = vmatpush3.bf16.msra.mxu1 %v9900_v10 }
 0x2b8   :  { %8106 = vmatmul.mubr.msk.f32.vlgmr.msra.gmra.mrb[8].mxu0 %vm45_vm1, %v9671_v49  ;;  %9131 = vmatprep.subr.bf16.mxu1 %v9831_v3 }
 0x2b9   :  { %9127 = vmatpush3.bf16.msra.mxu0 %v9895_v9  ;;  %8127 = vmatprep.mubr.msk.f32.mxu0 %vm9832_vm0, %v9833_v6 }
 0x2ba   :  { %8117 = vmatmul.mubr.msk.f32.vlgmr.msra.gmra.mrb[8].mxu1 %vm45_vm1, %v9671_v49  ;;  %9128 = vmatprep.subr.bf16.mxu0 %v9831_v3 }
 0x2bb   :  { %9133 = vmatpush3.bf16.msra.mxu1 %v9929_v17  ;;  %8138 = vmatprep.mubr.msk.f32.mxu1 %vm9832_vm0, %v9833_v6 }
 0x2bc   :  { %9134 = vmatprep.subr.bf16.mxu1 %v9831_v3 }
 0x2bd   :  { %9130 = vmatpush3.bf16.msra.mxu0 %v9916_v13 }
 0x2be   :  { %9137 = vmatprep.subr.bf16.mxu0 %v9831_v3 }
 0x2bf   :  { %9136 = vmatpush3.bf16.msra.mxu1 %v9936_v19 }
 0x2c0   :  { %9143 = vmatprep.subr.bf16.mxu1 %v9831_v3 }
 0x385   :  { %v631_v50 = vpop.f32.mrb[6].mxu1 }
 0x386   :  { %v8096_v51 = vpop.f32.mrb[7].mxu1 }
 0x38b   :  { %v704_v52 = vpop.f32.mrb[8].mxu0 }
 0x38c   :  { %v705_v54 = vadd.f32 %v704_v52, %v631_v50  ;;  %v8107_v55 = vpop.f32.mrb[9].mxu0 }
 0x38d   :  { %v778_v56 = vpop.f32.mrb[8].mxu1 }
 0x38e   :  { %v708_v57 = vadd.f32 %v9970_v28, %v705_v54  ;;  %v782_v58 = vadd.f32 %v7407_v53, %v778_v56  ;;  %v8118_v59 = vpop.f32.mrb[9].mxu1 }
 0x390   :  { %9672 = vtanh.f32 %v708_v57 }
 0x391   :  { %9674 = vtanh.f32 %v782_v58 }
 0x39a   :  { %v9673_v60 = vpop.eup %9672 }
 0x39b   :  { %v9675_v61 = vpop.eup %9674  ;;  %8128 = vmatmul.mubr.msk.f32.vlgmr.msra.gmra.mrb[10].mxu0 %vm45_vm1, %v9673_v60 }
 0x39c   :  { %8139 = vmatmul.mubr.msk.f32.vlgmr.msra.gmra.mrb[10].mxu1 %vm45_vm1, %v9675_v61  ;;  %9139 = vmatpush3.bf16.msra.mxu0 %v9881_v4 }
 0x39d   :  { %9140 = vmatprep.subr.bf16.mxu0 %v9831_v3  ;;  %8149 = vmatprep.mubr.msk.f32.mxu0 %vm9832_vm0, %v9833_v6 }
 0x39e   :  { %9145 = vmatpush3.bf16.msra.mxu1 %v9895_v9  ;;  %8160 = vmatprep.mubr.msk.f32.mxu1 %vm9832_vm0, %v9833_v6 }
 0x39f   :  { %9146 = vmatprep.subr.bf16.mxu1 %v9831_v3 }
 0x3a0   :  { %9142 = vmatpush3.bf16.msra.mxu0 %v9900_v10 }
 0x3a1   :  { %9149 = vmatprep.subr.bf16.mxu0 %v9831_v3 }
 0x3a2   :  { %9148 = vmatpush3.bf16.msra.mxu1 %v9916_v13 }
 0x3a3   :  { %8150 = vmatmul.mubr.msk.f32.vlgmr.msra.gmra.mrb[12].mxu0 %vm45_vm1, %v9675_v61  ;;  %9155 = vmatprep.subr.bf16.mxu1 %v9831_v3  ;;  %v7427_v61 = vld [vmem:[%s10796_s0 + $0x10] sm:$0x3] }
 0x3a4   :  { %9151 = vmatpush3.bf16.msra.mxu0 %v9929_v17  ;;  %8171 = vmatprep.mubr.msk.f32.mxu0 %vm9832_vm0, %v9833_v6 }
 0x3a5   :  { %9152 = vmatprep.subr.bf16.mxu0 %v9831_v3 }
 0x3a8   :  { %9154 = vmatpush3.bf16.msra.mxu0 %v9936_v19 }
 0x3a9   :  { %9161 = vmatprep.subr.bf16.mxu0 %v9831_v3 }
 0x46e   :  { %v853_v62 = vpop.f32.mrb[10].mxu0 }
 0x46f   :  { %v926_v63 = vpop.f32.mrb[10].mxu1  ;;  %v8129_v0 = vpop.f32.mrb[11].mxu0 }
 0x470   :  { %v927_v1 = vadd.f32 %v926_v63, %v853_v62  ;;  %v8140_v2 = vpop.f32.mrb[11].mxu1 }
 0x472   :  { %v930_v5 = vadd.f32 %v9970_v28, %v927_v1 }
 0x474   :  { %9676 = vtanh.f32 %v930_v5 }
 0x476   :  { %v1000_v8 = vpop.f32.mrb[12].mxu0 }
 0x477   :  { %v1004_v11 = vadd.f32 %v7411_v7, %v1000_v8  ;;  %v8151_v12 = vpop.f32.mrb[13].mxu0 }
 0x479   :  { %9678 = vtanh.f32 %v1004_v11 }
 0x47e   :  { %v9677_v14 = vpop.eup %9676 }
 0x47f   :  { %8161 = vmatmul.mubr.msk.f32.vlgmr.msra.gmra.mrb[12].mxu1 %vm45_vm1, %v9677_v14  ;;  %v7431_v14 = vld [vmem:[%s10796_s0 + $0x12] sm:$0x3] }
 0x480   :  { %9157 = vmatpush3.bf16.msra.mxu1 %v9881_v4  ;;  %8182 = vmatprep.mubr.msk.f32.mxu1 %vm9832_vm0, %v9833_v6 }
 0x481   :  { %9158 = vmatprep.subr.bf16.mxu1 %v9831_v3 }
 0x483   :  { %v9679_v15 = vpop.eup %9678 }
 0x484   :  { %9160 = vmatpush3.bf16.msra.mxu1 %v9900_v10  ;;  %8172 = vmatmul.mubr.msk.f32.vlgmr.msra.gmra.mrb[14].mxu0 %vm45_vm1, %v9679_v15 }
 0x485   :  { %9163 = vmatpush3.bf16.msra.mxu0 %v9895_v9  ;;  %9167 = vmatprep.subr.bf16.mxu1 %v9831_v3 }
 0x486   :  { %9164 = vmatprep.subr.bf16.mxu0 %v9831_v3  ;;  %8193 = vmatprep.mubr.msk.f32.mxu0 %vm9832_vm0, %v9833_v6 }
 0x487   :  { %8183 = vmatmul.mubr.msk.f32.vlgmr.msra.gmra.mrb[14].mxu1 %vm45_vm1, %v9679_v15 }
 0x488   :  { %9169 = vmatpush3.bf16.msra.mxu1 %v9929_v17  ;;  %8204 = vmatprep.mubr.msk.f32.mxu1 %vm9832_vm0, %v9833_v6 }
 0x489   :  { %9166 = vmatpush3.bf16.msra.mxu0 %v9916_v13  ;;  %9170 = vmatprep.subr.bf16.mxu1 %v9831_v3 }
 0x48a   :  { %9173 = vmatprep.subr.bf16.mxu0 %v9831_v3 }
 0x48c   :  { %9172 = vmatpush3.bf16.msra.mxu1 %v9936_v19 }
 0x48d   :  { %9179 = vmatprep.subr.bf16.mxu1 %v9831_v3 }
 0x552   :  { %v1075_v16 = vpop.f32.mrb[12].mxu1 }
 0x553   :  { %v8162_v18 = vpop.f32.mrb[13].mxu1 }
 0x557   :  { %v1148_v20 = vpop.f32.mrb[14].mxu0 }
 0x558   :  { %v1149_v21 = vadd.f32 %v1148_v20, %v1075_v16  ;;  %v8173_v22 = vpop.f32.mrb[15].mxu0 }
 0x55a   :  { %v1152_v24 = vadd.f32 %v9970_v28, %v1149_v21  ;;  %v1222_v25 = vpop.f32.mrb[14].mxu1 }
 0x55b   :  { %v1226_v26 = vadd.f32 %v7415_v23, %v1222_v25  ;;  %v8184_v27 = vpop.f32.mrb[15].mxu1 }
 0x55c   :  { %9680 = vtanh.f32 %v1152_v24 }
 0x55d   :  { %9682 = vtanh.f32 %v1226_v26 }
 0x566   :  { %v9681_v29 = vpop.eup %9680 }
 0x567   :  { %v9683_v30 = vpop.eup %9682  ;;  %8194 = vmatmul.mubr.msk.f32.vlgmr.msra.gmra.mrb[16].mxu0 %vm45_vm1, %v9681_v29 }
 0x568   :  { %8205 = vmatmul.mubr.msk.f32.vlgmr.msra.gmra.mrb[16].mxu1 %vm45_vm1, %v9683_v30  ;;  %9175 = vmatpush3.bf16.msra.mxu0 %v9881_v4 }
 0x569   :  { %9176 = vmatprep.subr.bf16.mxu0 %v9831_v3  ;;  %8215 = vmatprep.mubr.msk.f32.mxu0 %vm9832_vm0, %v9833_v6 }
 0x56a   :  { %9181 = vmatpush3.bf16.msra.mxu1 %v9895_v9  ;;  %8226 = vmatprep.mubr.msk.f32.mxu1 %vm9832_vm0, %v9833_v6 }
 0x56b   :  { %9182 = vmatprep.subr.bf16.mxu1 %v9831_v3 }
 0x56c   :  { %9178 = vmatpush3.bf16.msra.mxu0 %v9900_v10 }
 0x56d   :  { %9185 = vmatprep.subr.bf16.mxu0 %v9831_v3 }
 0x56e   :  { %9184 = vmatpush3.bf16.msra.mxu1 %v9916_v13 }
 0x56f   :  { %8216 = vmatmul.mubr.msk.f32.vlgmr.msra.gmra.mrb[18].mxu0 %vm45_vm1, %v9683_v30  ;;  %9191 = vmatprep.subr.bf16.mxu1 %v9831_v3  ;;  %v7435_v30 = vld [vmem:[%s10796_s0 + $0x14] sm:$0x3] }
 0x570   :  { %9187 = vmatpush3.bf16.msra.mxu0 %v9929_v17  ;;  %8237 = vmatprep.mubr.msk.f32.mxu0 %vm9832_vm0, %v9833_v6 }
 0x571   :  { %9188 = vmatprep.subr.bf16.mxu0 %v9831_v3 }
 0x574   :  { %9190 = vmatpush3.bf16.msra.mxu0 %v9936_v19 }
 0x575   :  { %9197 = vmatprep.subr.bf16.mxu0 %v9831_v3 }
 0x63a   :  { %v1297_v31 = vpop.f32.mrb[16].mxu0 }
 0x63b   :  { %v1370_v32 = vpop.f32.mrb[16].mxu1  ;;  %v8195_v33 = vpop.f32.mrb[17].mxu0 }
 0x63c   :  { %v1371_v34 = vadd.f32 %v1370_v32, %v1297_v31  ;;  %v8206_v35 = vpop.f32.mrb[17].mxu1 }
 0x63e   :  { %v1374_v36 = vadd.f32 %v9970_v28, %v1371_v34 }
 0x640   :  { %9684 = vtanh.f32 %v1374_v36 }
 0x642   :  { %v1444_v38 = vpop.f32.mrb[18].mxu0 }
 0x643   :  { %v1448_v39 = vadd.f32 %v7419_v37, %v1444_v38  ;;  %v8217_v40 = vpop.f32.mrb[19].mxu0 }
 0x645   :  { %9686 = vtanh.f32 %v1448_v39 }
 0x64a   :  { %v9685_v41 = vpop.eup %9684 }
 0x64b   :  { %8227 = vmatmul.mubr.msk.f32.vlgmr.msra.gmra.mrb[18].mxu1 %vm45_vm1, %v9685_v41  ;;  %v7439_v41 = vld [vmem:[%s10796_s0 + $0x16] sm:$0x3] }
 0x64c   :  { %9193 = vmatpush3.bf16.msra.mxu1 %v9881_v4  ;;  %8248 = vmatprep.mubr.msk.f32.mxu1 %vm9832_vm0, %v9833_v6 }
 0x64d   :  { %9194 = vmatprep.subr.bf16.mxu1 %v9831_v3 }
 0x64f   :  { %v9687_v42 = vpop.eup %9686 }
 0x650   :  { %9196 = vmatpush3.bf16.msra.mxu1 %v9900_v10  ;;  %8238 = vmatmul.mubr.msk.f32.vlgmr.msra.gmra.mrb[20].mxu0 %vm45_vm1, %v9687_v42 }
 0x651   :  { %9199 = vmatpush3.bf16.msra.mxu0 %v9895_v9  ;;  %9203 = vmatprep.subr.bf16.mxu1 %v9831_v3 }
 0x652   :  { %9200 = vmatprep.subr.bf16.mxu0 %v9831_v3  ;;  %8259 = vmatprep.mubr.msk.f32.mxu0 %vm9832_vm0, %v9833_v6 }
 0x653   :  { %8249 = vmatmul.mubr.msk.f32.vlgmr.msra.gmra.mrb[20].mxu1 %vm45_vm1, %v9687_v42 }
 0x654   :  { %9205 = vmatpush3.bf16.msra.mxu1 %v9929_v17  ;;  %8270 = vmatprep.mubr.msk.f32.mxu1 %vm9832_vm0, %v9833_v6 }
 0x655   :  { %9202 = vmatpush3.bf16.msra.mxu0 %v9916_v13  ;;  %9206 = vmatprep.subr.bf16.mxu1 %v9831_v3 }
 0x656   :  { %9209 = vmatprep.subr.bf16.mxu0 %v9831_v3 }
 0x658   :  { %9208 = vmatpush3.bf16.msra.mxu1 %v9936_v19 }
 0x659   :  { %9215 = vmatprep.subr.bf16.mxu1 %v9831_v3 }
 0x71e   :  { %v1519_v43 = vpop.f32.mrb[18].mxu1 }
 0x71f   :  { %v8228_v44 = vpop.f32.mrb[19].mxu1 }
 0x723   :  { %v1592_v45 = vpop.f32.mrb[20].mxu0 }
 0x724   :  { %v1593_v46 = vadd.f32 %v1592_v45, %v1519_v43  ;;  %v8239_v47 = vpop.f32.mrb[21].mxu0 }
 0x726   :  { %v1596_v49 = vadd.f32 %v9970_v28, %v1593_v46  ;;  %v1666_v50 = vpop.f32.mrb[20].mxu1 }
 0x727   :  { %v1670_v51 = vadd.f32 %v7423_v48, %v1666_v50  ;;  %v8250_v52 = vpop.f32.mrb[21].mxu1 }
 0x728   :  { %9688 = vtanh.f32 %v1596_v49 }
 0x729   :  { %9690 = vtanh.f32 %v1670_v51 }
 0x732   :  { %v9689_v53 = vpop.eup %9688 }
 0x733   :  { %v9691_v54 = vpop.eup %9690  ;;  %8260 = vmatmul.mubr.msk.f32.vlgmr.msra.gmra.mrb[22].mxu0 %vm45_vm1, %v9689_v53 }
 0x734   :  { %8271 = vmatmul.mubr.msk.f32.vlgmr.msra.gmra.mrb[22].mxu1 %vm45_vm1, %v9691_v54  ;;  %9211 = vmatpush3.bf16.msra.mxu0 %v9881_v4 }
 0x735   :  { %9212 = vmatprep.subr.bf16.mxu0 %v9831_v3  ;;  %8281 = vmatprep.mubr.msk.f32.mxu0 %vm9832_vm0, %v9833_v6 }
 0x736   :  { %9217 = vmatpush3.bf16.msra.mxu1 %v9895_v9  ;;  %8292 = vmatprep.mubr.msk.f32.mxu1 %vm9832_vm0, %v9833_v6 }
 0x737   :  { %9218 = vmatprep.subr.bf16.mxu1 %v9831_v3 }
 0x738   :  { %9214 = vmatpush3.bf16.msra.mxu0 %v9900_v10 }
 0x739   :  { %9221 = vmatprep.subr.bf16.mxu0 %v9831_v3 }
 0x73a   :  { %9220 = vmatpush3.bf16.msra.mxu1 %v9916_v13 }
 0x73b   :  { %8282 = vmatmul.mubr.msk.f32.vlgmr.msra.gmra.mrb[24].mxu0 %vm45_vm1, %v9691_v54  ;;  %9227 = vmatprep.subr.bf16.mxu1 %v9831_v3  ;;  %v7443_v54 = vld [vmem:[%s10796_s0 + $0x18] sm:$0x3] }
 0x73c   :  { %9223 = vmatpush3.bf16.msra.mxu0 %v9929_v17  ;;  %8303 = vmatprep.mubr.msk.f32.mxu0 %vm9832_vm0, %v9833_v6 }
 0x73d   :  { %9224 = vmatprep.subr.bf16.mxu0 %v9831_v3 }
 0x740   :  { %9226 = vmatpush3.bf16.msra.mxu0 %v9936_v19 }
 0x741   :  { %9233 = vmatprep.subr.bf16.mxu0 %v9831_v3 }
 0x806   :  { %v1741_v55 = vpop.f32.mrb[22].mxu0 }
 0x807   :  { %v1814_v56 = vpop.f32.mrb[22].mxu1  ;;  %v8261_v57 = vpop.f32.mrb[23].mxu0 }
 0x808   :  { %v1815_v58 = vadd.f32 %v1814_v56, %v1741_v55  ;;  %v8272_v59 = vpop.f32.mrb[23].mxu1 }
 0x80a   :  { %v1818_v60 = vadd.f32 %v9970_v28, %v1815_v58 }
 0x80c   :  { %9692 = vtanh.f32 %v1818_v60 }
 0x80e   :  { %v1888_v62 = vpop.f32.mrb[24].mxu0 }
 0x80f   :  { %v1892_v63 = vadd.f32 %v7427_v61, %v1888_v62  ;;  %v8283_v0 = vpop.f32.mrb[25].mxu0 }
 0x811   :  { %9694 = vtanh.f32 %v1892_v63 }
 0x816   :  { %v9693_v1 = vpop.eup %9692 }
 0x817   :  { %8293 = vmatmul.mubr.msk.f32.vlgmr.msra.gmra.mrb[24].mxu1 %vm45_vm1, %v9693_v1  ;;  %v7447_v1 = vld [vmem:[%s10796_s0 + $0x1a] sm:$0x3] }
 0x818   :  { %9229 = vmatpush3.bf16.msra.mxu1 %v9881_v4  ;;  %8314 = vmatprep.mubr.msk.f32.mxu1 %vm9832_vm0, %v9833_v6 }
 0x819   :  { %9230 = vmatprep.subr.bf16.mxu1 %v9831_v3 }
 0x81b   :  { %v9695_v2 = vpop.eup %9694 }
 0x81c   :  { %9232 = vmatpush3.bf16.msra.mxu1 %v9900_v10  ;;  %8304 = vmatmul.mubr.msk.f32.vlgmr.msra.gmra.mrb[26].mxu0 %vm45_vm1, %v9695_v2 }
 0x81d   :  { %9235 = vmatpush3.bf16.msra.mxu0 %v9895_v9  ;;  %9239 = vmatprep.subr.bf16.mxu1 %v9831_v3 }
 0x81e   :  { %9236 = vmatprep.subr.bf16.mxu0 %v9831_v3  ;;  %8325 = vmatprep.mubr.msk.f32.mxu0 %vm9832_vm0, %v9833_v6 }
 0x81f   :  { %8315 = vmatmul.mubr.msk.f32.vlgmr.msra.gmra.mrb[26].mxu1 %vm45_vm1, %v9695_v2 }
 0x820   :  { %9241 = vmatpush3.bf16.msra.mxu1 %v9929_v17  ;;  %8336 = vmatprep.mubr.msk.f32.mxu1 %vm9832_vm0, %v9833_v6 }
 0x821   :  { %9238 = vmatpush3.bf16.msra.mxu0 %v9916_v13  ;;  %9242 = vmatprep.subr.bf16.mxu1 %v9831_v3 }
 0x822   :  { %9245 = vmatprep.subr.bf16.mxu0 %v9831_v3 }
 0x824   :  { %9244 = vmatpush3.bf16.msra.mxu1 %v9936_v19 }
 0x825   :  { %9251 = vmatprep.subr.bf16.mxu1 %v9831_v3 }
 0x8ea   :  { %v1963_v5 = vpop.f32.mrb[24].mxu1 }
 0x8eb   :  { %v8294_v7 = vpop.f32.mrb[25].mxu1 }
 0x8ef   :  { %v2036_v8 = vpop.f32.mrb[26].mxu0 }
 0x8f0   :  { %v2037_v11 = vadd.f32 %v2036_v8, %v1963_v5  ;;  %v8305_v12 = vpop.f32.mrb[27].mxu0 }
 0x8f2   :  { %v2040_v15 = vadd.f32 %v9970_v28, %v2037_v11  ;;  %v2110_v16 = vpop.f32.mrb[26].mxu1 }
 0x8f3   :  { %v2114_v18 = vadd.f32 %v7431_v14, %v2110_v16  ;;  %v8316_v20 = vpop.f32.mrb[27].mxu1 }
 0x8f4   :  { %9696 = vtanh.f32 %v2040_v15 }
 0x8f5   :  { %9698 = vtanh.f32 %v2114_v18 }
 0x8fe   :  { %v9697_v21 = vpop.eup %9696 }
 0x8ff   :  { %v9699_v22 = vpop.eup %9698  ;;  %8326 = vmatmul.mubr.msk.f32.vlgmr.msra.gmra.mrb[28].mxu0 %vm45_vm1, %v9697_v21 }
 0x900   :  { %8337 = vmatmul.mubr.msk.f32.vlgmr.msra.gmra.mrb[28].mxu1 %vm45_vm1, %v9699_v22  ;;  %9247 = vmatpush3.bf16.msra.mxu0 %v9881_v4 }
 0x901   :  { %9248 = vmatprep.subr.bf16.mxu0 %v9831_v3  ;;  %8347 = vmatprep.mubr.msk.f32.mxu0 %vm9832_vm0, %v9833_v6 }
 0x902   :  { %9253 = vmatpush3.bf16.msra.mxu1 %v9895_v9  ;;  %8358 = vmatprep.mubr.msk.f32.mxu1 %vm9832_vm0, %v9833_v6 }
 0x903   :  { %9254 = vmatprep.subr.bf16.mxu1 %v9831_v3 }
 0x904   :  { %9250 = vmatpush3.bf16.msra.mxu0 %v9900_v10 }
 0x905   :  { %9257 = vmatprep.subr.bf16.mxu0 %v9831_v3 }
 0x906   :  { %9256 = vmatpush3.bf16.msra.mxu1 %v9916_v13 }
 0x907   :  { %8348 = vmatmul.mubr.msk.f32.vlgmr.msra.gmra.mrb[30].mxu0 %vm45_vm1, %v9699_v22  ;;  %9263 = vmatprep.subr.bf16.mxu1 %v9831_v3  ;;  %v7451_v22 = vld [vmem:[%s10796_s0 + $0x1c] sm:$0x3] }
 0x908   :  { %9259 = vmatpush3.bf16.msra.mxu0 %v9929_v17  ;;  %8369 = vmatprep.mubr.msk.f32.mxu0 %vm9832_vm0, %v9833_v6 }
 0x909   :  { %9260 = vmatprep.subr.bf16.mxu0 %v9831_v3 }
 0x90c   :  { %9262 = vmatpush3.bf16.msra.mxu0 %v9936_v19 }
 0x90d   :  { %9269 = vmatprep.subr.bf16.mxu0 %v9831_v3 }
 0x9d2   :  { %v2185_v23 = vpop.f32.mrb[28].mxu0 }
 0x9d3   :  { %v2258_v24 = vpop.f32.mrb[28].mxu1  ;;  %v8327_v25 = vpop.f32.mrb[29].mxu0 }
 0x9d4   :  { %v2259_v26 = vadd.f32 %v2258_v24, %v2185_v23  ;;  %v8338_v27 = vpop.f32.mrb[29].mxu1 }
 0x9d6   :  { %v2262_v29 = vadd.f32 %v9970_v28, %v2259_v26 }
 0x9d8   :  { %9700 = vtanh.f32 %v2262_v29 }
 0x9da   :  { %v2332_v31 = vpop.f32.mrb[30].mxu0 }
 0x9db   :  { %v2336_v32 = vadd.f32 %v7435_v30, %v2332_v31  ;;  %v8349_v33 = vpop.f32.mrb[31].mxu0 }
 0x9dd   :  { %9702 = vtanh.f32 %v2336_v32 }
 0x9e2   :  { %v9701_v34 = vpop.eup %9700 }
 0x9e3   :  { %8359 = vmatmul.mubr.msk.f32.vlgmr.msra.gmra.mrb[30].mxu1 %vm45_vm1, %v9701_v34  ;;  %v7455_v34 = vld [vmem:[%s10796_s0 + $0x1e] sm:$0x3] }
 0x9e4   :  { %9265 = vmatpush3.bf16.msra.mxu1 %v9881_v4  ;;  %8380 = vmatprep.mubr.msk.f32.mxu1 %vm9832_vm0, %v9833_v6 }
 0x9e5   :  { %9266 = vmatprep.subr.bf16.mxu1 %v9831_v3 }
 0x9e7   :  { %v9703_v35 = vpop.eup %9702 }
 0x9e8   :  { %9268 = vmatpush3.bf16.msra.mxu1 %v9900_v10  ;;  %8370 = vmatmul.mubr.msk.f32.vlgmr.msra.gmra.mrb[32].mxu0 %vm45_vm1, %v9703_v35 }
 0x9e9   :  { %9271 = vmatpush3.bf16.msra.mxu0 %v9895_v9  ;;  %9275 = vmatprep.subr.bf16.mxu1 %v9831_v3 }
 0x9ea   :  { %9272 = vmatprep.subr.bf16.mxu0 %v9831_v3  ;;  %8391 = vmatprep.mubr.msk.f32.mxu0 %vm9832_vm0, %v9833_v6 }
 0x9eb   :  { %8381 = vmatmul.mubr.msk.f32.vlgmr.msra.gmra.mrb[32].mxu1 %vm45_vm1, %v9703_v35 }
 0x9ec   :  { %9277 = vmatpush3.bf16.msra.mxu1 %v9929_v17  ;;  %8402 = vmatprep.mubr.msk.f32.mxu1 %vm9832_vm0, %v9833_v6 }
 0x9ed   :  { %9274 = vmatpush3.bf16.msra.mxu0 %v9916_v13  ;;  %9278 = vmatprep.subr.bf16.mxu1 %v9831_v3 }
 0x9ee   :  { %9281 = vmatprep.subr.bf16.mxu0 %v9831_v3 }
 0x9f0   :  { %9280 = vmatpush3.bf16.msra.mxu1 %v9936_v19 }
 0x9f1   :  { %9287 = vmatprep.subr.bf16.mxu1 %v9831_v3 }
 0xab6   :  { %v2407_v36 = vpop.f32.mrb[30].mxu1 }
 0xab7   :  { %v8360_v37 = vpop.f32.mrb[31].mxu1 }
 0xabb   :  { %v2480_v38 = vpop.f32.mrb[32].mxu0 }
 0xabc   :  { %v2481_v39 = vadd.f32 %v2480_v38, %v2407_v36  ;;  %v8371_v40 = vpop.f32.mrb[33].mxu0 }
 0xabe   :  { %v2484_v42 = vadd.f32 %v9970_v28, %v2481_v39  ;;  %v2554_v43 = vpop.f32.mrb[32].mxu1 }
 0xabf   :  { %v2558_v44 = vadd.f32 %v7439_v41, %v2554_v43  ;;  %v8382_v45 = vpop.f32.mrb[33].mxu1 }
 0xac0   :  { %9704 = vtanh.f32 %v2484_v42 }
 0xac1   :  { %9706 = vtanh.f32 %v2558_v44 }
 0xaca   :  { %v9705_v46 = vpop.eup %9704 }
 0xacb   :  { %v9707_v47 = vpop.eup %9706  ;;  %8392 = vmatmul.mubr.msk.f32.vlgmr.msra.gmra.mrb[34].mxu0 %vm45_vm1, %v9705_v46 }
 0xacc   :  { %8403 = vmatmul.mubr.msk.f32.vlgmr.msra.gmra.mrb[34].mxu1 %vm45_vm1, %v9707_v47  ;;  %9283 = vmatpush3.bf16.msra.mxu0 %v9881_v4 }
 0xacd   :  { %9284 = vmatprep.subr.bf16.mxu0 %v9831_v3  ;;  %8413 = vmatprep.mubr.msk.f32.mxu0 %vm9832_vm0, %v9833_v6 }
 0xace   :  { %9289 = vmatpush3.bf16.msra.mxu1 %v9895_v9  ;;  %8424 = vmatprep.mubr.msk.f32.mxu1 %vm9832_vm0, %v9833_v6 }
 0xacf   :  { %9290 = vmatprep.subr.bf16.mxu1 %v9831_v3 }
 0xad0   :  { %9286 = vmatpush3.bf16.msra.mxu0 %v9900_v10 }
 0xad1   :  { %9293 = vmatprep.subr.bf16.mxu0 %v9831_v3 }
 0xad2   :  { %9292 = vmatpush3.bf16.msra.mxu1 %v9916_v13 }
 0xad3   :  { %8414 = vmatmul.mubr.msk.f32.vlgmr.msra.gmra.mrb[36].mxu0 %vm45_vm1, %v9707_v47  ;;  %9299 = vmatprep.subr.bf16.mxu1 %v9831_v3  ;;  %v7459_v47 = vld [vmem:[%s10796_s0 + $0x20] sm:$0x3] }
 0xad4   :  { %9295 = vmatpush3.bf16.msra.mxu0 %v9929_v17  ;;  %8435 = vmatprep.mubr.msk.f32.mxu0 %vm9832_vm0, %v9833_v6 }
 0xad5   :  { %9296 = vmatprep.subr.bf16.mxu0 %v9831_v3 }
 0xad8   :  { %9298 = vmatpush3.bf16.msra.mxu0 %v9936_v19 }
 0xad9   :  { %9305 = vmatprep.subr.bf16.mxu0 %v9831_v3 }
 0xb9e   :  { %v2629_v48 = vpop.f32.mrb[34].mxu0 }
 0xb9f   :  { %v2702_v49 = vpop.f32.mrb[34].mxu1  ;;  %v8393_v50 = vpop.f32.mrb[35].mxu0 }
 0xba0   :  { %v2703_v51 = vadd.f32 %v2702_v49, %v2629_v48  ;;  %v8404_v52 = vpop.f32.mrb[35].mxu1 }
 0xba2   :  { %v2706_v53 = vadd.f32 %v9970_v28, %v2703_v51 }
 0xba4   :  { %9708 = vtanh.f32 %v2706_v53 }
 0xba6   :  { %v2776_v55 = vpop.f32.mrb[36].mxu0 }
 0xba7   :  { %v2780_v56 = vadd.f32 %v7443_v54, %v2776_v55  ;;  %v8415_v57 = vpop.f32.mrb[37].mxu0 }
 0xba8   :  { %v7463_v57 = vld [vmem:[%s10796_s0 + $0x22] sm:$0x3] }
 0xba9   :  { %9710 = vtanh.f32 %v2780_v56 }
 0xbae   :  { %v9709_v58 = vpop.eup %9708 }
 0xbaf   :  { %8425 = vmatmul.mubr.msk.f32.vlgmr.msra.gmra.mrb[36].mxu1 %vm45_vm1, %v9709_v58  ;;  %v10375_v58 = vld [vmem:[%s10799_s3] ss:$0 sm:$0xff] }
 0xbb0   :  { %9301 = vmatpush3.bf16.msra.mxu1 %v9881_v4  ;;  %8446 = vmatprep.mubr.msk.f32.mxu1 %vm9832_vm0, %v9833_v6 }
 0xbb1   :  { %9302 = vmatprep.subr.bf16.mxu1 %v9831_v3 }
 0xbb3   :  { %v9711_v59 = vpop.eup %9710 }
 0xbb4   :  { %9304 = vmatpush3.bf16.msra.mxu1 %v9900_v10  ;;  %8436 = vmatmul.mubr.msk.f32.vlgmr.msra.gmra.mrb[38].mxu0 %vm45_vm1, %v9711_v59 }
 0xbb5   :  { %9307 = vmatpush3.bf16.msra.mxu0 %v9895_v9  ;;  %9311 = vmatprep.subr.bf16.mxu1 %v9831_v3 }
 0xbb6   :  { %9308 = vmatprep.subr.bf16.mxu0 %v9831_v3  ;;  %8457 = vmatprep.mubr.msk.f32.mxu0 %vm9832_vm0, %v9833_v6 }
 0xbb7   :  { %8447 = vmatmul.mubr.msk.f32.vlgmr.msra.gmra.mrb[38].mxu1 %vm45_vm1, %v9711_v59 }
 0xbb8   :  { %9313 = vmatpush3.bf16.msra.mxu1 %v9929_v17  ;;  %8468 = vmatprep.mubr.msk.f32.mxu1 %vm9832_vm0, %v9833_v6 }
 0xbb9   :  { %9310 = vmatpush3.bf16.msra.mxu0 %v9916_v13  ;;  %9314 = vmatprep.subr.bf16.mxu1 %v9831_v3 }
 0xbba   :  { %9317 = vmatprep.subr.bf16.mxu0 %v9831_v3 }
 0xbbc   :  { %9316 = vmatpush3.bf16.msra.mxu1 %v9936_v19 }
 0xbbd   :  { %9323 = vmatprep.subr.bf16.mxu1 %v9831_v3 }
 0xc82   :  { %v2851_v60 = vpop.f32.mrb[36].mxu1 }
 0xc83   :  { %v8426_v61 = vpop.f32.mrb[37].mxu1 }
 0xc87   :  { %v2924_v62 = vpop.f32.mrb[38].mxu0 }
 0xc88   :  { %v2925_v63 = vadd.f32 %v2924_v62, %v2851_v60  ;;  %v8437_v0 = vpop.f32.mrb[39].mxu0 }
 0xc8a   :  { %v2928_v2 = vadd.f32 %v9970_v28, %v2925_v63  ;;  %v2998_v5 = vpop.f32.mrb[38].mxu1 }
 0xc8b   :  { %v3002_v7 = vadd.f32 %v7447_v1, %v2998_v5  ;;  %v8448_v8 = vpop.f32.mrb[39].mxu1 }
 0xc8c   :  { %9712 = vtanh.f32 %v2928_v2 }
 0xc8d   :  { %9714 = vtanh.f32 %v3002_v7 }
 0xc96   :  { %v9713_v11 = vpop.eup %9712 }
 0xc97   :  { %v9715_v12 = vpop.eup %9714  ;;  %8458 = vmatmul.mubr.msk.f32.vlgmr.msra.gmra.mrb[40].mxu0 %vm45_vm1, %v9713_v11 }
 0xc98   :  { %8469 = vmatmul.mubr.msk.f32.vlgmr.msra.gmra.mrb[40].mxu1 %vm45_vm1, %v9715_v12  ;;  %9319 = vmatpush3.bf16.msra.mxu0 %v9881_v4 }
 0xc99   :  { %9320 = vmatprep.subr.bf16.mxu0 %v9831_v3  ;;  %8479 = vmatprep.mubr.msk.f32.mxu0 %vm9832_vm0, %v9833_v6 }
 0xc9a   :  { %9325 = vmatpush3.bf16.msra.mxu1 %v9895_v9  ;;  %8490 = vmatprep.mubr.msk.f32.mxu1 %vm9832_vm0, %v9833_v6 }
 0xc9b   :  { %9326 = vmatprep.subr.bf16.mxu1 %v9831_v3 }
 0xc9c   :  { %9322 = vmatpush3.bf16.msra.mxu0 %v9900_v10 }
 0xc9d   :  { %9329 = vmatprep.subr.bf16.mxu0 %v9831_v3 }
 0xc9e   :  { %9328 = vmatpush3.bf16.msra.mxu1 %v9916_v13 }
 0xc9f   :  { %8480 = vmatmul.mubr.msk.f32.vlgmr.msra.gmra.mrb[42].mxu0 %vm45_vm1, %v9715_v12  ;;  %9335 = vmatprep.subr.bf16.mxu1 %v9831_v3  ;;  %v7467_v12 = vld [vmem:[%s10796_s0 + $0x24] sm:$0x3] }
 0xca0   :  { %9331 = vmatpush3.bf16.msra.mxu0 %v9929_v17  ;;  %8501 = vmatprep.mubr.msk.f32.mxu0 %vm9832_vm0, %v9833_v6 }
 0xca1   :  { %9332 = vmatprep.subr.bf16.mxu0 %v9831_v3 }
 0xca4   :  { %9334 = vmatpush3.bf16.msra.mxu0 %v9936_v19 }
 0xca5   :  { %9341 = vmatprep.subr.bf16.mxu0 %v9831_v3 }
 0xd6a   :  { %v3073_v14 = vpop.f32.mrb[40].mxu0 }
 0xd6b   :  { %v3146_v15 = vpop.f32.mrb[40].mxu1  ;;  %v8459_v16 = vpop.f32.mrb[41].mxu0 }
 0xd6c   :  { %v3147_v18 = vadd.f32 %v3146_v15, %v3073_v14  ;;  %v8470_v20 = vpop.f32.mrb[41].mxu1 }
 0xd6e   :  { %v3150_v21 = vadd.f32 %v9970_v28, %v3147_v18 }
 0xd70   :  { %9716 = vtanh.f32 %v3150_v21 }
 0xd72   :  { %v3220_v23 = vpop.f32.mrb[42].mxu0 }
 0xd73   :  { %v3224_v24 = vadd.f32 %v7451_v22, %v3220_v23  ;;  %v8481_v25 = vpop.f32.mrb[43].mxu0 }
 0xd75   :  { %9718 = vtanh.f32 %v3224_v24 }
 0xd7a   :  { %v9717_v26 = vpop.eup %9716 }
 0xd7b   :  { %8491 = vmatmul.mubr.msk.f32.vlgmr.msra.gmra.mrb[42].mxu1 %vm45_vm1, %v9717_v26  ;;  %v7471_v26 = vld [vmem:[%s10796_s0 + $0x26] sm:$0x3] }
 0xd7c   :  { %9337 = vmatpush3.bf16.msra.mxu1 %v9881_v4  ;;  %8512 = vmatprep.mubr.msk.f32.mxu1 %vm9832_vm0, %v9833_v6 }
 0xd7d   :  { %9338 = vmatprep.subr.bf16.mxu1 %v9831_v3 }
 0xd7f   :  { %v9719_v27 = vpop.eup %9718 }
 0xd80   :  { %9340 = vmatpush3.bf16.msra.mxu1 %v9900_v10  ;;  %8502 = vmatmul.mubr.msk.f32.vlgmr.msra.gmra.mrb[44].mxu0 %vm45_vm1, %v9719_v27 }
 0xd81   :  { %9343 = vmatpush3.bf16.msra.mxu0 %v9895_v9  ;;  %9347 = vmatprep.subr.bf16.mxu1 %v9831_v3 }
 0xd82   :  { %9344 = vmatprep.subr.bf16.mxu0 %v9831_v3  ;;  %8523 = vmatprep.mubr.msk.f32.mxu0 %vm9832_vm0, %v9833_v6 }
 0xd83   :  { %8513 = vmatmul.mubr.msk.f32.vlgmr.msra.gmra.mrb[44].mxu1 %vm45_vm1, %v9719_v27 }
 0xd84   :  { %9349 = vmatpush3.bf16.msra.mxu1 %v9929_v17  ;;  %8534 = vmatprep.mubr.msk.f32.mxu1 %vm9832_vm0, %v9833_v6 }
 0xd85   :  { %9346 = vmatpush3.bf16.msra.mxu0 %v9916_v13  ;;  %9350 = vmatprep.subr.bf16.mxu1 %v9831_v3 }
 0xd86   :  { %9353 = vmatprep.subr.bf16.mxu0 %v9831_v3 }
 0xd88   :  { %9352 = vmatpush3.bf16.msra.mxu1 %v9936_v19 }
 0xd89   :  { %9359 = vmatprep.subr.bf16.mxu1 %v9831_v3 }
 0xe4e   :  { %v3295_v29 = vpop.f32.mrb[42].mxu1 }
 0xe4f   :  { %v8492_v30 = vpop.f32.mrb[43].mxu1 }
 0xe53   :  { %v3368_v31 = vpop.f32.mrb[44].mxu0 }
 0xe54   :  { %v3369_v32 = vadd.f32 %v3368_v31, %v3295_v29  ;;  %v8503_v33 = vpop.f32.mrb[45].mxu0 }
 0xe56   :  { %v3372_v35 = vadd.f32 %v9970_v28, %v3369_v32  ;;  %v3442_v36 = vpop.f32.mrb[44].mxu1 }
 0xe57   :  { %v3446_v37 = vadd.f32 %v7455_v34, %v3442_v36  ;;  %v8514_v38 = vpop.f32.mrb[45].mxu1 }
 0xe58   :  { %9720 = vtanh.f32 %v3372_v35 }
 0xe59   :  { %9722 = vtanh.f32 %v3446_v37 }
 0xe62   :  { %v9721_v39 = vpop.eup %9720 }
 0xe63   :  { %v9723_v40 = vpop.eup %9722  ;;  %8524 = vmatmul.mubr.msk.f32.vlgmr.msra.gmra.mrb[46].mxu0 %vm45_vm1, %v9721_v39 }
 0xe64   :  { %8535 = vmatmul.mubr.msk.f32.vlgmr.msra.gmra.mrb[46].mxu1 %vm45_vm1, %v9723_v40  ;;  %9355 = vmatpush3.bf16.msra.mxu0 %v9881_v4 }
 0xe65   :  { %9356 = vmatprep.subr.bf16.mxu0 %v9831_v3  ;;  %8545 = vmatprep.mubr.msk.f32.mxu0 %vm9832_vm0, %v9833_v6 }
 0xe66   :  { %9361 = vmatpush3.bf16.msra.mxu1 %v9895_v9  ;;  %8556 = vmatprep.mubr.msk.f32.mxu1 %vm9832_vm0, %v9833_v6 }
 0xe67   :  { %9362 = vmatprep.subr.bf16.mxu1 %v9831_v3 }
 0xe68   :  { %9358 = vmatpush3.bf16.msra.mxu0 %v9900_v10 }
 0xe69   :  { %9365 = vmatprep.subr.bf16.mxu0 %v9831_v3 }
 0xe6a   :  { %9364 = vmatpush3.bf16.msra.mxu1 %v9916_v13 }
 0xe6b   :  { %8546 = vmatmul.mubr.msk.f32.vlgmr.msra.gmra.mrb[48].mxu0 %vm45_vm1, %v9723_v40  ;;  %9371 = vmatprep.subr.bf16.mxu1 %v9831_v3  ;;  %v7475_v40 = vld [vmem:[%s10796_s0 + $0x28] sm:$0x3] }
 0xe6c   :  { %9367 = vmatpush3.bf16.msra.mxu0 %v9929_v17  ;;  %8567 = vmatprep.mubr.msk.f32.mxu0 %vm9832_vm0, %v9833_v6 }
 0xe6d   :  { %9368 = vmatprep.subr.bf16.mxu0 %v9831_v3 }
 0xe70   :  { %9370 = vmatpush3.bf16.msra.mxu0 %v9936_v19 }
 0xe71   :  { %9377 = vmatprep.subr.bf16.mxu0 %v9831_v3 }
 0xf36   :  { %v3517_v41 = vpop.f32.mrb[46].mxu0 }
 0xf37   :  { %v3590_v42 = vpop.f32.mrb[46].mxu1  ;;  %v8525_v43 = vpop.f32.mrb[47].mxu0 }
 0xf38   :  { %v3591_v44 = vadd.f32 %v3590_v42, %v3517_v41  ;;  %v8536_v45 = vpop.f32.mrb[47].mxu1 }
 0xf3a   :  { %v3594_v46 = vadd.f32 %v9970_v28, %v3591_v44 }
 0xf3c   :  { %9724 = vtanh.f32 %v3594_v46 }
 0xf3e   :  { %v3664_v48 = vpop.f32.mrb[48].mxu0 }
 0xf3f   :  { %v3668_v49 = vadd.f32 %v7459_v47, %v3664_v48  ;;  %v8547_v50 = vpop.f32.mrb[49].mxu0 }
 0xf41   :  { %9726 = vtanh.f32 %v3668_v49 }
 0xf46   :  { %v9725_v51 = vpop.eup %9724 }
 0xf47   :  { %8557 = vmatmul.mubr.msk.f32.vlgmr.msra.gmra.mrb[48].mxu1 %vm45_vm1, %v9725_v51  ;;  %v7479_v51 = vld [vmem:[%s10796_s0 + $0x2a] sm:$0x3] }
 0xf48   :  { %9373 = vmatpush3.bf16.msra.mxu1 %v9881_v4  ;;  %8578 = vmatprep.mubr.msk.f32.mxu1 %vm9832_vm0, %v9833_v6 }
 0xf49   :  { %9374 = vmatprep.subr.bf16.mxu1 %v9831_v3 }
 0xf4b   :  { %v9727_v28 = vpop.eup %9726 }
 0xf4c   :  { %9376 = vmatpush3.bf16.msra.mxu1 %v9900_v10  ;;  %8568 = vmatmul.mubr.msk.f32.vlgmr.msra.gmra.mrb[50].mxu0 %vm45_vm1, %v9727_v28 }
 0xf4d   :  { %9379 = vmatpush3.bf16.msra.mxu0 %v9895_v9  ;;  %9383 = vmatprep.subr.bf16.mxu1 %v9831_v3 }
 0xf4e   :  { %9380 = vmatprep.subr.bf16.mxu0 %v9831_v3  ;;  %8589 = vmatprep.mubr.msk.f32.mxu0 %vm9832_vm0, %v9833_v6 }
 0xf4f   :  { %8579 = vmatmul.mubr.msk.f32.vlgmr.msra.gmra.mrb[50].mxu1 %vm45_vm1, %v9727_v28 }
 0xf50   :  { %9385 = vmatpush3.bf16.msra.mxu1 %v9929_v17  ;;  %8600 = vmatprep.mubr.msk.f32.mxu1 %vm9832_vm0, %v9833_v6 }
 0xf51   :  { %9382 = vmatpush3.bf16.msra.mxu0 %v9916_v13  ;;  %9386 = vmatprep.subr.bf16.mxu1 %v9831_v3 }
 0xf52   :  { %9389 = vmatprep.subr.bf16.mxu0 %v9831_v3 }
 0xf54   :  { %9388 = vmatpush3.bf16.msra.mxu1 %v9936_v19 }
 0xf55   :  { %9395 = vmatprep.subr.bf16.mxu1 %v9831_v3 }
0x101a   :  { %v3739_v52 = vpop.f32.mrb[48].mxu1 }
0x101b   :  { %v8558_v53 = vpop.f32.mrb[49].mxu1 }
0x101f   :  { %v3812_v54 = vpop.f32.mrb[50].mxu0 }
0x1020   :  { %v3813_v55 = vadd.f32 %v3812_v54, %v3739_v52  ;;  %v8569_v56 = vpop.f32.mrb[51].mxu0 }
0x1022   :  { %v3816_v59 = vadd.f32 %v10375_v58, %v3813_v55  ;;  %v3886_v60 = vpop.f32.mrb[50].mxu1 }
0x1023   :  { %v3890_v61 = vadd.f32 %v7463_v57, %v3886_v60  ;;  %v8580_v62 = vpop.f32.mrb[51].mxu1 }
0x1024   :  { %9728 = vtanh.f32 %v3816_v59 }
0x1025   :  { %9730 = vtanh.f32 %v3890_v61 }
0x102e   :  { %v9729_v63 = vpop.eup %9728 }
0x102f   :  { %v9731_v0 = vpop.eup %9730  ;;  %8590 = vmatmul.mubr.msk.f32.vlgmr.msra.gmra.mrb[52].mxu0 %vm45_vm1, %v9729_v63 }
0x1030   :  { %8601 = vmatmul.mubr.msk.f32.vlgmr.msra.gmra.mrb[52].mxu1 %vm45_vm1, %v9731_v0  ;;  %9391 = vmatpush3.bf16.msra.mxu0 %v9881_v4 }
0x1031   :  { %9392 = vmatprep.subr.bf16.mxu0 %v9831_v3  ;;  %8611 = vmatprep.mubr.msk.f32.mxu0 %vm9832_vm0, %v9833_v6 }
0x1032   :  { %9397 = vmatpush3.bf16.msra.mxu1 %v9895_v9  ;;  %8622 = vmatprep.mubr.msk.f32.mxu1 %vm9832_vm0, %v9833_v6 }
0x1033   :  { %9398 = vmatprep.subr.bf16.mxu1 %v9831_v3 }
0x1034   :  { %9394 = vmatpush3.bf16.msra.mxu0 %v9900_v10 }
0x1035   :  { %9401 = vmatprep.subr.bf16.mxu0 %v9831_v3 }
0x1036   :  { %9400 = vmatpush3.bf16.msra.mxu1 %v9916_v13 }
0x1037   :  { %8612 = vmatmul.mubr.msk.f32.vlgmr.msra.gmra.mrb[54].mxu0 %vm45_vm1, %v9731_v0  ;;  %9407 = vmatprep.subr.bf16.mxu1 %v9831_v3  ;;  %v7483_v0 = vld [vmem:[%s10796_s0 + $0x2c] sm:$0x3] }
0x1038   :  { %9403 = vmatpush3.bf16.msra.mxu0 %v9929_v17  ;;  %8633 = vmatprep.mubr.msk.f32.mxu0 %vm9832_vm0, %v9833_v6 }
0x1039   :  { %9404 = vmatprep.subr.bf16.mxu0 %v9831_v3 }
0x103c   :  { %9406 = vmatpush3.bf16.msra.mxu0 %v9936_v19 }
0x103d   :  { %9413 = vmatprep.subr.bf16.mxu0 %v9831_v3 }
0x1102   :  { %v3961_v1 = vpop.f32.mrb[52].mxu0 }
0x1103   :  { %v4034_v2 = vpop.f32.mrb[52].mxu1  ;;  %v8591_v5 = vpop.f32.mrb[53].mxu0 }
0x1104   :  { %v4035_v7 = vadd.f32 %v4034_v2, %v3961_v1  ;;  %v8602_v8 = vpop.f32.mrb[53].mxu1 }
0x1106   :  { %v4038_v11 = vadd.f32 %v10375_v58, %v4035_v7 }
0x1108   :  { %9732 = vtanh.f32 %v4038_v11 }
0x110a   :  { %v4108_v14 = vpop.f32.mrb[54].mxu0 }
0x110b   :  { %v4112_v15 = vadd.f32 %v7467_v12, %v4108_v14  ;;  %v8613_v16 = vpop.f32.mrb[55].mxu0 }
0x110d   :  { %9734 = vtanh.f32 %v4112_v15 }
0x1112   :  { %v9733_v18 = vpop.eup %9732 }
0x1113   :  { %8623 = vmatmul.mubr.msk.f32.vlgmr.msra.gmra.mrb[54].mxu1 %vm45_vm1, %v9733_v18  ;;  %v7487_v18 = vld [vmem:[%s10796_s0 + $0x2e] sm:$0x3] }
0x1114   :  { %9409 = vmatpush3.bf16.msra.mxu1 %v9881_v4  ;;  %8644 = vmatprep.mubr.msk.f32.mxu1 %vm9832_vm0, %v9833_v6 }
0x1115   :  { %9410 = vmatprep.subr.bf16.mxu1 %v9831_v3 }
0x1117   :  { %v9735_v20 = vpop.eup %9734 }
0x1118   :  { %9412 = vmatpush3.bf16.msra.mxu1 %v9900_v10  ;;  %8634 = vmatmul.mubr.msk.f32.vlgmr.msra.gmra.mrb[56].mxu0 %vm45_vm1, %v9735_v20 }
0x1119   :  { %9415 = vmatpush3.bf16.msra.mxu0 %v9895_v9  ;;  %9419 = vmatprep.subr.bf16.mxu1 %v9831_v3 }
0x111a   :  { %9416 = vmatprep.subr.bf16.mxu0 %v9831_v3  ;;  %8655 = vmatprep.mubr.msk.f32.mxu0 %vm9832_vm0, %v9833_v6 }
0x111b   :  { %8645 = vmatmul.mubr.msk.f32.vlgmr.msra.gmra.mrb[56].mxu1 %vm45_vm1, %v9735_v20 }
0x111c   :  { %9421 = vmatpush3.bf16.msra.mxu1 %v9929_v17  ;;  %8666 = vmatprep.mubr.msk.f32.mxu1 %vm9832_vm0, %v9833_v6 }
0x111d   :  { %9418 = vmatpush3.bf16.msra.mxu0 %v9916_v13  ;;  %9422 = vmatprep.subr.bf16.mxu1 %v9831_v3 }
0x111e   :  { %9425 = vmatprep.subr.bf16.mxu0 %v9831_v3 }
0x1120   :  { %9424 = vmatpush3.bf16.msra.mxu1 %v9936_v19 }
0x1121   :  { %9431 = vmatprep.subr.bf16.mxu1 %v9831_v3 }
0x11e6   :  { %v4183_v21 = vpop.f32.mrb[54].mxu1 }
0x11e7   :  { %v8624_v22 = vpop.f32.mrb[55].mxu1 }
0x11eb   :  { %v4256_v23 = vpop.f32.mrb[56].mxu0 }
0x11ec   :  { %v4257_v24 = vadd.f32 %v4256_v23, %v4183_v21  ;;  %v8635_v25 = vpop.f32.mrb[57].mxu0 }
0x11ee   :  { %v4260_v27 = vadd.f32 %v10375_v58, %v4257_v24  ;;  %v4330_v29 = vpop.f32.mrb[56].mxu1 }
0x11ef   :  { %v4334_v30 = vadd.f32 %v7471_v26, %v4330_v29  ;;  %v8646_v31 = vpop.f32.mrb[57].mxu1 }
0x11f0   :  { %9736 = vtanh.f32 %v4260_v27 }
0x11f1   :  { %9738 = vtanh.f32 %v4334_v30 }
0x11fa   :  { %v9737_v32 = vpop.eup %9736 }
0x11fb   :  { %v9739_v33 = vpop.eup %9738  ;;  %8656 = vmatmul.mubr.msk.f32.vlgmr.msra.gmra.mrb[58].mxu0 %vm45_vm1, %v9737_v32 }
0x11fc   :  { %8667 = vmatmul.mubr.msk.f32.vlgmr.msra.gmra.mrb[58].mxu1 %vm45_vm1, %v9739_v33  ;;  %9427 = vmatpush3.bf16.msra.mxu0 %v9881_v4 }
0x11fd   :  { %9428 = vmatprep.subr.bf16.mxu0 %v9831_v3  ;;  %8677 = vmatprep.mubr.msk.f32.mxu0 %vm9832_vm0, %v9833_v6 }
0x11fe   :  { %9433 = vmatpush3.bf16.msra.mxu1 %v9895_v9  ;;  %8688 = vmatprep.mubr.msk.f32.mxu1 %vm9832_vm0, %v9833_v6 }
0x11ff   :  { %9434 = vmatprep.subr.bf16.mxu1 %v9831_v3 }
0x1200   :  { %9430 = vmatpush3.bf16.msra.mxu0 %v9900_v10 }
0x1201   :  { %9437 = vmatprep.subr.bf16.mxu0 %v9831_v3 }
0x1202   :  { %9436 = vmatpush3.bf16.msra.mxu1 %v9916_v13 }
0x1203   :  { %8678 = vmatmul.mubr.msk.f32.vlgmr.msra.gmra.mrb[60].mxu0 %vm45_vm1, %v9739_v33  ;;  %9443 = vmatprep.subr.bf16.mxu1 %v9831_v3  ;;  %v7491_v33 = vld [vmem:[%s10796_s0 + $0x30] sm:$0x3] }
0x1204   :  { %9439 = vmatpush3.bf16.msra.mxu0 %v9929_v17  ;;  %8699 = vmatprep.mubr.msk.f32.mxu0 %vm9832_vm0, %v9833_v6 }
0x1205   :  { %9440 = vmatprep.subr.bf16.mxu0 %v9831_v3 }
0x1208   :  { %9442 = vmatpush3.bf16.msra.mxu0 %v9936_v19 }
0x1209   :  { %9449 = vmatprep.subr.bf16.mxu0 %v9831_v3 }
0x12ce   :  { %v4405_v34 = vpop.f32.mrb[58].mxu0 }
0x12cf   :  { %v4478_v35 = vpop.f32.mrb[58].mxu1  ;;  %v8657_v36 = vpop.f32.mrb[59].mxu0 }
0x12d0   :  { %v4479_v37 = vadd.f32 %v4478_v35, %v4405_v34  ;;  %v8668_v38 = vpop.f32.mrb[59].mxu1 }
0x12d2   :  { %v4482_v39 = vadd.f32 %v10375_v58, %v4479_v37 }
0x12d4   :  { %9740 = vtanh.f32 %v4482_v39 }
0x12d6   :  { %v4552_v41 = vpop.f32.mrb[60].mxu0 }
0x12d7   :  { %v4556_v42 = vadd.f32 %v7475_v40, %v4552_v41  ;;  %v8679_v43 = vpop.f32.mrb[61].mxu0 }
0x12d9   :  { %9742 = vtanh.f32 %v4556_v42 }
0x12de   :  { %v9741_v44 = vpop.eup %9740 }
0x12df   :  { %8689 = vmatmul.mubr.msk.f32.vlgmr.msra.gmra.mrb[60].mxu1 %vm45_vm1, %v9741_v44  ;;  %v7495_v44 = vld [vmem:[%s10796_s0 + $0x32] sm:$0x3] }
0x12e0   :  { %9445 = vmatpush3.bf16.msra.mxu1 %v9881_v4  ;;  %8710 = vmatprep.mubr.msk.f32.mxu1 %vm9832_vm0, %v9833_v6 }
0x12e1   :  { %9446 = vmatprep.subr.bf16.mxu1 %v9831_v3 }
0x12e3   :  { %v9743_v45 = vpop.eup %9742 }
0x12e4   :  { %9448 = vmatpush3.bf16.msra.mxu1 %v9900_v10  ;;  %8700 = vmatmul.mubr.msk.f32.vlgmr.msra.gmra.mrb[62].mxu0 %vm45_vm1, %v9743_v45 }
0x12e5   :  { %9451 = vmatpush3.bf16.msra.mxu0 %v9895_v9  ;;  %9455 = vmatprep.subr.bf16.mxu1 %v9831_v3 }
0x12e6   :  { %9452 = vmatprep.subr.bf16.mxu0 %v9831_v3  ;;  %8721 = vmatprep.mubr.msk.f32.mxu0 %vm9832_vm0, %v9833_v6 }
0x12e7   :  { %8711 = vmatmul.mubr.msk.f32.vlgmr.msra.gmra.mrb[62].mxu1 %vm45_vm1, %v9743_v45 }
0x12e8   :  { %9457 = vmatpush3.bf16.msra.mxu1 %v9929_v17  ;;  %8732 = vmatprep.mubr.msk.f32.mxu1 %vm9832_vm0, %v9833_v6 }
0x12e9   :  { %9454 = vmatpush3.bf16.msra.mxu0 %v9916_v13  ;;  %9458 = vmatprep.subr.bf16.mxu1 %v9831_v3 }
0x12ea   :  { %9461 = vmatprep.subr.bf16.mxu0 %v9831_v3 }
0x12ec   :  { %9460 = vmatpush3.bf16.msra.mxu1 %v9936_v19 }
0x12ed   :  { %9467 = vmatprep.subr.bf16.mxu1 %v9831_v3 }
0x13b2   :  { %v4627_v46 = vpop.f32.mrb[60].mxu1 }
0x13b3   :  { %v8690_v47 = vpop.f32.mrb[61].mxu1 }
0x13b7   :  { %v4700_v48 = vpop.f32.mrb[62].mxu0 }
0x13b8   :  { %v4701_v49 = vadd.f32 %v4700_v48, %v4627_v46  ;;  %v8701_v50 = vpop.f32.mrb[63].mxu0 }
0x13ba   :  { %v4704_v28 = vadd.f32 %v10375_v58, %v4701_v49  ;;  %v4774_v52 = vpop.f32.mrb[62].mxu1 }
0x13bb   :  { %v4778_v53 = vadd.f32 %v7479_v51, %v4774_v52  ;;  %v8712_v54 = vpop.f32.mrb[63].mxu1 }
0x13bc   :  { %9744 = vtanh.f32 %v4704_v28 }
0x13bd   :  { %9746 = vtanh.f32 %v4778_v53 }
0x13c6   :  { %v9745_v55 = vpop.eup %9744 }
0x13c7   :  { %v9747_v56 = vpop.eup %9746  ;;  %8722 = vmatmul.mubr.msk.f32.vlgmr.msra.gmra.mrb[64].mxu0 %vm45_vm1, %v9745_v55 }
0x13c8   :  { %8733 = vmatmul.mubr.msk.f32.vlgmr.msra.gmra.mrb[64].mxu1 %vm45_vm1, %v9747_v56  ;;  %9463 = vmatpush3.bf16.msra.mxu0 %v9881_v4 }
0x13c9   :  { %9464 = vmatprep.subr.bf16.mxu0 %v9831_v3  ;;  %8743 = vmatprep.mubr.msk.f32.mxu0 %vm9832_vm0, %v9833_v6 }
0x13ca   :  { %9469 = vmatpush3.bf16.msra.mxu1 %v9895_v9  ;;  %8754 = vmatprep.mubr.msk.f32.mxu1 %vm9832_vm0, %v9833_v6 }
0x13cb   :  { %9470 = vmatprep.subr.bf16.mxu1 %v9831_v3 }
0x13cc   :  { %9466 = vmatpush3.bf16.msra.mxu0 %v9900_v10 }
0x13cd   :  { %9473 = vmatprep.subr.bf16.mxu0 %v9831_v3 }
0x13ce   :  { %9472 = vmatpush3.bf16.msra.mxu1 %v9916_v13 }
0x13cf   :  { %8744 = vmatmul.mubr.msk.f32.vlgmr.msra.gmra.mrb[66].mxu0 %vm45_vm1, %v9747_v56  ;;  %9479 = vmatprep.subr.bf16.mxu1 %v9831_v3  ;;  %v7499_v56 = vld [vmem:[%s10796_s0 + $0x34] sm:$0x3] }
0x13d0   :  { %9475 = vmatpush3.bf16.msra.mxu0 %v9929_v17  ;;  %8765 = vmatprep.mubr.msk.f32.mxu0 %vm9832_vm0, %v9833_v6 }
0x13d1   :  { %9476 = vmatprep.subr.bf16.mxu0 %v9831_v3 }
0x13d4   :  { %9478 = vmatpush3.bf16.msra.mxu0 %v9936_v19 }
0x13d5   :  { %9485 = vmatprep.subr.bf16.mxu0 %v9831_v3 }
0x149a   :  { %v4849_v57 = vpop.f32.mrb[64].mxu0 }
0x149b   :  { %v4922_v59 = vpop.f32.mrb[64].mxu1  ;;  %v8723_v60 = vpop.f32.mrb[65].mxu0 }
0x149c   :  { %v4923_v61 = vadd.f32 %v4922_v59, %v4849_v57  ;;  %v8734_v62 = vpop.f32.mrb[65].mxu1 }
0x149e   :  { %v4926_v63 = vadd.f32 %v10375_v58, %v4923_v61 }
0x14a0   :  { %9748 = vtanh.f32 %v4926_v63 }
0x14a2   :  { %v4996_v1 = vpop.f32.mrb[66].mxu0 }
0x14a3   :  { %v5000_v2 = vadd.f32 %v7483_v0, %v4996_v1  ;;  %v8745_v5 = vpop.f32.mrb[67].mxu0 }
0x14a5   :  { %9750 = vtanh.f32 %v5000_v2 }
0x14aa   :  { %v9749_v7 = vpop.eup %9748 }
0x14ab   :  { %8755 = vmatmul.mubr.msk.f32.vlgmr.msra.gmra.mrb[66].mxu1 %vm45_vm1, %v9749_v7  ;;  %v7503_v7 = vld [vmem:[%s10796_s0 + $0x36] sm:$0x3] }
0x14ac   :  { %9481 = vmatpush3.bf16.msra.mxu1 %v9881_v4  ;;  %8776 = vmatprep.mubr.msk.f32.mxu1 %vm9832_vm0, %v9833_v6 }
0x14ad   :  { %9482 = vmatprep.subr.bf16.mxu1 %v9831_v3 }
0x14af   :  { %v9751_v8 = vpop.eup %9750 }
0x14b0   :  { %9484 = vmatpush3.bf16.msra.mxu1 %v9900_v10  ;;  %8766 = vmatmul.mubr.msk.f32.vlgmr.msra.gmra.mrb[68].mxu0 %vm45_vm1, %v9751_v8 }
0x14b1   :  { %9487 = vmatpush3.bf16.msra.mxu0 %v9895_v9  ;;  %9491 = vmatprep.subr.bf16.mxu1 %v9831_v3 }
0x14b2   :  { %9488 = vmatprep.subr.bf16.mxu0 %v9831_v3  ;;  %8787 = vmatprep.mubr.msk.f32.mxu0 %vm9832_vm0, %v9833_v6 }
0x14b3   :  { %8777 = vmatmul.mubr.msk.f32.vlgmr.msra.gmra.mrb[68].mxu1 %vm45_vm1, %v9751_v8 }
0x14b4   :  { %9493 = vmatpush3.bf16.msra.mxu1 %v9929_v17  ;;  %8798 = vmatprep.mubr.msk.f32.mxu1 %vm9832_vm0, %v9833_v6 }
0x14b5   :  { %9490 = vmatpush3.bf16.msra.mxu0 %v9916_v13  ;;  %9494 = vmatprep.subr.bf16.mxu1 %v9831_v3 }
0x14b6   :  { %9497 = vmatprep.subr.bf16.mxu0 %v9831_v3 }
0x14b8   :  { %9496 = vmatpush3.bf16.msra.mxu1 %v9936_v19 }
0x14b9   :  { %9503 = vmatprep.subr.bf16.mxu1 %v9831_v3 }
0x157e   :  { %v5071_v11 = vpop.f32.mrb[66].mxu1 }
0x157f   :  { %v8756_v12 = vpop.f32.mrb[67].mxu1 }
0x1583   :  { %v5144_v14 = vpop.f32.mrb[68].mxu0 }
0x1584   :  { %v5145_v15 = vadd.f32 %v5144_v14, %v5071_v11  ;;  %v8767_v16 = vpop.f32.mrb[69].mxu0 }
0x1586   :  { %v5148_v20 = vadd.f32 %v10375_v58, %v5145_v15  ;;  %v5218_v21 = vpop.f32.mrb[68].mxu1 }
0x1587   :  { %v5222_v22 = vadd.f32 %v7487_v18, %v5218_v21  ;;  %v8778_v23 = vpop.f32.mrb[69].mxu1 }
0x1588   :  { %9752 = vtanh.f32 %v5148_v20 }
0x1589   :  { %9754 = vtanh.f32 %v5222_v22 }
0x1592   :  { %v9753_v24 = vpop.eup %9752 }
0x1593   :  { %v9755_v25 = vpop.eup %9754  ;;  %8788 = vmatmul.mubr.msk.f32.vlgmr.msra.gmra.mrb[70].mxu0 %vm45_vm1, %v9753_v24 }
0x1594   :  { %8799 = vmatmul.mubr.msk.f32.vlgmr.msra.gmra.mrb[70].mxu1 %vm45_vm1, %v9755_v25  ;;  %9499 = vmatpush3.bf16.msra.mxu0 %v9881_v4 }
0x1595   :  { %9500 = vmatprep.subr.bf16.mxu0 %v9831_v3  ;;  %8809 = vmatprep.mubr.msk.f32.mxu0 %vm9832_vm0, %v9833_v6 }
0x1596   :  { %9505 = vmatpush3.bf16.msra.mxu1 %v9895_v9  ;;  %8820 = vmatprep.mubr.msk.f32.mxu1 %vm9832_vm0, %v9833_v6 }
0x1597   :  { %9506 = vmatprep.subr.bf16.mxu1 %v9831_v3 }
0x1598   :  { %9502 = vmatpush3.bf16.msra.mxu0 %v9900_v10 }
0x1599   :  { %9509 = vmatprep.subr.bf16.mxu0 %v9831_v3 }
0x159a   :  { %9508 = vmatpush3.bf16.msra.mxu1 %v9916_v13 }
0x159b   :  { %8810 = vmatmul.mubr.msk.f32.vlgmr.msra.gmra.mrb[72].mxu0 %vm45_vm1, %v9755_v25  ;;  %9515 = vmatprep.subr.bf16.mxu1 %v9831_v3  ;;  %v7507_v25 = vld [vmem:[%s10796_s0 + $0x38] sm:$0x3] }
0x159c   :  { %9511 = vmatpush3.bf16.msra.mxu0 %v9929_v17  ;;  %8831 = vmatprep.mubr.msk.f32.mxu0 %vm9832_vm0, %v9833_v6 }
0x159d   :  { %9512 = vmatprep.subr.bf16.mxu0 %v9831_v3 }
0x15a0   :  { %9514 = vmatpush3.bf16.msra.mxu0 %v9936_v19 }
0x15a1   :  { %9521 = vmatprep.subr.bf16.mxu0 %v9831_v3 }
0x1666   :  { %v5293_v26 = vpop.f32.mrb[70].mxu0 }
0x1667   :  { %v5366_v27 = vpop.f32.mrb[70].mxu1  ;;  %v8789_v29 = vpop.f32.mrb[71].mxu0 }
0x1668   :  { %v5367_v30 = vadd.f32 %v5366_v27, %v5293_v26  ;;  %v8800_v31 = vpop.f32.mrb[71].mxu1 }
0x166a   :  { %v5370_v32 = vadd.f32 %v10375_v58, %v5367_v30 }
0x166c   :  { %9756 = vtanh.f32 %v5370_v32 }
0x166e   :  { %v5440_v34 = vpop.f32.mrb[72].mxu0 }
0x166f   :  { %v5444_v35 = vadd.f32 %v7491_v33, %v5440_v34  ;;  %v8811_v36 = vpop.f32.mrb[73].mxu0 }
0x1671   :  { %9758 = vtanh.f32 %v5444_v35 }
0x1676   :  { %v9757_v37 = vpop.eup %9756 }
0x1677   :  { %8821 = vmatmul.mubr.msk.f32.vlgmr.msra.gmra.mrb[72].mxu1 %vm45_vm1, %v9757_v37  ;;  %v7511_v37 = vld [vmem:[%s10796_s0 + $0x3a] sm:$0x3] }
0x1678   :  { %9517 = vmatpush3.bf16.msra.mxu1 %v9881_v4  ;;  %8842 = vmatprep.mubr.msk.f32.mxu1 %vm9832_vm0, %v9833_v6 }
0x1679   :  { %9518 = vmatprep.subr.bf16.mxu1 %v9831_v3 }
0x167b   :  { %v9759_v38 = vpop.eup %9758 }
0x167c   :  { %9520 = vmatpush3.bf16.msra.mxu1 %v9900_v10  ;;  %8832 = vmatmul.mubr.msk.f32.vlgmr.msra.gmra.mrb[74].mxu0 %vm45_vm1, %v9759_v38 }
0x167d   :  { %9523 = vmatpush3.bf16.msra.mxu0 %v9895_v9  ;;  %9527 = vmatprep.subr.bf16.mxu1 %v9831_v3 }
0x167e   :  { %9524 = vmatprep.subr.bf16.mxu0 %v9831_v3  ;;  %8853 = vmatprep.mubr.msk.f32.mxu0 %vm9832_vm0, %v9833_v6 }
0x167f   :  { %8843 = vmatmul.mubr.msk.f32.vlgmr.msra.gmra.mrb[74].mxu1 %vm45_vm1, %v9759_v38 }
0x1680   :  { %9529 = vmatpush3.bf16.msra.mxu1 %v9929_v17  ;;  %8864 = vmatprep.mubr.msk.f32.mxu1 %vm9832_vm0, %v9833_v6 }
0x1681   :  { %9526 = vmatpush3.bf16.msra.mxu0 %v9916_v13  ;;  %9530 = vmatprep.subr.bf16.mxu1 %v9831_v3 }
0x1682   :  { %9533 = vmatprep.subr.bf16.mxu0 %v9831_v3 }
0x1684   :  { %9532 = vmatpush3.bf16.msra.mxu1 %v9936_v19 }
0x1685   :  { %9539 = vmatprep.subr.bf16.mxu1 %v9831_v3 }
0x174a   :  { %v5515_v39 = vpop.f32.mrb[72].mxu1 }
0x174b   :  { %v8822_v40 = vpop.f32.mrb[73].mxu1 }
0x174f   :  { %v5588_v41 = vpop.f32.mrb[74].mxu0 }
0x1750   :  { %v5589_v42 = vadd.f32 %v5588_v41, %v5515_v39  ;;  %v8833_v43 = vpop.f32.mrb[75].mxu0 }
0x1752   :  { %v5592_v45 = vadd.f32 %v10375_v58, %v5589_v42  ;;  %v5662_v46 = vpop.f32.mrb[74].mxu1 }
0x1753   :  { %v5666_v47 = vadd.f32 %v7495_v44, %v5662_v46  ;;  %v8844_v48 = vpop.f32.mrb[75].mxu1 }
0x1754   :  { %9760 = vtanh.f32 %v5592_v45 }
0x1755   :  { %9762 = vtanh.f32 %v5666_v47 }
0x175e   :  { %v9761_v49 = vpop.eup %9760 }
0x175f   :  { %v9763_v50 = vpop.eup %9762  ;;  %8854 = vmatmul.mubr.msk.f32.vlgmr.msra.gmra.mrb[76].mxu0 %vm45_vm1, %v9761_v49 }
0x1760   :  { %8865 = vmatmul.mubr.msk.f32.vlgmr.msra.gmra.mrb[76].mxu1 %vm45_vm1, %v9763_v50  ;;  %9535 = vmatpush3.bf16.msra.mxu0 %v9881_v4 }
0x1761   :  { %9536 = vmatprep.subr.bf16.mxu0 %v9831_v3  ;;  %8875 = vmatprep.mubr.msk.f32.mxu0 %vm9832_vm0, %v9833_v6 }
0x1762   :  { %9541 = vmatpush3.bf16.msra.mxu1 %v9895_v9  ;;  %8886 = vmatprep.mubr.msk.f32.mxu1 %vm9832_vm0, %v9833_v6 }
0x1763   :  { %9542 = vmatprep.subr.bf16.mxu1 %v9831_v3 }
0x1764   :  { %9538 = vmatpush3.bf16.msra.mxu0 %v9900_v10 }
0x1765   :  { %9545 = vmatprep.subr.bf16.mxu0 %v9831_v3 }
0x1766   :  { %9544 = vmatpush3.bf16.msra.mxu1 %v9916_v13 }
0x1767   :  { %8876 = vmatmul.mubr.msk.f32.vlgmr.msra.gmra.mrb[78].mxu0 %vm45_vm1, %v9763_v50  ;;  %9551 = vmatprep.subr.bf16.mxu1 %v9831_v3  ;;  %v7515_v50 = vld [vmem:[%s10796_s0 + $0x3c] sm:$0x3] }
0x1768   :  { %9547 = vmatpush3.bf16.msra.mxu0 %v9929_v17  ;;  %8897 = vmatprep.mubr.msk.f32.mxu0 %vm9832_vm0, %v9833_v6 }
0x1769   :  { %9548 = vmatprep.subr.bf16.mxu0 %v9831_v3 }
0x176c   :  { %9550 = vmatpush3.bf16.msra.mxu0 %v9936_v19 }
0x176d   :  { %9557 = vmatprep.subr.bf16.mxu0 %v9831_v3 }
0x1832   :  { %v5737_v51 = vpop.f32.mrb[76].mxu0 }
0x1833   :  { %v5810_v28 = vpop.f32.mrb[76].mxu1  ;;  %v8855_v52 = vpop.f32.mrb[77].mxu0 }
0x1834   :  { %v5811_v53 = vadd.f32 %v5810_v28, %v5737_v51  ;;  %v8866_v54 = vpop.f32.mrb[77].mxu1 }
0x1836   :  { %v5814_v55 = vadd.f32 %v10375_v58, %v5811_v53 }
0x1838   :  { %9764 = vtanh.f32 %v5814_v55 }
0x183a   :  { %v5884_v57 = vpop.f32.mrb[78].mxu0 }
0x183b   :  { %v5888_v59 = vadd.f32 %v7499_v56, %v5884_v57  ;;  %v8877_v60 = vpop.f32.mrb[79].mxu0  ;;  %v7519_v57 = vld [vmem:[%s10796_s0 + $0x3e] sm:$0x3] }
0x183d   :  { %9766 = vtanh.f32 %v5888_v59 }
0x1842   :  { %v9765_v61 = vpop.eup %9764 }
0x1843   :  { %8887 = vmatmul.mubr.msk.f32.vlgmr.msra.gmra.mrb[78].mxu1 %vm45_vm1, %v9765_v61 }
0x1844   :  { %9553 = vmatpush3.bf16.msra.mxu1 %v9881_v4  ;;  %8908 = vmatprep.mubr.msk.f32.mxu1 %vm9832_vm0, %v9833_v6 }
0x1845   :  { %9554 = vmatprep.subr.bf16.mxu1 %v9831_v3 }
0x1847   :  { %v9767_v62 = vpop.eup %9766 }
0x1848   :  { %9556 = vmatpush3.bf16.msra.mxu1 %v9900_v10  ;;  %8898 = vmatmul.mubr.msk.f32.vlgmr.msra.gmra.mrb[80].mxu0 %vm45_vm1, %v9767_v62 }
0x1849   :  { %9559 = vmatpush3.bf16.msra.mxu0 %v9895_v9  ;;  %9563 = vmatprep.subr.bf16.mxu1 %v9831_v3 }
0x184a   :  { %9560 = vmatprep.subr.bf16.mxu0 %v9831_v3  ;;  %8919 = vmatprep.mubr.msk.f32.mxu0 %vm9832_vm0, %v9833_v6 }
0x184b   :  { %8909 = vmatmul.mubr.msk.f32.vlgmr.msra.gmra.mrb[80].mxu1 %vm45_vm1, %v9767_v62  ;;  %v7154_v62 = vld [vmem:[%s10800_s4 + $0x28] sm:$0xff] }
0x184c   :  { %9565 = vmatpush3.bf16.msra.mxu1 %v9929_v17  ;;  %8930 = vmatprep.mubr.msk.f32.mxu1 %vm9832_vm0, %v9833_v6 }
0x184d   :  { %9562 = vmatpush3.bf16.msra.mxu0 %v9916_v13  ;;  %9566 = vmatprep.subr.bf16.mxu1 %v9831_v3 }
0x184e   :  { %9569 = vmatprep.subr.bf16.mxu0 %v9831_v3 }
0x1850   :  { %9568 = vmatpush3.bf16.msra.mxu1 %v9936_v19 }
0x1851   :  { %9575 = vmatprep.subr.bf16.mxu1 %v9831_v3 }
0x1916   :  { %v5959_v63 = vpop.f32.mrb[78].mxu1 }
0x1917   :  { %v8888_v0 = vpop.f32.mrb[79].mxu1 }
0x191b   :  { %v6032_v1 = vpop.f32.mrb[80].mxu0 }
0x191c   :  { %v6033_v2 = vadd.f32 %v6032_v1, %v5959_v63  ;;  %v8899_v5 = vpop.f32.mrb[81].mxu0  ;;  %v7152_v63 = vld [vmem:[%s10800_s4 + $0x18] sm:$0xff] }
0x191d   :  { %v7156_v1 = vld [vmem:[%s10800_s4 + $0x38] sm:$0xff] }
0x191e   :  { %v6036_v8 = vadd.f32 %v10375_v58, %v6033_v2  ;;  %v6106_v11 = vpop.f32.mrb[80].mxu1  ;;  %v7153_v2 = vld [vmem:[%s10800_s4 + $0x20] sm:$0xff]  ;;  %v9649_v5 = vpack.c.bf16 %v7156_v1, %v7152_v63 }
0x191f   :  { %v6110_v12 = vadd.f32 %v7503_v7, %v6106_v11  ;;  %v8910_v14 = vpop.f32.mrb[81].mxu1  ;;  %v7155_v11 = vld [vmem:[%s10800_s4 + $0x30] sm:$0xff] }
0x1920   :  { %9768 = vtanh.f32 %v6036_v8  ;;  %v7151_v8 = vld [vmem:[%s10800_s4 + $0x10] sm:$0xff]  ;;  %v7158_v14 = vld [vmem:[%s10800_s4 + $0x48] sm:$0xff] }
0x1921   :  { %9770 = vtanh.f32 %v6110_v12  ;;  %v9651_v12 = vpack.c.bf16 %v7155_v11, %v7151_v8 }
0x192a   :  { %v9769_v15 = vpop.eup %9768 }
0x192b   :  { %v9771_v16 = vpop.eup %9770  ;;  %8920 = vmatmul.mubr.msk.f32.vlgmr.msra.gmra.mrb[82].mxu0 %vm45_vm1, %v9769_v15  ;;  %v7162_v15 = vld [vmem:[%s10800_s4 + $0x68] sm:$0xff] }
0x192c   :  { %8931 = vmatmul.mubr.msk.f32.vlgmr.msra.gmra.mrb[82].mxu1 %vm45_vm1, %v9771_v16  ;;  %9571 = vmatpush3.bf16.msra.mxu0 %v9881_v4 }
0x192d   :  { %9572 = vmatprep.subr.bf16.mxu0 %v9831_v3  ;;  %8941 = vmatprep.mubr.msk.f32.mxu0 %vm9832_vm0, %v9833_v6 }
0x192e   :  { %9577 = vmatpush3.bf16.msra.mxu1 %v9895_v9  ;;  %8952 = vmatprep.mubr.msk.f32.mxu1 %vm9832_vm0, %v9833_v6 }
0x192f   :  { %9578 = vmatprep.subr.bf16.mxu1 %v9831_v3 }
0x1930   :  { %9574 = vmatpush3.bf16.msra.mxu0 %v9900_v10 }
0x1931   :  { %9581 = vmatprep.subr.bf16.mxu0 %v9831_v3 }
0x1932   :  { %9580 = vmatpush3.bf16.msra.mxu1 %v9916_v13 }
0x1933   :  { %8942 = vmatmul.mubr.msk.f32.vlgmr.msra.gmra.mrb[84].mxu0 %vm45_vm1, %v9771_v16  ;;  %9587 = vmatprep.subr.bf16.mxu1 %v9831_v3  ;;  %v7160_v16 = vld [vmem:[%s10800_s4 + $0x58] sm:$0xff] }
0x1934   :  { %9583 = vmatpush3.bf16.msra.mxu0 %v9929_v17  ;;  %8963 = vmatprep.mubr.msk.f32.mxu0 %vm9832_vm0, %v9833_v6 }
0x1935   :  { %9584 = vmatprep.subr.bf16.mxu0 %v9831_v3 }
0x1938   :  { %9586 = vmatpush3.bf16.msra.mxu0 %v9936_v19 }
0x1939   :  { %9593 = vmatprep.subr.bf16.mxu0 %v9831_v3 }
0x19fe   :  { %v6181_v18 = vpop.f32.mrb[82].mxu0 }
0x19ff   :  { %v6254_v20 = vpop.f32.mrb[82].mxu1  ;;  %v8921_v21 = vpop.f32.mrb[83].mxu0 }
0x1a00   :  { %v6255_v22 = vadd.f32 %v6254_v20, %v6181_v18  ;;  %v8932_v23 = vpop.f32.mrb[83].mxu1  ;;  %v9645_v18 = vpack.c.bf16 %v7162_v15, %v7158_v14  ;;  %v7164_v20 = vld [vmem:[%s10800_s4 + $0x78] sm:$0xff]  ;;  %v7157_v21 = vld [vmem:[%s10800_s4 + $0x40] sm:$0xff] }
0x1a01   :  { %v9653_v23 = vpack.c.bf16 %v7164_v20, %v7160_v16 }
0x1a02   :  { %v6258_v24 = vadd.f32 %v10375_v58, %v6255_v22  ;;  %v7161_v22 = vld [vmem:[%s10800_s4 + $0x60] sm:$0xff] }
0x1a04   :  { %9772 = vtanh.f32 %v6258_v24  ;;  %v9647_v24 = vpack.c.bf16 %v7161_v22, %v7157_v21 }
0x1a06   :  { %v6328_v26 = vpop.f32.mrb[84].mxu0 }
0x1a07   :  { %v6332_v27 = vadd.f32 %v7507_v25, %v6328_v26  ;;  %v8943_v29 = vpop.f32.mrb[85].mxu0  ;;  %v7159_v25 = vld [vmem:[%s10800_s4 + $0x50] sm:$0xff] }
0x1a08   :  { %v7163_v26 = vld [vmem:[%s10800_s4 + $0x70] sm:$0xff] }
0x1a09   :  { %9774 = vtanh.f32 %v6332_v27  ;;  %v9655_v27 = vpack.c.bf16 %v7163_v26, %v7159_v25 }
0x1a0e   :  { %v9773_v30 = vpop.eup %9772 }
0x1a0f   :  { %8953 = vmatmul.mubr.msk.f32.vlgmr.msra.gmra.mrb[84].mxu1 %vm45_vm1, %v9773_v30 }
0x1a10   :  { %9589 = vmatpush3.bf16.msra.mxu1 %v9881_v4  ;;  %8974 = vmatprep.mubr.msk.f32.mxu1 %vm9832_vm0, %v9833_v6 }
0x1a11   :  { %9590 = vmatprep.subr.bf16.mxu1 %v9831_v3 }
0x1a13   :  { %v9775_v31 = vpop.eup %9774 }
0x1a14   :  { %9592 = vmatpush3.bf16.msra.mxu1 %v9900_v10  ;;  %8964 = vmatmul.mubr.msk.f32.vlgmr.msra.gmra.mrb[86].mxu0 %vm45_vm1, %v9775_v31 }
0x1a15   :  { %9595 = vmatpush3.bf16.msra.mxu0 %v9895_v9  ;;  %9599 = vmatprep.subr.bf16.mxu1 %v9831_v3 }
0x1a16   :  { %9596 = vmatprep.subr.bf16.mxu0 %v9831_v3  ;;  %8985 = vmatprep.mubr.msk.f32.mxu0 %vm9832_vm0, %v9833_v6 }
0x1a17   :  { %8975 = vmatmul.mubr.msk.f32.vlgmr.msra.gmra.mrb[86].mxu1 %vm45_vm1, %v9775_v31 }
0x1a18   :  { %9601 = vmatpush3.bf16.msra.mxu1 %v9929_v17  ;;  %8996 = vmatprep.mubr.msk.f32.mxu1 %vm9832_vm0, %v9833_v6 }
0x1a19   :  { %9598 = vmatpush3.bf16.msra.mxu0 %v9916_v13  ;;  %9602 = vmatprep.subr.bf16.mxu1 %v9831_v3 }
0x1a1a   :  { %9605 = vmatprep.subr.bf16.mxu0 %v9831_v3 }
0x1a1c   :  { %9604 = vmatpush3.bf16.msra.mxu1 %v9936_v19 }
0x1a1d   :  { %9611 = vmatprep.subr.bf16.mxu1 %v9831_v3 }
0x1ae2   :  { %v6403_v32 = vpop.f32.mrb[84].mxu1 }
0x1ae3   :  { %v8954_v33 = vpop.f32.mrb[85].mxu1 }
0x1ae7   :  { %v6476_v34 = vpop.f32.mrb[86].mxu0 }
0x1ae8   :  { %v6477_v35 = vadd.f32 %v6476_v34, %v6403_v32  ;;  %v8965_v36 = vpop.f32.mrb[87].mxu0 }
0x1aea   :  { %v6480_v38 = vadd.f32 %v10375_v58, %v6477_v35  ;;  %v6550_v39 = vpop.f32.mrb[86].mxu1 }
0x1aeb   :  { %v6554_v40 = vadd.f32 %v7511_v37, %v6550_v39  ;;  %v8976_v41 = vpop.f32.mrb[87].mxu1  ;;  %v7167_v37 = vlaneseq }
0x1aec   :  { %9776 = vtanh.f32 %v6480_v38  ;;  %v7165_v41 = vld [vmem:[%s10801_s5] sm:$0xf]  ;;  %s9835_s5 = smov [#allocation2]  }
0x1aed   :  { %9778 = vtanh.f32 %v6554_v40  ;;  %v7168_v38 = vshrl.u32 %v7167_v37, 7  ;;  %s7385_s13 = sshll.u32 %s9835_s5, 4  ;;  %s7386_s13 = int_to_ptr.vmem [resolvable:$true] %s7385_s13 }
0x1aee   :  { %s9807_s14 = scalar_lea.vmem %s7386_s13, 128  ;;  %p9812_p1 = scmp.lt.s32.totalorder %s7386_s13, %s7386_s13 }
0x1aef   :  { %v7169_v39 = vsub.s32 0, %v7168_v38  ;;  %v7177_v40 = vsub.s32 2, %v7168_v38  ;;  %p9808_p0 = scmp.ne.s32.totalorder %s7386_s13, %s9807_s14  ;;  %p9813_p2 = scmp.lt.s32.totalorder %s9807_s14, %s9807_s14 }
0x1af1   :  { %p9814_p3 = por %p9813_p2, %p9812_p1 }
0x1af3   :  { %p9815_p4 = pnand %p9814_p3, %p9808_p0 }
0x1af6   :  { %v9777_v42 = vpop.eup %9776 }
0x1af7   :  { %v9779_v43 = vpop.eup %9778  ;;  %8986 = vmatmul.mubr.msk.f32.vlgmr.msra.gmra.mrb[88].mxu0 %vm45_vm1, %v9777_v42  ;;  %v7173_v42 = vsub.s32 1, %v7168_v38 }
0x1af8   :  { %8997 = vmatmul.mubr.msk.f32.vlgmr.msra.gmra.mrb[88].mxu1 %vm45_vm1, %v9779_v43  ;;  %9607 = vmatpush3.bf16.msra.mxu0 %v9881_v4 }
0x1af9   :  { %9608 = vmatprep.subr.bf16.mxu0 %v9831_v3  ;;  %9007 = vmatprep.mubr.msk.f32.mxu0 %vm9832_vm0, %v9833_v6 }
0x1afa   :  { %9613 = vmatpush3.bf16.msra.mxu1 %v9895_v9  ;;  %9018 = vmatprep.mubr.msk.f32.mxu1 %vm9832_vm0, %v9833_v6 }
0x1afb   :  { %9614 = vmatprep.subr.bf16.mxu1 %v9831_v3 }
0x1afc   :  { %9610 = vmatpush3.bf16.msra.mxu0 %v9900_v10 }
0x1afd   :  { %9617 = vmatprep.subr.bf16.mxu0 %v9831_v3 }
0x1afe   :  { %9616 = vmatpush3.bf16.msra.mxu1 %v9916_v13 }
0x1aff   :  { %9008 = vmatmul.mubr.msk.f32.vlgmr.msra.gmra.mrb[90].mxu0 %vm45_vm1, %v9779_v43  ;;  %9623 = vmatprep.subr.bf16.mxu1 %v9831_v3  ;;  %v7181_v43 = vsub.s32 3, %v7168_v38 }
0x1b00   :  { %9619 = vmatpush3.bf16.msra.mxu0 %v9929_v17  ;;  %9029 = vmatprep.mubr.msk.f32.mxu0 %vm9832_vm0, %v9833_v6 }
0x1b01   :  { %9620 = vmatprep.subr.bf16.mxu0 %v9831_v3 }
0x1b04   :  { %9622 = vmatpush3.bf16.msra.mxu0 %v9936_v19 }
0x1b05   :  { %9629 = vmatprep.subr.bf16.mxu0 %v9831_v3 }
0x1bca   :  { %v6625_v44 = vpop.f32.mrb[88].mxu0 }
0x1bcb   :  { %v6698_v45 = vpop.f32.mrb[88].mxu1  ;;  %v8987_v46 = vpop.f32.mrb[89].mxu0 }
0x1bcc   :  { %v6699_v47 = vadd.f32 %v6698_v45, %v6625_v44  ;;  %v8998_v48 = vpop.f32.mrb[89].mxu1  ;;  %v7170_v44 = vrot.slane %v7165_v41, %v7169_v39  ;;  %v7178_v45 = vrot.slane %v7165_v41, %v7177_v40  ;;  %v7182_v46 = vrot.slane %v7165_v41, %v7181_v43 }
0x1bce   :  { %v6702_v49 = vadd.f32 %v10375_v58, %v6699_v47 }
0x1bd0   :  { %9780 = vtanh.f32 %v6702_v49 }
0x1bd2   :  { %v6772_v51 = vpop.f32.mrb[90].mxu0 }
0x1bd3   :  { %v6776_v28 = vadd.f32 %v7515_v50, %v6772_v51  ;;  %v9009_v52 = vpop.f32.mrb[91].mxu0 }
0x1bd5   :  { %9782 = vtanh.f32 %v6776_v28 }
0x1bda   :  { %v9781_v53 = vpop.eup %9780 }
0x1bdb   :  { %9019 = vmatmul.mubr.msk.f32.vlgmr.msra.gmra.mrb[90].mxu1 %vm45_vm1, %v9781_v53 }
0x1bdc   :  { %9625 = vmatpush3.bf16.msra.mxu1 %v9881_v4  ;;  %9040 = vmatprep.mubr.msk.f32.mxu1 %vm9832_vm0, %v9833_v6 }
0x1bdd   :  { %9626 = vmatprep.subr.bf16.mxu1 %v9831_v3 }
0x1bdf   :  { %v9783_v54 = vpop.eup %9782 }
0x1be0   :  { %9628 = vmatpush3.bf16.msra.mxu1 %v9900_v10  ;;  %9030 = vmatmul.mubr.msk.f32.vlgmr.msra.gmra.mrb[92].mxu0 %vm45_vm1, %v9783_v54 }
0x1be1   :  { %9635 = vmatprep.subr.bf16.mxu1 %v9831_v3  ;;  %9631 = vmatpush3.bf16.msra.mxu0 %v9895_v9 }
0x1be2   :  { %9632 = vmatprep.subr.bf16.mxu0 %v9831_v3  ;;  %9051 = vmatprep.mubr.msk.f32.mxu0 %vm9832_vm0, %v9833_v6 }
0x1be3   :  { %9041 = vmatmul.mubr.msk.f32.vlgmr.msra.gmra.mrb[92].mxu1 %vm45_vm1, %v9783_v54 }
0x1be4   :  { %9637 = vmatpush3.bf16.msra.mxu1 %v9929_v17  ;;  %9062 = vmatprep.mubr.msk.f32.mxu1 %vm9832_vm0, %v9833_v6 }
0x1be5   :  { %9638 = vmatprep.subr.bf16.mxu1 %v9831_v3  ;;  %9634 = vmatpush3.bf16.msra.mxu0 %v9916_v13 }
0x1be8   :  { %9640 = vmatpush3.bf16.msra.mxu1 %v9936_v19  ;;  %v7150_v19 = vld [vmem:[%s10800_s4 + $0x8] sm:$0xff] }
0x1be9   :  { %v9641_v0 = vpack.c.bf16 %v7154_v62, %v7150_v19  ;;  %9650 = vmatprep.subr.bf16.mxu1 %v9649_v5 }
0x1beb   :  { %9642 = vmatprep.subr.bf16.mxu0 %v9641_v0 }
0x1cae   :  { %v6847_v4 = vpop.f32.mrb[90].mxu1 }
0x1caf   :  { %v9020_v9 = vpop.f32.mrb[91].mxu1 }
0x1cb3   :  { %v6920_v10 = vpop.f32.mrb[92].mxu0 }
0x1cb4   :  { %v6921_v55 = vadd.f32 %v6920_v10, %v6847_v4  ;;  %v9031_v56 = vpop.f32.mrb[93].mxu0 }
0x1cb6   :  { %v6924_v17 = vadd.f32 %v10375_v58, %v6921_v55  ;;  %v6994_v59 = vpop.f32.mrb[92].mxu1 }
0x1cb7   :  { %v6998_v60 = vadd.f32 %v7519_v57, %v6994_v59  ;;  %v9042_v61 = vpop.f32.mrb[93].mxu1 }
0x1cb8   :  { %9784 = vtanh.f32 %v6924_v17 }
0x1cb9   :  { %9786 = vtanh.f32 %v6998_v60 }
0x1cc2   :  { %v9785_v3 = vpop.eup %9784 }
0x1cc3   :  { %v9787_v13 = vpop.eup %9786  ;;  %9052 = vmatmul.mubr.msk.f32.vlgmr.msra.gmra.mrb[94].mxu0 %vm45_vm1, %v9785_v3 }
0x1cc4   :  { %9063 = vmatmul.mubr.msk.f32.vlgmr.msra.gmra.mrb[94].mxu1 %vm45_vm1, %v9787_v13  ;;  %7254 = vmatprep.mubr.f32.mxu0 %v9833_v6  ;;  %v9834_v13 = vmov 1983009808  }
0x1cc5   :  { %7325 = vmatprep.mubr.f32.mxu1 %v9833_v6  ;;  %v7149_v6 = vld [vmem:[%s10800_s4] sm:$0xff]  ;;  %9652 = vmatpush1.bf16.msra.mxu1 %v9651_v12  ;;  %v7363_v19 = vunpack.c.l.s4 %v9834_v13 }
0x1cc6   :  { %v9643_v7 = vpack.c.bf16 %v7153_v2, %v7149_v6  ;;  %9654 = vmatprep.subr.bf16.mxu1 %v9653_v23 }
0x1cc7   :  { %v7364_v62 = vunpack.c.0.s8 %v7363_v19 }
0x1cc8   :  { %9644 = vmatpush1.bf16.msra.mxu0 %v9643_v7 }
0x1cc9   :  { %9646 = vmatprep.subr.bf16.mxu0 %v9645_v18  ;;  %9656 = vmatpush1.bf16.msra.mxu1 %v9655_v27  ;;  %v7367_v1 = vsub.s32 %v7364_v62, %v7168_v38 }
0x1ccc   :  { %9648 = vmatpush1.bf16.msra.mxu0 %v9647_v24 }
0x1d96   :  { %v7069_v29 = vpop.f32.mrb[94].mxu0 }
0x1d97   :  { %v7142_v30 = vpop.f32.mrb[94].mxu1  ;;  %v9053_v31 = vpop.f32.mrb[95].mxu0 }
0x1d98   :  { %v7143_v32 = vadd.f32 %v7142_v30, %v7069_v29  ;;  %v9064_v33 = vpop.f32.mrb[95].mxu1 }
0x1d9a   :  { %v7146_v34 = vadd.f32 %v10375_v58, %v7143_v32  ;;  %v7174_v58 = vrot.slane %v7165_v41, %v7173_v42 }
0x1d9c   :  { %9788 = vtanh.f32 %v7146_v34 }
0x1da6   :  { %v9789_v35 = vpop.eup %9788 }
0x1da7   :  { %v7148_v36 = vmax.f32 %v9789_v35, 0.0 }
0x1da9   :  { %7523 = vmatmul.mubr.msk.f32.vlgmr.msra.gmra.mrb[96].mxu0 %vm45_vm1, %v7148_v36  ;;  %7524 = vmatmul.mubr.msk.f32.vlgmr.msra.gmra.mrb[96].mxu1 %vm45_vm1, %v7148_v36 }
0x1e7c   :  { %v7256_v47 = vpop.f32.mrb[96].mxu0  ;;  %v7327_v48 = vpop.f32.mrb[96].mxu1 }
0x1e7d   :  { %v7257_v49 = vadd.f32 %v7256_v47, %v7170_v44  ;;  %v7328_v50 = vadd.f32 %v7327_v48, %v7178_v45  ;;  %v7258_v51 = vpop.f32.mrb[97].mxu0  ;;  %v7329_v28 = vpop.f32.mrb[97].mxu1 }
0x1e7e   :  { %v7259_v52 = vadd.f32 %v7258_v51, %v7174_v58  ;;  %v7330_v53 = vadd.f32 %v7329_v28, %v7182_v46 }
0x1e7f   :  { %v7525_v54 = vmul.f32 -1.442695, %v7257_v49  ;;  %v7527_v4 = vmul.f32 -1.442695, %v7328_v50 }
0x1e80   :  { %v7526_v9 = vmul.f32 -1.442695, %v7259_v52  ;;  %v7528_v10 = vmul.f32 -1.442695, %v7330_v53 }
0x1e81   :  { %9790 = vpow2.f32 %v7525_v54 }
0x1e82   :  { %9792 = vpow2.f32 %v7527_v4 }
0x1e83   :  { %9794 = vpow2.f32 %v7526_v9 }
0x1e84   :  { %9796 = vpow2.f32 %v7528_v10 }
0x1e8b   :  { %v9791_v55 = vpop.eup %9790 }
0x1e8c   :  { %v9793_v56 = vpop.eup %9792  ;;  %v7344_v57 = vadd.f32 1.0, %v9791_v55 }
0x1e8d   :  { %v9795_v17 = vpop.eup %9794  ;;  %v7346_v59 = vadd.f32 1.0, %v9793_v56 }
0x1e8e   :  { %v9797_v60 = vpop.eup %9796  ;;  %9798 = vrcp.f32 %v7344_v57  ;;  %v7345_v61 = vadd.f32 1.0, %v9795_v17 }
0x1e8f   :  { %9800 = vrcp.f32 %v7346_v59  ;;  %v7347_v3 = vadd.f32 1.0, %v9797_v60 }
0x1e90   :  { %9802 = vrcp.f32 %v7345_v61 }
0x1e91   :  { %9804 = vrcp.f32 %v7347_v3 }
0x1e98   :  { %v9799_v63 = vpop.eup %9798 }
0x1e99   :  { %v9801_v0 = vpop.eup %9800 }
0x1e9a   :  { %v9803_v6 = vpop.eup %9802 }
0x1e9b   :  { %v9805_v2 = vpop.eup %9804  ;;  %v7360_v5 = vcombine.low %v9799_v63, %v9803_v6 }
0x1e9c   :  { %v7361_v7 = vcombine.low %v9801_v0, %v9805_v2 }
0x1e9d   :  { %v7368_v8 = vrot.slane %v7360_v5, %v7367_v1 }
0x1e9e   :  { %v7375_v11 = vrot.slane %v7361_v7, %v7367_v1 }
0x1ea0   :  { %v7376_v12 = vcombine.low %v7368_v8, %v7375_v11 }
0x1ea2   :  { %7378 = vst [vmem:[#allocation2] sm:$0xff] %v7376_v12 }
0x1ea3   :  { %9818 = shalt.err (!%p9815_p4)
}
0x1ea4   :  { %s9819_s17 = scalar_lea.hbm %s10802_s6, 128 }
0x1ea5   :  { %p9820_p5 = scmp.ne.s32.totalorder %s10802_s6, %s9819_s17  ;;  %p9823_p6 = scmp.lt.u32.totalorder %s9819_s17, %s10802_s6 }
0x1ea7   :  { %p9825_p7 = pnand %p9823_p6, %p9820_p5 }
0x1ea9   :  { %9828 = shalt.err (!%p9825_p7)
}
0x1eaa   :  { %7388 = dma.vmem_to_hbm [thread:$0]  %s7386_s13, 128, %s10802_s6, [#allocation3]  }
0x1eab   :  { %9829 = dma.done.wait [#allocation3], 128  }
0x1eac   :  { %9830 = vsyncadd [#allocation3], 4294967168 }
0x1ead   :  { %7392 = vsyncpa [#allocation3], 1 }

</bundles_post_ra>
